<compile_context>
chip_gen: v5e
topology: v5e:2x2
jax: 0.10.0
libtpu: 0.0.40
codegen_flags: <defaults>
</compile_context>

<pallas_src>
import jax
import jax.numpy as jnp
from jax import lax
from jax.experimental import pallas as pl
from jax.experimental.pallas import tpu as pltpu


_NEG_INF = -1e30


def _round_up(x, m):
    return ((x + m - 1) // m) * m


# ----------------------------------------------------------------------------
# LSTM cell (PyTorch gate order i, f, g, o). `gates_x` already holds
# x_t @ W_ih + bias; only the recurrent matmul happens here.
# ----------------------------------------------------------------------------
def _lstm_cell(gates_x, h, c, w_hh, is_g_mask, H):
    gates = gates_x + jnp.dot(h, w_hh, preferred_element_type=jnp.float32)
    # full-vreg activations + lane-mask select (no 32-lane sliced EUP ops)
    act = jnp.where(is_g_mask, jnp.tanh(gates), jax.nn.sigmoid(gates))
    i = act[:, 0 * H:1 * H]
    f = act[:, 1 * H:2 * H]
    g = act[:, 2 * H:3 * H]
    o = act[:, 3 * H:4 * H]
    c_new = f * c + i * g
    h_new = o * jnp.tanh(c_new)
    return h_new, c_new


# ----------------------------------------------------------------------------
# fused forward kernel
# ----------------------------------------------------------------------------
def _make_kernel(T, Bp, E, H, L, V, Vp, MVp):
    def kernel(x_ref, eps_ref, emb_ref,
               wih_f_ref, whh_f_ref, b_f_ref,
               wih_b_ref, whh_b_ref, b_b_ref,
               wmuvar_ref, bmuvar_ref,
               dwih_e_ref, dwih_z_ref, dwhh_ref, db_ref,
               wout_ref, bout_ref,
               muvar_ref, logp_ref):
        # ---- embedding gather as one-hot matmul (MXU) --------------------
        ids = x_ref[...]                                          # (T*Bp, 1) int32
        vocab_iota = lax.broadcasted_iota(jnp.int32, (T * Bp, V), 1)
        onehot = (ids == vocab_iota).astype(jnp.float32)          # (T*Bp, V)
        emb = jnp.dot(onehot, emb_ref[...],
                      preferred_element_type=jnp.float32)         # (T*Bp, E)

        # ---- encoder: batched input projections (off the serial path) ----
        xg_f = jnp.dot(emb, wih_f_ref[...],
                       preferred_element_type=jnp.float32) + b_f_ref[...]
        xg_b = jnp.dot(emb, wih_b_ref[...],
                       preferred_element_type=jnp.float32) + b_b_ref[...]
        w_hh_f = whh_f_ref[...]
        w_hh_b = whh_b_ref[...]

        # hoisted gate lane mask (tanh on g-gate lanes, sigmoid elsewhere)
        lane = lax.broadcasted_iota(jnp.int32, (Bp, 4 * H), 1)
        is_g = (lane >= 2 * H) & (lane < 3 * H)

        zeros = jnp.zeros((Bp, H), jnp.float32)
        h_f, c_f = zeros, zeros
        h_b, c_b = zeros, zeros
        # fused fwd/bwd recurrence, fully unrolled (T static, small)
        for t in range(T):
            h_f, c_f = _lstm_cell(xg_f[t * Bp:(t + 1) * Bp],
                                  h_f, c_f, w_hh_f, is_g, H)
            tb = T - 1 - t
            h_b, c_b = _lstm_cell(xg_b[tb * Bp:(tb + 1) * Bp],
                                  h_b, c_b, w_hh_b, is_g, H)

        # ---- fused fc_mu / fc_var: one matmul, one lane-dense store ------
        h_cat = jnp.concatenate([h_f, h_b], axis=1)               # (Bp, 2H)
        muvar = jnp.dot(h_cat, wmuvar_ref[...],
                        preferred_element_type=jnp.float32) + bmuvar_ref[...]
        muvar_ref[...] = muvar                                    # (Bp, MVp)

        # ---- reparameterize (in-kernel, eps is an input) ------------------
        mu = muvar[:, 0:L]
        log_var = muvar[:, L:2 * L]
        z = mu + eps_ref[...] * jnp.exp(0.5 * log_var)            # (Bp, L)

        # ---- decoder: batched x-projection; z folded into a per-batch bias
        xg_d = jnp.dot(emb, dwih_e_ref[...],
                       preferred_element_type=jnp.float32)        # (T*Bp, 4H)
        zb = jnp.dot(z, dwih_z_ref[...],
                     preferred_element_type=jnp.float32) + db_ref[...]  # (Bp, 4H)
        w_hh_d = dwhh_ref[...]

        h_d, c_d = zeros, zeros
        hs = []
        for t in range(T):
            gates_x = xg_d[t * Bp:(t + 1) * Bp] + zb
            h_d, c_d = _lstm_cell(gates_x, h_d, c_d, w_hh_d, is_g, H)
            hs.append(h_d)
        hs_all = jnp.concatenate(hs, axis=0)                      # (T*Bp, H)

        # ---- single batched output projection + vectorized log_softmax ---
        logits = jnp.dot(hs_all, wout_ref[...],
                         preferred_element_type=jnp.float32) + bout_ref[...]
        m = jnp.max(logits, axis=-1, keepdims=True)
        lse = m + jnp.log(jnp.sum(jnp.exp(logits - m), axis=-1, keepdims=True))
        logp_ref[...] = logits - lse                              # (T*Bp, Vp)

    return kernel


# ----------------------------------------------------------------------------
# parameter init (deterministic, synthetic; PyTorch-style layout, pre-transposed)
# ----------------------------------------------------------------------------
def init_params(key, vocab_size, embed_size, hidden_dim, latent_dim):
    ks = jax.random.split(key, 16)
    s = 1.0 / jnp.sqrt(hidden_dim)

    def u(k, shape):
        return jax.random.uniform(k, shape, jnp.float32, -s, s)

    H, E, L, V = hidden_dim, embed_size, latent_dim, vocab_size
    return {
        "embedding": jax.random.normal(ks[0], (V, E), jnp.float32) * 0.1,
        # encoder bi-LSTM (weights stored transposed: (in, 4H))
        "enc_wih_f": u(ks[1], (E, 4 * H)),
        "enc_whh_f": u(ks[2], (H, 4 * H)),
        "enc_b_f":   u(ks[3], (1, 4 * H)),        # = b_ih + b_hh combined
        "enc_wih_b": u(ks[4], (E, 4 * H)),
        "enc_whh_b": u(ks[5], (H, 4 * H)),
        "enc_b_b":   u(ks[6], (1, 4 * H)),
        # fc_mu / fc_var  (2H -> L)
        "w_mu":  u(ks[7], (2 * H, L)),
        "b_mu":  u(ks[8], (1, L)),
        "w_var": u(ks[9], (2 * H, L)),
        "b_var": u(ks[10], (1, L)),
        # decoder LSTM ((E+L) -> H)
        "dec_wih": u(ks[11], (E + L, 4 * H)),
        "dec_whh": u(ks[12], (H, 4 * H)),
        "dec_b":   u(ks[13], (1, 4 * H)),
        # output layer (H -> V)
        "w_out": u(ks[14], (H, V)),
        "b_out": u(ks[15], (1, V)),
    }


# ----------------------------------------------------------------------------
# forward pass wrapper
# ----------------------------------------------------------------------------
def vae_lstm_forward(params, x, eps_key):
    B, T = x.shape
    V, E = params["embedding"].shape
    H = params["enc_whh_f"].shape[0]
    L = params["w_mu"].shape[1]

    Bp = max(8, _round_up(B, 8))        # fill the f32 sublane tile
    Vp = _round_up(V, 128)              # lane-dense decoder output
    MVp = _round_up(2 * L, 128)         # lane-dense mu|logvar output

    # ---- fuse / pad parameters (tiny, trace-time layout plumbing) --------
    w_muvar = jnp.concatenate([params["w_mu"], params["w_var"]], axis=1)   # (2H, 2L)
    b_muvar = jnp.concatenate([params["b_mu"], params["b_var"]], axis=1)   # (1, 2L)
    w_muvar = jnp.pad(w_muvar, ((0, 0), (0, MVp - 2 * L)))
    b_muvar = jnp.pad(b_muvar, ((0, 0), (0, MVp - 2 * L)))

    w_out = jnp.pad(params["w_out"], ((0, 0), (0, Vp - V)))
    b_out = jnp.pad(params["b_out"], ((0, 0), (0, Vp - V)),
                    constant_values=_NEG_INF)  # padded vocab lanes -> ~0 prob

    dec_wih_e = params["dec_wih"][:E]          # multiplies embedding part
    dec_wih_z = params["dec_wih"][E:]          # multiplies z part

    # ---- inputs: time-major flattened ids, batch padded to Bp ------------
    x_tm = jnp.transpose(x.astype(jnp.int32), (1, 0))          # (T, B)
    x_tm = jnp.pad(x_tm, ((0, 0), (0, Bp - B)))                # pad with token 0
    x_flat = x_tm.reshape(T * Bp, 1)

    eps = jax.random.normal(eps_key, (B, L), jnp.float32)
    eps_p = jnp.pad(eps, ((0, Bp - B), (0, 0)))

    kernel = _make_kernel(T, Bp, E, H, L, V, Vp, MVp)
    vmem = pl.BlockSpec(memory_space=pltpu.MemorySpace.VMEM)

    muvar, logp = pl.pallas_call(
        kernel,
        out_shape=(jax.ShapeDtypeStruct((Bp, MVp), jnp.float32),
                   jax.ShapeDtypeStruct((T * Bp, Vp), jnp.float32)),
        in_specs=[vmem] * 17,
        out_specs=(vmem, vmem),
    )(x_flat, eps_p, params["embedding"],
      params["enc_wih_f"], params["enc_whh_f"], params["enc_b_f"],
      params["enc_wih_b"], params["enc_whh_b"], params["enc_b_b"],
      w_muvar, b_muvar,
      dec_wih_e, dec_wih_z, params["dec_whh"], params["dec_b"],
      w_out, b_out)

    mu = muvar[:B, :L]
    log_var = muvar[:B, L:2 * L]
    log_probs = jnp.transpose(
        logp.reshape(T, Bp, Vp)[:, :B, :V], (1, 0, 2))          # (B, T, V)
    return log_probs, mu, log_var


# ----------------------------------------------------------------------------
if __name__ == "__main__":
    B, T = 2, 8
    vocab_size, embed_size, hidden_dim, latent_dim = 32, 16, 32, 8
    num_layers, dropout_rate = 1, 0.0  # dropout inactive for num_layers == 1

    params = init_params(jax.random.PRNGKey(0), vocab_size, embed_size,
                         hidden_dim, latent_dim)
    x = jax.random.randint(jax.random.PRNGKey(0), (B, T), 0, vocab_size,
                           dtype=jnp.int32)

    log_probs, mu, log_var = jax.jit(vae_lstm_forward)(params, x,
                                                       jax.random.PRNGKey(1))
    jax.block_until_ready((log_probs, mu, log_var))

    assert log_probs.shape == (B, T, vocab_size)
    assert mu.shape == (B, latent_dim) and log_var.shape == (B, latent_dim)
    # log_softmax rows must sum to ~1 in probability space
    assert bool(jnp.allclose(jnp.sum(jnp.exp(log_probs), axis=-1), 1.0,
                             atol=1e-4))
    assert bool(jnp.all(jnp.isfinite(log_probs)))
    print("KERNEL_OK")
</pallas_src>

<mosaic_0001>
module attributes {stable_mosaic.version = 11 : i64} {
  func.func @kernel(%arg0: memref<64x1xi32, #tpu.memory_space<vmem>>, %arg1: memref<8x8xf32, #tpu.memory_space<vmem>>, %arg2: memref<32x16xf32, #tpu.memory_space<vmem>>, %arg3: memref<16x128xf32, #tpu.memory_space<vmem>>, %arg4: memref<32x128xf32, #tpu.memory_space<vmem>>, %arg5: memref<1x128xf32, #tpu.memory_space<vmem>>, %arg6: memref<16x128xf32, #tpu.memory_space<vmem>>, %arg7: memref<32x128xf32, #tpu.memory_space<vmem>>, %arg8: memref<1x128xf32, #tpu.memory_space<vmem>>, %arg9: memref<64x128xf32, #tpu.memory_space<vmem>>, %arg10: memref<1x128xf32, #tpu.memory_space<vmem>>, %arg11: memref<16x128xf32, #tpu.memory_space<vmem>>, %arg12: memref<8x128xf32, #tpu.memory_space<vmem>>, %arg13: memref<32x128xf32, #tpu.memory_space<vmem>>, %arg14: memref<1x128xf32, #tpu.memory_space<vmem>>, %arg15: memref<32x128xf32, #tpu.memory_space<vmem>>, %arg16: memref<1x128xf32, #tpu.memory_space<vmem>>, %arg17: memref<8x128xf32, #tpu.memory_space<vmem>>, %arg18: memref<64x128xf32, #tpu.memory_space<vmem>>) attributes {dimension_semantics = [], scalar_prefetch = 0 : i64, scratch_operands = 0 : i64, tpu.core_type = #tpu.core_type<tc>} {
    %c0 = arith.constant 0 : index
    %c0_0 = arith.constant 0 : index
    %0 = vector.load %arg0[%c0, %c0_0] : memref<64x1xi32, #tpu.memory_space<vmem>>, vector<64x1xi32>
    %1 = tpu.iota {dimensions = array<i32: 1>} : vector<64x32xi32>
    %2 = vector.broadcast %0 : vector<64x1xi32> to vector<64x32xi32>
    %3 = arith.cmpi eq, %2, %1 : vector<64x32xi32>
    %4 = arith.extui %3 : vector<64x32xi1> to vector<64x32xi32>
    %5 = arith.sitofp %4 : vector<64x32xi32> to vector<64x32xf32>
    %c0_1 = arith.constant 0 : index
    %c0_2 = arith.constant 0 : index
    %6 = vector.load %arg2[%c0_1, %c0_2] : memref<32x16xf32, #tpu.memory_space<vmem>>, vector<32x16xf32>
    %cst = arith.constant dense<0.000000e+00> : vector<64x16xf32>
    %7 = tpu.matmul %5, %6, %cst {dimension_numbers = #tpu.dot_dimension_numbers<[1], [0], [0], [1], [0, 0, 1, 1], [], []>} : vector<64x32xf32>, vector<32x16xf32>, vector<64x16xf32> -> vector<64x16xf32>
    %c0_3 = arith.constant 0 : index
    %c0_4 = arith.constant 0 : index
    %8 = vector.load %arg3[%c0_3, %c0_4] : memref<16x128xf32, #tpu.memory_space<vmem>>, vector<16x128xf32>
    %cst_5 = arith.constant dense<0.000000e+00> : vector<64x128xf32>
    %9 = tpu.matmul %7, %8, %cst_5 {dimension_numbers = #tpu.dot_dimension_numbers<[1], [0], [0], [1], [0, 0, 1, 1], [], []>} : vector<64x16xf32>, vector<16x128xf32>, vector<64x128xf32> -> vector<64x128xf32>
    %c0_6 = arith.constant 0 : index
    %c0_7 = arith.constant 0 : index
    %10 = vector.load %arg5[%c0_6, %c0_7] : memref<1x128xf32, #tpu.memory_space<vmem>>, vector<1x128xf32>
    %11 = vector.broadcast %10 : vector<1x128xf32> to vector<64x128xf32>
    %12 = arith.addf %9, %11 : vector<64x128xf32>
    %c0_8 = arith.constant 0 : index
    %c0_9 = arith.constant 0 : index
    %13 = vector.load %arg6[%c0_8, %c0_9] : memref<16x128xf32, #tpu.memory_space<vmem>>, vector<16x128xf32>
    %cst_10 = arith.constant dense<0.000000e+00> : vector<64x128xf32>
    %14 = tpu.matmul %7, %13, %cst_10 {dimension_numbers = #tpu.dot_dimension_numbers<[1], [0], [0], [1], [0, 0, 1, 1], [], []>} : vector<64x16xf32>, vector<16x128xf32>, vector<64x128xf32> -> vector<64x128xf32>
    %c0_11 = arith.constant 0 : index
    %c0_12 = arith.constant 0 : index
    %15 = vector.load %arg8[%c0_11, %c0_12] : memref<1x128xf32, #tpu.memory_space<vmem>>, vector<1x128xf32>
    %16 = vector.broadcast %15 : vector<1x128xf32> to vector<64x128xf32>
    %17 = arith.addf %14, %16 : vector<64x128xf32>
    %c0_13 = arith.constant 0 : index
    %c0_14 = arith.constant 0 : index
    %18 = vector.load %arg4[%c0_13, %c0_14] : memref<32x128xf32, #tpu.memory_space<vmem>>, vector<32x128xf32>
    %c0_15 = arith.constant 0 : index
    %c0_16 = arith.constant 0 : index
    %19 = vector.load %arg7[%c0_15, %c0_16] : memref<32x128xf32, #tpu.memory_space<vmem>>, vector<32x128xf32>
    %20 = tpu.iota {dimensions = array<i32: 1>} : vector<8x128xi32>
    %c64_i32 = arith.constant 64 : i32
    %21 = vector.broadcast %c64_i32 : i32 to vector<8x128xi32>
    %22 = arith.cmpi sge, %20, %21 : vector<8x128xi32>
    %c96_i32 = arith.constant 96 : i32
    %23 = vector.broadcast %c96_i32 : i32 to vector<8x128xi32>
    %24 = arith.cmpi slt, %20, %23 : vector<8x128xi32>
    %25 = arith.andi %22, %24 : vector<8x128xi1>
    %cst_17 = arith.constant 0.000000e+00 : f32
    %26 = vector.broadcast %cst_17 : f32 to vector<8x32xf32>
    %27 = vector.extract_strided_slice %12 {offsets = [0, 0], sizes = [8, 128], strides = [1, 1]} : vector<64x128xf32> to vector<8x128xf32>
    %cst_18 = arith.constant dense<0.000000e+00> : vector<8x128xf32>
    %28 = tpu.matmul %26, %18, %cst_18 {dimension_numbers = #tpu.dot_dimension_numbers<[1], [0], [0], [1], [0, 0, 1, 1], [], []>} : vector<8x32xf32>, vector<32x128xf32>, vector<8x128xf32> -> vector<8x128xf32>
    %29 = arith.addf %27, %28 : vector<8x128xf32>
    %30 = math.tanh %29 : vector<8x128xf32>
    %31 = arith.negf %29 : vector<8x128xf32>
    %32 = math.exp %31 : vector<8x128xf32>
    %cst_19 = arith.constant 1.000000e+00 : f32
    %33 = vector.broadcast %cst_19 : f32 to vector<8x128xf32>
    %34 = arith.addf %33, %32 : vector<8x128xf32>
    %35 = arith.divf %33, %34 : vector<8x128xf32>
    %36 = arith.select %25, %30, %35 : vector<8x128xi1>, vector<8x128xf32>
    %37 = vector.extract_strided_slice %36 {offsets = [0, 0], sizes = [8, 32], strides = [1, 1]} : vector<8x128xf32> to vector<8x32xf32>
    %38 = vector.extract_strided_slice %36 {offsets = [0, 32], sizes = [8, 32], strides = [1, 1]} : vector<8x128xf32> to vector<8x32xf32>
    %39 = vector.extract_strided_slice %36 {offsets = [0, 64], sizes = [8, 32], strides = [1, 1]} : vector<8x128xf32> to vector<8x32xf32>
    %40 = vector.extract_strided_slice %36 {offsets = [0, 96], sizes = [8, 32], strides = [1, 1]} : vector<8x128xf32> to vector<8x32xf32>
    %41 = arith.mulf %38, %26 : vector<8x32xf32>
    %42 = arith.mulf %37, %39 : vector<8x32xf32>
    %43 = arith.addf %41, %42 : vector<8x32xf32>
    %44 = math.tanh %43 : vector<8x32xf32>
    %45 = arith.mulf %40, %44 : vector<8x32xf32>
    %46 = vector.extract_strided_slice %17 {offsets = [56, 0], sizes = [8, 128], strides = [1, 1]} : vector<64x128xf32> to vector<8x128xf32>
    %cst_20 = arith.constant dense<0.000000e+00> : vector<8x128xf32>
    %47 = tpu.matmul %26, %19, %cst_20 {dimension_numbers = #tpu.dot_dimension_numbers<[1], [0], [0], [1], [0, 0, 1, 1], [], []>} : vector<8x32xf32>, vector<32x128xf32>, vector<8x128xf32> -> vector<8x128xf32>
    %48 = arith.addf %46, %47 : vector<8x128xf32>
    %49 = math.tanh %48 : vector<8x128xf32>
    %50 = arith.negf %48 : vector<8x128xf32>
    %51 = math.exp %50 : vector<8x128xf32>
    %cst_21 = arith.constant 1.000000e+00 : f32
    %52 = vector.broadcast %cst_21 : f32 to vector<8x128xf32>
    %53 = arith.addf %52, %51 : vector<8x128xf32>
    %54 = arith.divf %52, %53 : vector<8x128xf32>
    %55 = arith.select %25, %49, %54 : vector<8x128xi1>, vector<8x128xf32>
    %56 = vector.extract_strided_slice %55 {offsets = [0, 0], sizes = [8, 32], strides = [1, 1]} : vector<8x128xf32> to vector<8x32xf32>
    %57 = vector.extract_strided_slice %55 {offsets = [0, 32], sizes = [8, 32], strides = [1, 1]} : vector<8x128xf32> to vector<8x32xf32>
    %58 = vector.extract_strided_slice %55 {offsets = [0, 64], sizes = [8, 32], strides = [1, 1]} : vector<8x128xf32> to vector<8x32xf32>
    %59 = vector.extract_strided_slice %55 {offsets = [0, 96], sizes = [8, 32], strides = [1, 1]} : vector<8x128xf32> to vector<8x32xf32>
    %60 = arith.mulf %57, %26 : vector<8x32xf32>
    %61 = arith.mulf %56, %58 : vector<8x32xf32>
    %62 = arith.addf %60, %61 : vector<8x32xf32>
    %63 = math.tanh %62 : vector<8x32xf32>
    %64 = arith.mulf %59, %63 : vector<8x32xf32>
    %65 = vector.extract_strided_slice %12 {offsets = [8, 0], sizes = [8, 128], strides = [1, 1]} : vector<64x128xf32> to vector<8x128xf32>
    %cst_22 = arith.constant dense<0.000000e+00> : vector<8x128xf32>
    %66 = tpu.matmul %45, %18, %cst_22 {dimension_numbers = #tpu.dot_dimension_numbers<[1], [0], [0], [1], [0, 0, 1, 1], [], []>} : vector<8x32xf32>, vector<32x128xf32>, vector<8x128xf32> -> vector<8x128xf32>
    %67 = arith.addf %65, %66 : vector<8x128xf32>
    %68 = math.tanh %67 : vector<8x128xf32>
    %69 = arith.negf %67 : vector<8x128xf32>
    %70 = math.exp %69 : vector<8x128xf32>
    %cst_23 = arith.constant 1.000000e+00 : f32
    %71 = vector.broadcast %cst_23 : f32 to vector<8x128xf32>
    %72 = arith.addf %71, %70 : vector<8x128xf32>
    %73 = arith.divf %71, %72 : vector<8x128xf32>
    %74 = arith.select %25, %68, %73 : vector<8x128xi1>, vector<8x128xf32>
    %75 = vector.extract_strided_slice %74 {offsets = [0, 0], sizes = [8, 32], strides = [1, 1]} : vector<8x128xf32> to vector<8x32xf32>
    %76 = vector.extract_strided_slice %74 {offsets = [0, 32], sizes = [8, 32], strides = [1, 1]} : vector<8x128xf32> to vector<8x32xf32>
    %77 = vector.extract_strided_slice %74 {offsets = [0, 64], sizes = [8, 32], strides = [1, 1]} : vector<8x128xf32> to vector<8x32xf32>
    %78 = vector.extract_strided_slice %74 {offsets = [0, 96], sizes = [8, 32], strides = [1, 1]} : vector<8x128xf32> to vector<8x32xf32>
    %79 = arith.mulf %76, %43 : vector<8x32xf32>
    %80 = arith.mulf %75, %77 : vector<8x32xf32>
    %81 = arith.addf %79, %80 : vector<8x32xf32>
    %82 = math.tanh %81 : vector<8x32xf32>
    %83 = arith.mulf %78, %82 : vector<8x32xf32>
    %84 = vector.extract_strided_slice %17 {offsets = [48, 0], sizes = [8, 128], strides = [1, 1]} : vector<64x128xf32> to vector<8x128xf32>
    %cst_24 = arith.constant dense<0.000000e+00> : vector<8x128xf32>
    %85 = tpu.matmul %64, %19, %cst_24 {dimension_numbers = #tpu.dot_dimension_numbers<[1], [0], [0], [1], [0, 0, 1, 1], [], []>} : vector<8x32xf32>, vector<32x128xf32>, vector<8x128xf32> -> vector<8x128xf32>
    %86 = arith.addf %84, %85 : vector<8x128xf32>
    %87 = math.tanh %86 : vector<8x128xf32>
    %88 = arith.negf %86 : vector<8x128xf32>
    %89 = math.exp %88 : vector<8x128xf32>
    %cst_25 = arith.constant 1.000000e+00 : f32
    %90 = vector.broadcast %cst_25 : f32 to vector<8x128xf32>
    %91 = arith.addf %90, %89 : vector<8x128xf32>
    %92 = arith.divf %90, %91 : vector<8x128xf32>
    %93 = arith.select %25, %87, %92 : vector<8x128xi1>, vector<8x128xf32>
    %94 = vector.extract_strided_slice %93 {offsets = [0, 0], sizes = [8, 32], strides = [1, 1]} : vector<8x128xf32> to vector<8x32xf32>
    %95 = vector.extract_strided_slice %93 {offsets = [0, 32], sizes = [8, 32], strides = [1, 1]} : vector<8x128xf32> to vector<8x32xf32>
    %96 = vector.extract_strided_slice %93 {offsets = [0, 64], sizes = [8, 32], strides = [1, 1]} : vector<8x128xf32> to vector<8x32xf32>
    %97 = vector.extract_strided_slice %93 {offsets = [0, 96], sizes = [8, 32], strides = [1, 1]} : vector<8x128xf32> to vector<8x32xf32>
    %98 = arith.mulf %95, %62 : vector<8x32xf32>
    %99 = arith.mulf %94, %96 : vector<8x32xf32>
    %100 = arith.addf %98, %99 : vector<8x32xf32>
    %101 = math.tanh %100 : vector<8x32xf32>
    %102 = arith.mulf %97, %101 : vector<8x32xf32>
    %103 = vector.extract_strided_slice %12 {offsets = [16, 0], sizes = [8, 128], strides = [1, 1]} : vector<64x128xf32> to vector<8x128xf32>
    %cst_26 = arith.constant dense<0.000000e+00> : vector<8x128xf32>
    %104 = tpu.matmul %83, %18, %cst_26 {dimension_numbers = #tpu.dot_dimension_numbers<[1], [0], [0], [1], [0, 0, 1, 1], [], []>} : vector<8x32xf32>, vector<32x128xf32>, vector<8x128xf32> -> vector<8x128xf32>
    %105 = arith.addf %103, %104 : vector<8x128xf32>
    %106 = math.tanh %105 : vector<8x128xf32>
    %107 = arith.negf %105 : vector<8x128xf32>
    %108 = math.exp %107 : vector<8x128xf32>
    %cst_27 = arith.constant 1.000000e+00 : f32
    %109 = vector.broadcast %cst_27 : f32 to vector<8x128xf32>
    %110 = arith.addf %109, %108 : vector<8x128xf32>
    %111 = arith.divf %109, %110 : vector<8x128xf32>
    %112 = arith.select %25, %106, %111 : vector<8x128xi1>, vector<8x128xf32>
    %113 = vector.extract_strided_slice %112 {offsets = [0, 0], sizes = [8, 32], strides = [1, 1]} : vector<8x128xf32> to vector<8x32xf32>
    %114 = vector.extract_strided_slice %112 {offsets = [0, 32], sizes = [8, 32], strides = [1, 1]} : vector<8x128xf32> to vector<8x32xf32>
    %115 = vector.extract_strided_slice %112 {offsets = [0, 64], sizes = [8, 32], strides = [1, 1]} : vector<8x128xf32> to vector<8x32xf32>
    %116 = vector.extract_strided_slice %112 {offsets = [0, 96], sizes = [8, 32], strides = [1, 1]} : vector<8x128xf32> to vector<8x32xf32>
    %117 = arith.mulf %114, %81 : vector<8x32xf32>
    %118 = arith.mulf %113, %115 : vector<8x32xf32>
    %119 = arith.addf %117, %118 : vector<8x32xf32>
    %120 = math.tanh %119 : vector<8x32xf32>
    %121 = arith.mulf %116, %120 : vector<8x32xf32>
    %122 = vector.extract_strided_slice %17 {offsets = [40, 0], sizes = [8, 128], strides = [1, 1]} : vector<64x128xf32> to vector<8x128xf32>
    %cst_28 = arith.constant dense<0.000000e+00> : vector<8x128xf32>
    %123 = tpu.matmul %102, %19, %cst_28 {dimension_numbers = #tpu.dot_dimension_numbers<[1], [0], [0], [1], [0, 0, 1, 1], [], []>} : vector<8x32xf32>, vector<32x128xf32>, vector<8x128xf32> -> vector<8x128xf32>
    %124 = arith.addf %122, %123 : vector<8x128xf32>
    %125 = math.tanh %124 : vector<8x128xf32>
    %126 = arith.negf %124 : vector<8x128xf32>
    %127 = math.exp %126 : vector<8x128xf32>
    %cst_29 = arith.constant 1.000000e+00 : f32
    %128 = vector.broadcast %cst_29 : f32 to vector<8x128xf32>
    %129 = arith.addf %128, %127 : vector<8x128xf32>
    %130 = arith.divf %128, %129 : vector<8x128xf32>
    %131 = arith.select %25, %125, %130 : vector<8x128xi1>, vector<8x128xf32>
    %132 = vector.extract_strided_slice %131 {offsets = [0, 0], sizes = [8, 32], strides = [1, 1]} : vector<8x128xf32> to vector<8x32xf32>
    %133 = vector.extract_strided_slice %131 {offsets = [0, 32], sizes = [8, 32], strides = [1, 1]} : vector<8x128xf32> to vector<8x32xf32>
    %134 = vector.extract_strided_slice %131 {offsets = [0, 64], sizes = [8, 32], strides = [1, 1]} : vector<8x128xf32> to vector<8x32xf32>
    %135 = vector.extract_strided_slice %131 {offsets = [0, 96], sizes = [8, 32], strides = [1, 1]} : vector<8x128xf32> to vector<8x32xf32>
    %136 = arith.mulf %133, %100 : vector<8x32xf32>
    %137 = arith.mulf %132, %134 : vector<8x32xf32>
    %138 = arith.addf %136, %137 : vector<8x32xf32>
    %139 = math.tanh %138 : vector<8x32xf32>
    %140 = arith.mulf %135, %139 : vector<8x32xf32>
    %141 = vector.extract_strided_slice %12 {offsets = [24, 0], sizes = [8, 128], strides = [1, 1]} : vector<64x128xf32> to vector<8x128xf32>
    %cst_30 = arith.constant dense<0.000000e+00> : vector<8x128xf32>
    %142 = tpu.matmul %121, %18, %cst_30 {dimension_numbers = #tpu.dot_dimension_numbers<[1], [0], [0], [1], [0, 0, 1, 1], [], []>} : vector<8x32xf32>, vector<32x128xf32>, vector<8x128xf32> -> vector<8x128xf32>
    %143 = arith.addf %141, %142 : vector<8x128xf32>
    %144 = math.tanh %143 : vector<8x128xf32>
    %145 = arith.negf %143 : vector<8x128xf32>
    %146 = math.exp %145 : vector<8x128xf32>
    %cst_31 = arith.constant 1.000000e+00 : f32
    %147 = vector.broadcast %cst_31 : f32 to vector<8x128xf32>
    %148 = arith.addf %147, %146 : vector<8x128xf32>
    %149 = arith.divf %147, %148 : vector<8x128xf32>
    %150 = arith.select %25, %144, %149 : vector<8x128xi1>, vector<8x128xf32>
    %151 = vector.extract_strided_slice %150 {offsets = [0, 0], sizes = [8, 32], strides = [1, 1]} : vector<8x128xf32> to vector<8x32xf32>
    %152 = vector.extract_strided_slice %150 {offsets = [0, 32], sizes = [8, 32], strides = [1, 1]} : vector<8x128xf32> to vector<8x32xf32>
    %153 = vector.extract_strided_slice %150 {offsets = [0, 64], sizes = [8, 32], strides = [1, 1]} : vector<8x128xf32> to vector<8x32xf32>
    %154 = vector.extract_strided_slice %150 {offsets = [0, 96], sizes = [8, 32], strides = [1, 1]} : vector<8x128xf32> to vector<8x32xf32>
    %155 = arith.mulf %152, %119 : vector<8x32xf32>
    %156 = arith.mulf %151, %153 : vector<8x32xf32>
    %157 = arith.addf %155, %156 : vector<8x32xf32>
    %158 = math.tanh %157 : vector<8x32xf32>
    %159 = arith.mulf %154, %158 : vector<8x32xf32>
    %160 = vector.extract_strided_slice %17 {offsets = [32, 0], sizes = [8, 128], strides = [1, 1]} : vector<64x128xf32> to vector<8x128xf32>
    %cst_32 = arith.constant dense<0.000000e+00> : vector<8x128xf32>
    %161 = tpu.matmul %140, %19, %cst_32 {dimension_numbers = #tpu.dot_dimension_numbers<[1], [0], [0], [1], [0, 0, 1, 1], [], []>} : vector<8x32xf32>, vector<32x128xf32>, vector<8x128xf32> -> vector<8x128xf32>
    %162 = arith.addf %160, %161 : vector<8x128xf32>
    %163 = math.tanh %162 : vector<8x128xf32>
    %164 = arith.negf %162 : vector<8x128xf32>
    %165 = math.exp %164 : vector<8x128xf32>
    %cst_33 = arith.constant 1.000000e+00 : f32
    %166 = vector.broadcast %cst_33 : f32 to vector<8x128xf32>
    %167 = arith.addf %166, %165 : vector<8x128xf32>
    %168 = arith.divf %166, %167 : vector<8x128xf32>
    %169 = arith.select %25, %163, %168 : vector<8x128xi1>, vector<8x128xf32>
    %170 = vector.extract_strided_slice %169 {offsets = [0, 0], sizes = [8, 32], strides = [1, 1]} : vector<8x128xf32> to vector<8x32xf32>
    %171 = vector.extract_strided_slice %169 {offsets = [0, 32], sizes = [8, 32], strides = [1, 1]} : vector<8x128xf32> to vector<8x32xf32>
    %172 = vector.extract_strided_slice %169 {offsets = [0, 64], sizes = [8, 32], strides = [1, 1]} : vector<8x128xf32> to vector<8x32xf32>
    %173 = vector.extract_strided_slice %169 {offsets = [0, 96], sizes = [8, 32], strides = [1, 1]} : vector<8x128xf32> to vector<8x32xf32>
    %174 = arith.mulf %171, %138 : vector<8x32xf32>
    %175 = arith.mulf %170, %172 : vector<8x32xf32>
    %176 = arith.addf %174, %175 : vector<8x32xf32>
    %177 = math.tanh %176 : vector<8x32xf32>
    %178 = arith.mulf %173, %177 : vector<8x32xf32>
    %179 = vector.extract_strided_slice %12 {offsets = [32, 0], sizes = [8, 128], strides = [1, 1]} : vector<64x128xf32> to vector<8x128xf32>
    %cst_34 = arith.constant dense<0.000000e+00> : vector<8x128xf32>
    %180 = tpu.matmul %159, %18, %cst_34 {dimension_numbers = #tpu.dot_dimension_numbers<[1], [0], [0], [1], [0, 0, 1, 1], [], []>} : vector<8x32xf32>, vector<32x128xf32>, vector<8x128xf32> -> vector<8x128xf32>
    %181 = arith.addf %179, %180 : vector<8x128xf32>
    %182 = math.tanh %181 : vector<8x128xf32>
    %183 = arith.negf %181 : vector<8x128xf32>
    %184 = math.exp %183 : vector<8x128xf32>
    %cst_35 = arith.constant 1.000000e+00 : f32
    %185 = vector.broadcast %cst_35 : f32 to vector<8x128xf32>
    %186 = arith.addf %185, %184 : vector<8x128xf32>
    %187 = arith.divf %185, %186 : vector<8x128xf32>
    %188 = arith.select %25, %182, %187 : vector<8x128xi1>, vector<8x128xf32>
    %189 = vector.extract_strided_slice %188 {offsets = [0, 0], sizes = [8, 32], strides = [1, 1]} : vector<8x128xf32> to vector<8x32xf32>
    %190 = vector.extract_strided_slice %188 {offsets = [0, 32], sizes = [8, 32], strides = [1, 1]} : vector<8x128xf32> to vector<8x32xf32>
    %191 = vector.extract_strided_slice %188 {offsets = [0, 64], sizes = [8, 32], strides = [1, 1]} : vector<8x128xf32> to vector<8x32xf32>
    %192 = vector.extract_strided_slice %188 {offsets = [0, 96], sizes = [8, 32], strides = [1, 1]} : vector<8x128xf32> to vector<8x32xf32>
    %193 = arith.mulf %190, %157 : vector<8x32xf32>
    %194 = arith.mulf %189, %191 : vector<8x32xf32>
    %195 = arith.addf %193, %194 : vector<8x32xf32>
    %196 = math.tanh %195 : vector<8x32xf32>
    %197 = arith.mulf %192, %196 : vector<8x32xf32>
    %198 = vector.extract_strided_slice %17 {offsets = [24, 0], sizes = [8, 128], strides = [1, 1]} : vector<64x128xf32> to vector<8x128xf32>
    %cst_36 = arith.constant dense<0.000000e+00> : vector<8x128xf32>
    %199 = tpu.matmul %178, %19, %cst_36 {dimension_numbers = #tpu.dot_dimension_numbers<[1], [0], [0], [1], [0, 0, 1, 1], [], []>} : vector<8x32xf32>, vector<32x128xf32>, vector<8x128xf32> -> vector<8x128xf32>
    %200 = arith.addf %198, %199 : vector<8x128xf32>
    %201 = math.tanh %200 : vector<8x128xf32>
    %202 = arith.negf %200 : vector<8x128xf32>
    %203 = math.exp %202 : vector<8x128xf32>
    %cst_37 = arith.constant 1.000000e+00 : f32
    %204 = vector.broadcast %cst_37 : f32 to vector<8x128xf32>
    %205 = arith.addf %204, %203 : vector<8x128xf32>
    %206 = arith.divf %204, %205 : vector<8x128xf32>
    %207 = arith.select %25, %201, %206 : vector<8x128xi1>, vector<8x128xf32>
    %208 = vector.extract_strided_slice %207 {offsets = [0, 0], sizes = [8, 32], strides = [1, 1]} : vector<8x128xf32> to vector<8x32xf32>
    %209 = vector.extract_strided_slice %207 {offsets = [0, 32], sizes = [8, 32], strides = [1, 1]} : vector<8x128xf32> to vector<8x32xf32>
    %210 = vector.extract_strided_slice %207 {offsets = [0, 64], sizes = [8, 32], strides = [1, 1]} : vector<8x128xf32> to vector<8x32xf32>
    %211 = vector.extract_strided_slice %207 {offsets = [0, 96], sizes = [8, 32], strides = [1, 1]} : vector<8x128xf32> to vector<8x32xf32>
    %212 = arith.mulf %209, %176 : vector<8x32xf32>
    %213 = arith.mulf %208, %210 : vector<8x32xf32>
    %214 = arith.addf %212, %213 : vector<8x32xf32>
    %215 = math.tanh %214 : vector<8x32xf32>
    %216 = arith.mulf %211, %215 : vector<8x32xf32>
    %217 = vector.extract_strided_slice %12 {offsets = [40, 0], sizes = [8, 128], strides = [1, 1]} : vector<64x128xf32> to vector<8x128xf32>
    %cst_38 = arith.constant dense<0.000000e+00> : vector<8x128xf32>
    %218 = tpu.matmul %197, %18, %cst_38 {dimension_numbers = #tpu.dot_dimension_numbers<[1], [0], [0], [1], [0, 0, 1, 1], [], []>} : vector<8x32xf32>, vector<32x128xf32>, vector<8x128xf32> -> vector<8x128xf32>
    %219 = arith.addf %217, %218 : vector<8x128xf32>
    %220 = math.tanh %219 : vector<8x128xf32>
    %221 = arith.negf %219 : vector<8x128xf32>
    %222 = math.exp %221 : vector<8x128xf32>
    %cst_39 = arith.constant 1.000000e+00 : f32
    %223 = vector.broadcast %cst_39 : f32 to vector<8x128xf32>
    %224 = arith.addf %223, %222 : vector<8x128xf32>
    %225 = arith.divf %223, %224 : vector<8x128xf32>
    %226 = arith.select %25, %220, %225 : vector<8x128xi1>, vector<8x128xf32>
    %227 = vector.extract_strided_slice %226 {offsets = [0, 0], sizes = [8, 32], strides = [1, 1]} : vector<8x128xf32> to vector<8x32xf32>
    %228 = vector.extract_strided_slice %226 {offsets = [0, 32], sizes = [8, 32], strides = [1, 1]} : vector<8x128xf32> to vector<8x32xf32>
    %229 = vector.extract_strided_slice %226 {offsets = [0, 64], sizes = [8, 32], strides = [1, 1]} : vector<8x128xf32> to vector<8x32xf32>
    %230 = vector.extract_strided_slice %226 {offsets = [0, 96], sizes = [8, 32], strides = [1, 1]} : vector<8x128xf32> to vector<8x32xf32>
    %231 = arith.mulf %228, %195 : vector<8x32xf32>
    %232 = arith.mulf %227, %229 : vector<8x32xf32>
    %233 = arith.addf %231, %232 : vector<8x32xf32>
    %234 = math.tanh %233 : vector<8x32xf32>
    %235 = arith.mulf %230, %234 : vector<8x32xf32>
    %236 = vector.extract_strided_slice %17 {offsets = [16, 0], sizes = [8, 128], strides = [1, 1]} : vector<64x128xf32> to vector<8x128xf32>
    %cst_40 = arith.constant dense<0.000000e+00> : vector<8x128xf32>
    %237 = tpu.matmul %216, %19, %cst_40 {dimension_numbers = #tpu.dot_dimension_numbers<[1], [0], [0], [1], [0, 0, 1, 1], [], []>} : vector<8x32xf32>, vector<32x128xf32>, vector<8x128xf32> -> vector<8x128xf32>
    %238 = arith.addf %236, %237 : vector<8x128xf32>
    %239 = math.tanh %238 : vector<8x128xf32>
    %240 = arith.negf %238 : vector<8x128xf32>
    %241 = math.exp %240 : vector<8x128xf32>
    %cst_41 = arith.constant 1.000000e+00 : f32
    %242 = vector.broadcast %cst_41 : f32 to vector<8x128xf32>
    %243 = arith.addf %242, %241 : vector<8x128xf32>
    %244 = arith.divf %242, %243 : vector<8x128xf32>
    %245 = arith.select %25, %239, %244 : vector<8x128xi1>, vector<8x128xf32>
    %246 = vector.extract_strided_slice %245 {offsets = [0, 0], sizes = [8, 32], strides = [1, 1]} : vector<8x128xf32> to vector<8x32xf32>
    %247 = vector.extract_strided_slice %245 {offsets = [0, 32], sizes = [8, 32], strides = [1, 1]} : vector<8x128xf32> to vector<8x32xf32>
    %248 = vector.extract_strided_slice %245 {offsets = [0, 64], sizes = [8, 32], strides = [1, 1]} : vector<8x128xf32> to vector<8x32xf32>
    %249 = vector.extract_strided_slice %245 {offsets = [0, 96], sizes = [8, 32], strides = [1, 1]} : vector<8x128xf32> to vector<8x32xf32>
    %250 = arith.mulf %247, %214 : vector<8x32xf32>
    %251 = arith.mulf %246, %248 : vector<8x32xf32>
    %252 = arith.addf %250, %251 : vector<8x32xf32>
    %253 = math.tanh %252 : vector<8x32xf32>
    %254 = arith.mulf %249, %253 : vector<8x32xf32>
    %255 = vector.extract_strided_slice %12 {offsets = [48, 0], sizes = [8, 128], strides = [1, 1]} : vector<64x128xf32> to vector<8x128xf32>
    %cst_42 = arith.constant dense<0.000000e+00> : vector<8x128xf32>
    %256 = tpu.matmul %235, %18, %cst_42 {dimension_numbers = #tpu.dot_dimension_numbers<[1], [0], [0], [1], [0, 0, 1, 1], [], []>} : vector<8x32xf32>, vector<32x128xf32>, vector<8x128xf32> -> vector<8x128xf32>
    %257 = arith.addf %255, %256 : vector<8x128xf32>
    %258 = math.tanh %257 : vector<8x128xf32>
    %259 = arith.negf %257 : vector<8x128xf32>
    %260 = math.exp %259 : vector<8x128xf32>
    %cst_43 = arith.constant 1.000000e+00 : f32
    %261 = vector.broadcast %cst_43 : f32 to vector<8x128xf32>
    %262 = arith.addf %261, %260 : vector<8x128xf32>
    %263 = arith.divf %261, %262 : vector<8x128xf32>
    %264 = arith.select %25, %258, %263 : vector<8x128xi1>, vector<8x128xf32>
    %265 = vector.extract_strided_slice %264 {offsets = [0, 0], sizes = [8, 32], strides = [1, 1]} : vector<8x128xf32> to vector<8x32xf32>
    %266 = vector.extract_strided_slice %264 {offsets = [0, 32], sizes = [8, 32], strides = [1, 1]} : vector<8x128xf32> to vector<8x32xf32>
    %267 = vector.extract_strided_slice %264 {offsets = [0, 64], sizes = [8, 32], strides = [1, 1]} : vector<8x128xf32> to vector<8x32xf32>
    %268 = vector.extract_strided_slice %264 {offsets = [0, 96], sizes = [8, 32], strides = [1, 1]} : vector<8x128xf32> to vector<8x32xf32>
    %269 = arith.mulf %266, %233 : vector<8x32xf32>
    %270 = arith.mulf %265, %267 : vector<8x32xf32>
    %271 = arith.addf %269, %270 : vector<8x32xf32>
    %272 = math.tanh %271 : vector<8x32xf32>
    %273 = arith.mulf %268, %272 : vector<8x32xf32>
    %274 = vector.extract_strided_slice %17 {offsets = [8, 0], sizes = [8, 128], strides = [1, 1]} : vector<64x128xf32> to vector<8x128xf32>
    %cst_44 = arith.constant dense<0.000000e+00> : vector<8x128xf32>
    %275 = tpu.matmul %254, %19, %cst_44 {dimension_numbers = #tpu.dot_dimension_numbers<[1], [0], [0], [1], [0, 0, 1, 1], [], []>} : vector<8x32xf32>, vector<32x128xf32>, vector<8x128xf32> -> vector<8x128xf32>
    %276 = arith.addf %274, %275 : vector<8x128xf32>
    %277 = math.tanh %276 : vector<8x128xf32>
    %278 = arith.negf %276 : vector<8x128xf32>
    %279 = math.exp %278 : vector<8x128xf32>
    %cst_45 = arith.constant 1.000000e+00 : f32
    %280 = vector.broadcast %cst_45 : f32 to vector<8x128xf32>
    %281 = arith.addf %280, %279 : vector<8x128xf32>
    %282 = arith.divf %280, %281 : vector<8x128xf32>
    %283 = arith.select %25, %277, %282 : vector<8x128xi1>, vector<8x128xf32>
    %284 = vector.extract_strided_slice %283 {offsets = [0, 0], sizes = [8, 32], strides = [1, 1]} : vector<8x128xf32> to vector<8x32xf32>
    %285 = vector.extract_strided_slice %283 {offsets = [0, 32], sizes = [8, 32], strides = [1, 1]} : vector<8x128xf32> to vector<8x32xf32>
    %286 = vector.extract_strided_slice %283 {offsets = [0, 64], sizes = [8, 32], strides = [1, 1]} : vector<8x128xf32> to vector<8x32xf32>
    %287 = vector.extract_strided_slice %283 {offsets = [0, 96], sizes = [8, 32], strides = [1, 1]} : vector<8x128xf32> to vector<8x32xf32>
    %288 = arith.mulf %285, %252 : vector<8x32xf32>
    %289 = arith.mulf %284, %286 : vector<8x32xf32>
    %290 = arith.addf %288, %289 : vector<8x32xf32>
    %291 = math.tanh %290 : vector<8x32xf32>
    %292 = arith.mulf %287, %291 : vector<8x32xf32>
    %293 = vector.extract_strided_slice %12 {offsets = [56, 0], sizes = [8, 128], strides = [1, 1]} : vector<64x128xf32> to vector<8x128xf32>
    %cst_46 = arith.constant dense<0.000000e+00> : vector<8x128xf32>
    %294 = tpu.matmul %273, %18, %cst_46 {dimension_numbers = #tpu.dot_dimension_numbers<[1], [0], [0], [1], [0, 0, 1, 1], [], []>} : vector<8x32xf32>, vector<32x128xf32>, vector<8x128xf32> -> vector<8x128xf32>
    %295 = arith.addf %293, %294 : vector<8x128xf32>
    %296 = math.tanh %295 : vector<8x128xf32>
    %297 = arith.negf %295 : vector<8x128xf32>
    %298 = math.exp %297 : vector<8x128xf32>
    %cst_47 = arith.constant 1.000000e+00 : f32
    %299 = vector.broadcast %cst_47 : f32 to vector<8x128xf32>
    %300 = arith.addf %299, %298 : vector<8x128xf32>
    %301 = arith.divf %299, %300 : vector<8x128xf32>
    %302 = arith.select %25, %296, %301 : vector<8x128xi1>, vector<8x128xf32>
    %303 = vector.extract_strided_slice %302 {offsets = [0, 0], sizes = [8, 32], strides = [1, 1]} : vector<8x128xf32> to vector<8x32xf32>
    %304 = vector.extract_strided_slice %302 {offsets = [0, 32], sizes = [8, 32], strides = [1, 1]} : vector<8x128xf32> to vector<8x32xf32>
    %305 = vector.extract_strided_slice %302 {offsets = [0, 64], sizes = [8, 32], strides = [1, 1]} : vector<8x128xf32> to vector<8x32xf32>
    %306 = vector.extract_strided_slice %302 {offsets = [0, 96], sizes = [8, 32], strides = [1, 1]} : vector<8x128xf32> to vector<8x32xf32>
    %307 = arith.mulf %304, %271 : vector<8x32xf32>
    %308 = arith.mulf %303, %305 : vector<8x32xf32>
    %309 = arith.addf %307, %308 : vector<8x32xf32>
    %310 = math.tanh %309 : vector<8x32xf32>
    %311 = arith.mulf %306, %310 : vector<8x32xf32>
    %312 = vector.extract_strided_slice %17 {offsets = [0, 0], sizes = [8, 128], strides = [1, 1]} : vector<64x128xf32> to vector<8x128xf32>
    %cst_48 = arith.constant dense<0.000000e+00> : vector<8x128xf32>
    %313 = tpu.matmul %292, %19, %cst_48 {dimension_numbers = #tpu.dot_dimension_numbers<[1], [0], [0], [1], [0, 0, 1, 1], [], []>} : vector<8x32xf32>, vector<32x128xf32>, vector<8x128xf32> -> vector<8x128xf32>
    %314 = arith.addf %312, %313 : vector<8x128xf32>
    %315 = math.tanh %314 : vector<8x128xf32>
    %316 = arith.negf %314 : vector<8x128xf32>
    %317 = math.exp %316 : vector<8x128xf32>
    %cst_49 = arith.constant 1.000000e+00 : f32
    %318 = vector.broadcast %cst_49 : f32 to vector<8x128xf32>
    %319 = arith.addf %318, %317 : vector<8x128xf32>
    %320 = arith.divf %318, %319 : vector<8x128xf32>
    %321 = arith.select %25, %315, %320 : vector<8x128xi1>, vector<8x128xf32>
    %322 = vector.extract_strided_slice %321 {offsets = [0, 0], sizes = [8, 32], strides = [1, 1]} : vector<8x128xf32> to vector<8x32xf32>
    %323 = vector.extract_strided_slice %321 {offsets = [0, 32], sizes = [8, 32], strides = [1, 1]} : vector<8x128xf32> to vector<8x32xf32>
    %324 = vector.extract_strided_slice %321 {offsets = [0, 64], sizes = [8, 32], strides = [1, 1]} : vector<8x128xf32> to vector<8x32xf32>
    %325 = vector.extract_strided_slice %321 {offsets = [0, 96], sizes = [8, 32], strides = [1, 1]} : vector<8x128xf32> to vector<8x32xf32>
    %326 = arith.mulf %323, %290 : vector<8x32xf32>
    %327 = arith.mulf %322, %324 : vector<8x32xf32>
    %328 = arith.addf %326, %327 : vector<8x32xf32>
    %329 = math.tanh %328 : vector<8x32xf32>
    %330 = arith.mulf %325, %329 : vector<8x32xf32>
    %331 = tpu.concatenate %311, %330 in 1 : vector<8x32xf32>, vector<8x32xf32> -> vector<8x64xf32>
    %c0_50 = arith.constant 0 : index
    %c0_51 = arith.constant 0 : index
    %332 = vector.load %arg9[%c0_50, %c0_51] : memref<64x128xf32, #tpu.memory_space<vmem>>, vector<64x128xf32>
    %cst_52 = arith.constant dense<0.000000e+00> : vector<8x128xf32>
    %333 = tpu.matmul %331, %332, %cst_52 {dimension_numbers = #tpu.dot_dimension_numbers<[1], [0], [0], [1], [0, 0, 1, 1], [], []>} : vector<8x64xf32>, vector<64x128xf32>, vector<8x128xf32> -> vector<8x128xf32>
    %c0_53 = arith.constant 0 : index
    %c0_54 = arith.constant 0 : index
    %334 = vector.load %arg10[%c0_53, %c0_54] : memref<1x128xf32, #tpu.memory_space<vmem>>, vector<1x128xf32>
    %335 = vector.broadcast %334 : vector<1x128xf32> to vector<8x128xf32>
    %336 = arith.addf %333, %335 : vector<8x128xf32>
    %c0_55 = arith.constant 0 : index
    %c0_56 = arith.constant 0 : index
    %337 = vector.load %arg17[%c0_55, %c0_56] : memref<8x128xf32, #tpu.memory_space<vmem>>, vector<8x128xf32>
    tpu.vector_store %arg17[%c0_55, %c0_56], %336 {strides = array<i32>} : memref<8x128xf32, #tpu.memory_space<vmem>>, vector<8x128xf32>,
    %338 = vector.extract_strided_slice %336 {offsets = [0, 0], sizes = [8, 8], strides = [1, 1]} : vector<8x128xf32> to vector<8x8xf32>
    %339 = vector.extract_strided_slice %336 {offsets = [0, 8], sizes = [8, 8], strides = [1, 1]} : vector<8x128xf32> to vector<8x8xf32>
    %c0_57 = arith.constant 0 : index
    %c0_58 = arith.constant 0 : index
    %340 = vector.load %arg1[%c0_57, %c0_58] : memref<8x8xf32, #tpu.memory_space<vmem>>, vector<8x8xf32>
    %cst_59 = arith.constant 5.000000e-01 : f32
    %341 = vector.broadcast %cst_59 : f32 to vector<8x8xf32>
    %342 = arith.mulf %341, %339 : vector<8x8xf32>
    %343 = math.exp %342 : vector<8x8xf32>
    %344 = arith.mulf %340, %343 : vector<8x8xf32>
    %345 = arith.addf %338, %344 : vector<8x8xf32>
    %c0_60 = arith.constant 0 : index
    %c0_61 = arith.constant 0 : index
    %346 = vector.load %arg11[%c0_60, %c0_61] : memref<16x128xf32, #tpu.memory_space<vmem>>, vector<16x128xf32>
    %cst_62 = arith.constant dense<0.000000e+00> : vector<64x128xf32>
    %347 = tpu.matmul %7, %346, %cst_62 {dimension_numbers = #tpu.dot_dimension_numbers<[1], [0], [0], [1], [0, 0, 1, 1], [], []>} : vector<64x16xf32>, vector<16x128xf32>, vector<64x128xf32> -> vector<64x128xf32>
    %c0_63 = arith.constant 0 : index
    %c0_64 = arith.constant 0 : index
    %348 = vector.load %arg12[%c0_63, %c0_64] : memref<8x128xf32, #tpu.memory_space<vmem>>, vector<8x128xf32>
    %cst_65 = arith.constant dense<0.000000e+00> : vector<8x128xf32>
    %349 = tpu.matmul %345, %348, %cst_65 {dimension_numbers = #tpu.dot_dimension_numbers<[1], [0], [0], [1], [0, 0, 1, 1], [], []>} : vector<8x8xf32>, vector<8x128xf32>, vector<8x128xf32> -> vector<8x128xf32>
    %c0_66 = arith.constant 0 : index
    %c0_67 = arith.constant 0 : index
    %350 = vector.load %arg14[%c0_66, %c0_67] : memref<1x128xf32, #tpu.memory_space<vmem>>, vector<1x128xf32>
    %351 = vector.broadcast %350 : vector<1x128xf32> to vector<8x128xf32>
    %352 = arith.addf %349, %351 : vector<8x128xf32>
    %c0_68 = arith.constant 0 : index
    %c0_69 = arith.constant 0 : index
    %353 = vector.load %arg13[%c0_68, %c0_69] : memref<32x128xf32, #tpu.memory_space<vmem>>, vector<32x128xf32>
    %354 = vector.extract_strided_slice %347 {offsets = [0, 0], sizes = [8, 128], strides = [1, 1]} : vector<64x128xf32> to vector<8x128xf32>
    %355 = arith.addf %354, %352 : vector<8x128xf32>
    %cst_70 = arith.constant dense<0.000000e+00> : vector<8x128xf32>
    %356 = tpu.matmul %26, %353, %cst_70 {dimension_numbers = #tpu.dot_dimension_numbers<[1], [0], [0], [1], [0, 0, 1, 1], [], []>} : vector<8x32xf32>, vector<32x128xf32>, vector<8x128xf32> -> vector<8x128xf32>
    %357 = arith.addf %355, %356 : vector<8x128xf32>
    %358 = math.tanh %357 : vector<8x128xf32>
    %359 = arith.negf %357 : vector<8x128xf32>
    %360 = math.exp %359 : vector<8x128xf32>
    %cst_71 = arith.constant 1.000000e+00 : f32
    %361 = vector.broadcast %cst_71 : f32 to vector<8x128xf32>
    %362 = arith.addf %361, %360 : vector<8x128xf32>
    %363 = arith.divf %361, %362 : vector<8x128xf32>
    %364 = arith.select %25, %358, %363 : vector<8x128xi1>, vector<8x128xf32>
    %365 = vector.extract_strided_slice %364 {offsets = [0, 0], sizes = [8, 32], strides = [1, 1]} : vector<8x128xf32> to vector<8x32xf32>
    %366 = vector.extract_strided_slice %364 {offsets = [0, 32], sizes = [8, 32], strides = [1, 1]} : vector<8x128xf32> to vector<8x32xf32>
    %367 = vector.extract_strided_slice %364 {offsets = [0, 64], sizes = [8, 32], strides = [1, 1]} : vector<8x128xf32> to vector<8x32xf32>
    %368 = vector.extract_strided_slice %364 {offsets = [0, 96], sizes = [8, 32], strides = [1, 1]} : vector<8x128xf32> to vector<8x32xf32>
    %369 = arith.mulf %366, %26 : vector<8x32xf32>
    %370 = arith.mulf %365, %367 : vector<8x32xf32>
    %371 = arith.addf %369, %370 : vector<8x32xf32>
    %372 = math.tanh %371 : vector<8x32xf32>
    %373 = arith.mulf %368, %372 : vector<8x32xf32>
    %374 = vector.extract_strided_slice %347 {offsets = [8, 0], sizes = [8, 128], strides = [1, 1]} : vector<64x128xf32> to vector<8x128xf32>
    %375 = arith.addf %374, %352 : vector<8x128xf32>
    %cst_72 = arith.constant dense<0.000000e+00> : vector<8x128xf32>
    %376 = tpu.matmul %373, %353, %cst_72 {dimension_numbers = #tpu.dot_dimension_numbers<[1], [0], [0], [1], [0, 0, 1, 1], [], []>} : vector<8x32xf32>, vector<32x128xf32>, vector<8x128xf32> -> vector<8x128xf32>
    %377 = arith.addf %375, %376 : vector<8x128xf32>
    %378 = math.tanh %377 : vector<8x128xf32>
    %379 = arith.negf %377 : vector<8x128xf32>
    %380 = math.exp %379 : vector<8x128xf32>
    %cst_73 = arith.constant 1.000000e+00 : f32
    %381 = vector.broadcast %cst_73 : f32 to vector<8x128xf32>
    %382 = arith.addf %381, %380 : vector<8x128xf32>
    %383 = arith.divf %381, %382 : vector<8x128xf32>
    %384 = arith.select %25, %378, %383 : vector<8x128xi1>, vector<8x128xf32>
    %385 = vector.extract_strided_slice %384 {offsets = [0, 0], sizes = [8, 32], strides = [1, 1]} : vector<8x128xf32> to vector<8x32xf32>
    %386 = vector.extract_strided_slice %384 {offsets = [0, 32], sizes = [8, 32], strides = [1, 1]} : vector<8x128xf32> to vector<8x32xf32>
    %387 = vector.extract_strided_slice %384 {offsets = [0, 64], sizes = [8, 32], strides = [1, 1]} : vector<8x128xf32> to vector<8x32xf32>
    %388 = vector.extract_strided_slice %384 {offsets = [0, 96], sizes = [8, 32], strides = [1, 1]} : vector<8x128xf32> to vector<8x32xf32>
    %389 = arith.mulf %386, %371 : vector<8x32xf32>
    %390 = arith.mulf %385, %387 : vector<8x32xf32>
    %391 = arith.addf %389, %390 : vector<8x32xf32>
    %392 = math.tanh %391 : vector<8x32xf32>
    %393 = arith.mulf %388, %392 : vector<8x32xf32>
    %394 = vector.extract_strided_slice %347 {offsets = [16, 0], sizes = [8, 128], strides = [1, 1]} : vector<64x128xf32> to vector<8x128xf32>
    %395 = arith.addf %394, %352 : vector<8x128xf32>
    %cst_74 = arith.constant dense<0.000000e+00> : vector<8x128xf32>
    %396 = tpu.matmul %393, %353, %cst_74 {dimension_numbers = #tpu.dot_dimension_numbers<[1], [0], [0], [1], [0, 0, 1, 1], [], []>} : vector<8x32xf32>, vector<32x128xf32>, vector<8x128xf32> -> vector<8x128xf32>
    %397 = arith.addf %395, %396 : vector<8x128xf32>
    %398 = math.tanh %397 : vector<8x128xf32>
    %399 = arith.negf %397 : vector<8x128xf32>
    %400 = math.exp %399 : vector<8x128xf32>
    %cst_75 = arith.constant 1.000000e+00 : f32
    %401 = vector.broadcast %cst_75 : f32 to vector<8x128xf32>
    %402 = arith.addf %401, %400 : vector<8x128xf32>
    %403 = arith.divf %401, %402 : vector<8x128xf32>
    %404 = arith.select %25, %398, %403 : vector<8x128xi1>, vector<8x128xf32>
    %405 = vector.extract_strided_slice %404 {offsets = [0, 0], sizes = [8, 32], strides = [1, 1]} : vector<8x128xf32> to vector<8x32xf32>
    %406 = vector.extract_strided_slice %404 {offsets = [0, 32], sizes = [8, 32], strides = [1, 1]} : vector<8x128xf32> to vector<8x32xf32>
    %407 = vector.extract_strided_slice %404 {offsets = [0, 64], sizes = [8, 32], strides = [1, 1]} : vector<8x128xf32> to vector<8x32xf32>
    %408 = vector.extract_strided_slice %404 {offsets = [0, 96], sizes = [8, 32], strides = [1, 1]} : vector<8x128xf32> to vector<8x32xf32>
    %409 = arith.mulf %406, %391 : vector<8x32xf32>
    %410 = arith.mulf %405, %407 : vector<8x32xf32>
    %411 = arith.addf %409, %410 : vector<8x32xf32>
    %412 = math.tanh %411 : vector<8x32xf32>
    %413 = arith.mulf %408, %412 : vector<8x32xf32>
    %414 = vector.extract_strided_slice %347 {offsets = [24, 0], sizes = [8, 128], strides = [1, 1]} : vector<64x128xf32> to vector<8x128xf32>
    %415 = arith.addf %414, %352 : vector<8x128xf32>
    %cst_76 = arith.constant dense<0.000000e+00> : vector<8x128xf32>
    %416 = tpu.matmul %413, %353, %cst_76 {dimension_numbers = #tpu.dot_dimension_numbers<[1], [0], [0], [1], [0, 0, 1, 1], [], []>} : vector<8x32xf32>, vector<32x128xf32>, vector<8x128xf32> -> vector<8x128xf32>
    %417 = arith.addf %415, %416 : vector<8x128xf32>
    %418 = math.tanh %417 : vector<8x128xf32>
    %419 = arith.negf %417 : vector<8x128xf32>
    %420 = math.exp %419 : vector<8x128xf32>
    %cst_77 = arith.constant 1.000000e+00 : f32
    %421 = vector.broadcast %cst_77 : f32 to vector<8x128xf32>
    %422 = arith.addf %421, %420 : vector<8x128xf32>
    %423 = arith.divf %421, %422 : vector<8x128xf32>
    %424 = arith.select %25, %418, %423 : vector<8x128xi1>, vector<8x128xf32>
    %425 = vector.extract_strided_slice %424 {offsets = [0, 0], sizes = [8, 32], strides = [1, 1]} : vector<8x128xf32> to vector<8x32xf32>
    %426 = vector.extract_strided_slice %424 {offsets = [0, 32], sizes = [8, 32], strides = [1, 1]} : vector<8x128xf32> to vector<8x32xf32>
    %427 = vector.extract_strided_slice %424 {offsets = [0, 64], sizes = [8, 32], strides = [1, 1]} : vector<8x128xf32> to vector<8x32xf32>
    %428 = vector.extract_strided_slice %424 {offsets = [0, 96], sizes = [8, 32], strides = [1, 1]} : vector<8x128xf32> to vector<8x32xf32>
    %429 = arith.mulf %426, %411 : vector<8x32xf32>
    %430 = arith.mulf %425, %427 : vector<8x32xf32>
    %431 = arith.addf %429, %430 : vector<8x32xf32>
    %432 = math.tanh %431 : vector<8x32xf32>
    %433 = arith.mulf %428, %432 : vector<8x32xf32>
    %434 = vector.extract_strided_slice %347 {offsets = [32, 0], sizes = [8, 128], strides = [1, 1]} : vector<64x128xf32> to vector<8x128xf32>
    %435 = arith.addf %434, %352 : vector<8x128xf32>
    %cst_78 = arith.constant dense<0.000000e+00> : vector<8x128xf32>
    %436 = tpu.matmul %433, %353, %cst_78 {dimension_numbers = #tpu.dot_dimension_numbers<[1], [0], [0], [1], [0, 0, 1, 1], [], []>} : vector<8x32xf32>, vector<32x128xf32>, vector<8x128xf32> -> vector<8x128xf32>
    %437 = arith.addf %435, %436 : vector<8x128xf32>
    %438 = math.tanh %437 : vector<8x128xf32>
    %439 = arith.negf %437 : vector<8x128xf32>
    %440 = math.exp %439 : vector<8x128xf32>
    %cst_79 = arith.constant 1.000000e+00 : f32
    %441 = vector.broadcast %cst_79 : f32 to vector<8x128xf32>
    %442 = arith.addf %441, %440 : vector<8x128xf32>
    %443 = arith.divf %441, %442 : vector<8x128xf32>
    %444 = arith.select %25, %438, %443 : vector<8x128xi1>, vector<8x128xf32>
    %445 = vector.extract_strided_slice %444 {offsets = [0, 0], sizes = [8, 32], strides = [1, 1]} : vector<8x128xf32> to vector<8x32xf32>
    %446 = vector.extract_strided_slice %444 {offsets = [0, 32], sizes = [8, 32], strides = [1, 1]} : vector<8x128xf32> to vector<8x32xf32>
    %447 = vector.extract_strided_slice %444 {offsets = [0, 64], sizes = [8, 32], strides = [1, 1]} : vector<8x128xf32> to vector<8x32xf32>
    %448 = vector.extract_strided_slice %444 {offsets = [0, 96], sizes = [8, 32], strides = [1, 1]} : vector<8x128xf32> to vector<8x32xf32>
    %449 = arith.mulf %446, %431 : vector<8x32xf32>
    %450 = arith.mulf %445, %447 : vector<8x32xf32>
    %451 = arith.addf %449, %450 : vector<8x32xf32>
    %452 = math.tanh %451 : vector<8x32xf32>
    %453 = arith.mulf %448, %452 : vector<8x32xf32>
    %454 = vector.extract_strided_slice %347 {offsets = [40, 0], sizes = [8, 128], strides = [1, 1]} : vector<64x128xf32> to vector<8x128xf32>
    %455 = arith.addf %454, %352 : vector<8x128xf32>
    %cst_80 = arith.constant dense<0.000000e+00> : vector<8x128xf32>
    %456 = tpu.matmul %453, %353, %cst_80 {dimension_numbers = #tpu.dot_dimension_numbers<[1], [0], [0], [1], [0, 0, 1, 1], [], []>} : vector<8x32xf32>, vector<32x128xf32>, vector<8x128xf32> -> vector<8x128xf32>
    %457 = arith.addf %455, %456 : vector<8x128xf32>
    %458 = math.tanh %457 : vector<8x128xf32>
    %459 = arith.negf %457 : vector<8x128xf32>
    %460 = math.exp %459 : vector<8x128xf32>
    %cst_81 = arith.constant 1.000000e+00 : f32
    %461 = vector.broadcast %cst_81 : f32 to vector<8x128xf32>
    %462 = arith.addf %461, %460 : vector<8x128xf32>
    %463 = arith.divf %461, %462 : vector<8x128xf32>
    %464 = arith.select %25, %458, %463 : vector<8x128xi1>, vector<8x128xf32>
    %465 = vector.extract_strided_slice %464 {offsets = [0, 0], sizes = [8, 32], strides = [1, 1]} : vector<8x128xf32> to vector<8x32xf32>
    %466 = vector.extract_strided_slice %464 {offsets = [0, 32], sizes = [8, 32], strides = [1, 1]} : vector<8x128xf32> to vector<8x32xf32>
    %467 = vector.extract_strided_slice %464 {offsets = [0, 64], sizes = [8, 32], strides = [1, 1]} : vector<8x128xf32> to vector<8x32xf32>
    %468 = vector.extract_strided_slice %464 {offsets = [0, 96], sizes = [8, 32], strides = [1, 1]} : vector<8x128xf32> to vector<8x32xf32>
    %469 = arith.mulf %466, %451 : vector<8x32xf32>
    %470 = arith.mulf %465, %467 : vector<8x32xf32>
    %471 = arith.addf %469, %470 : vector<8x32xf32>
    %472 = math.tanh %471 : vector<8x32xf32>
    %473 = arith.mulf %468, %472 : vector<8x32xf32>
    %474 = vector.extract_strided_slice %347 {offsets = [48, 0], sizes = [8, 128], strides = [1, 1]} : vector<64x128xf32> to vector<8x128xf32>
    %475 = arith.addf %474, %352 : vector<8x128xf32>
    %cst_82 = arith.constant dense<0.000000e+00> : vector<8x128xf32>
    %476 = tpu.matmul %473, %353, %cst_82 {dimension_numbers = #tpu.dot_dimension_numbers<[1], [0], [0], [1], [0, 0, 1, 1], [], []>} : vector<8x32xf32>, vector<32x128xf32>, vector<8x128xf32> -> vector<8x128xf32>
    %477 = arith.addf %475, %476 : vector<8x128xf32>
    %478 = math.tanh %477 : vector<8x128xf32>
    %479 = arith.negf %477 : vector<8x128xf32>
    %480 = math.exp %479 : vector<8x128xf32>
    %cst_83 = arith.constant 1.000000e+00 : f32
    %481 = vector.broadcast %cst_83 : f32 to vector<8x128xf32>
    %482 = arith.addf %481, %480 : vector<8x128xf32>
    %483 = arith.divf %481, %482 : vector<8x128xf32>
    %484 = arith.select %25, %478, %483 : vector<8x128xi1>, vector<8x128xf32>
    %485 = vector.extract_strided_slice %484 {offsets = [0, 0], sizes = [8, 32], strides = [1, 1]} : vector<8x128xf32> to vector<8x32xf32>
    %486 = vector.extract_strided_slice %484 {offsets = [0, 32], sizes = [8, 32], strides = [1, 1]} : vector<8x128xf32> to vector<8x32xf32>
    %487 = vector.extract_strided_slice %484 {offsets = [0, 64], sizes = [8, 32], strides = [1, 1]} : vector<8x128xf32> to vector<8x32xf32>
    %488 = vector.extract_strided_slice %484 {offsets = [0, 96], sizes = [8, 32], strides = [1, 1]} : vector<8x128xf32> to vector<8x32xf32>
    %489 = arith.mulf %486, %471 : vector<8x32xf32>
    %490 = arith.mulf %485, %487 : vector<8x32xf32>
    %491 = arith.addf %489, %490 : vector<8x32xf32>
    %492 = math.tanh %491 : vector<8x32xf32>
    %493 = arith.mulf %488, %492 : vector<8x32xf32>
    %494 = vector.extract_strided_slice %347 {offsets = [56, 0], sizes = [8, 128], strides = [1, 1]} : vector<64x128xf32> to vector<8x128xf32>
    %495 = arith.addf %494, %352 : vector<8x128xf32>
    %cst_84 = arith.constant dense<0.000000e+00> : vector<8x128xf32>
    %496 = tpu.matmul %493, %353, %cst_84 {dimension_numbers = #tpu.dot_dimension_numbers<[1], [0], [0], [1], [0, 0, 1, 1], [], []>} : vector<8x32xf32>, vector<32x128xf32>, vector<8x128xf32> -> vector<8x128xf32>
    %497 = arith.addf %495, %496 : vector<8x128xf32>
    %498 = math.tanh %497 : vector<8x128xf32>
    %499 = arith.negf %497 : vector<8x128xf32>
    %500 = math.exp %499 : vector<8x128xf32>
    %cst_85 = arith.constant 1.000000e+00 : f32
    %501 = vector.broadcast %cst_85 : f32 to vector<8x128xf32>
    %502 = arith.addf %501, %500 : vector<8x128xf32>
    %503 = arith.divf %501, %502 : vector<8x128xf32>
    %504 = arith.select %25, %498, %503 : vector<8x128xi1>, vector<8x128xf32>
    %505 = vector.extract_strided_slice %504 {offsets = [0, 0], sizes = [8, 32], strides = [1, 1]} : vector<8x128xf32> to vector<8x32xf32>
    %506 = vector.extract_strided_slice %504 {offsets = [0, 32], sizes = [8, 32], strides = [1, 1]} : vector<8x128xf32> to vector<8x32xf32>
    %507 = vector.extract_strided_slice %504 {offsets = [0, 64], sizes = [8, 32], strides = [1, 1]} : vector<8x128xf32> to vector<8x32xf32>
    %508 = vector.extract_strided_slice %504 {offsets = [0, 96], sizes = [8, 32], strides = [1, 1]} : vector<8x128xf32> to vector<8x32xf32>
    %509 = arith.mulf %506, %491 : vector<8x32xf32>
    %510 = arith.mulf %505, %507 : vector<8x32xf32>
    %511 = arith.addf %509, %510 : vector<8x32xf32>
    %512 = math.tanh %511 : vector<8x32xf32>
    %513 = arith.mulf %508, %512 : vector<8x32xf32>
    %514 = tpu.concatenate %373, %393, %413, %433, %453, %473, %493, %513 in 0 : vector<8x32xf32>, vector<8x32xf32>, vector<8x32xf32>, vector<8x32xf32>, vector<8x32xf32>, vector<8x32xf32>, vector<8x32xf32>, vector<8x32xf32> -> vector<64x32xf32>
    %c0_86 = arith.constant 0 : index
    %c0_87 = arith.constant 0 : index
    %515 = vector.load %arg15[%c0_86, %c0_87] : memref<32x128xf32, #tpu.memory_space<vmem>>, vector<32x128xf32>
    %cst_88 = arith.constant dense<0.000000e+00> : vector<64x128xf32>
    %516 = tpu.matmul %514, %515, %cst_88 {dimension_numbers = #tpu.dot_dimension_numbers<[1], [0], [0], [1], [0, 0, 1, 1], [], []>} : vector<64x32xf32>, vector<32x128xf32>, vector<64x128xf32> -> vector<64x128xf32>
    %c0_89 = arith.constant 0 : index
    %c0_90 = arith.constant 0 : index
    %517 = vector.load %arg16[%c0_89, %c0_90] : memref<1x128xf32, #tpu.memory_space<vmem>>, vector<1x128xf32>
    %518 = vector.broadcast %517 : vector<1x128xf32> to vector<64x128xf32>
    %519 = arith.addf %516, %518 : vector<64x128xf32>
    %cst_91 = arith.constant dense<0xFF800000> : vector<64xf32>
    %520 = vector.multi_reduction <maximumf>, %519, %cst_91 [1] : vector<64x128xf32> to vector<64xf32>
    %521 = vector.shape_cast %520 : vector<64xf32> to vector<64x1xf32>
    %522 = vector.broadcast %521 : vector<64x1xf32> to vector<64x128xf32>
    %523 = arith.subf %519, %522 : vector<64x128xf32>
    %524 = math.exp %523 : vector<64x128xf32>
    %cst_92 = arith.constant dense<0.000000e+00> : vector<64xf32>
    %525 = vector.multi_reduction <add>, %524, %cst_92 [1] : vector<64x128xf32> to vector<64xf32>
    %526 = vector.shape_cast %525 : vector<64xf32> to vector<64x1xf32>
    %527 = math.log %526 : vector<64x1xf32>
    %528 = arith.addf %521, %527 : vector<64x1xf32>
    %529 = vector.broadcast %528 : vector<64x1xf32> to vector<64x128xf32>
    %530 = arith.subf %519, %529 : vector<64x128xf32>
    %c0_93 = arith.constant 0 : index
    %c0_94 = arith.constant 0 : index
    %531 = vector.load %arg18[%c0_93, %c0_94] : memref<64x128xf32, #tpu.memory_space<vmem>>, vector<64x128xf32>
    tpu.vector_store %arg18[%c0_93, %c0_94], %530 {strides = array<i32>} : memref<64x128xf32, #tpu.memory_space<vmem>>, vector<64x128xf32>,
    return
  }
}

</mosaic_0001>

<bundles_post_ra>
// kernel: vae_lstm_forward.1
= control target key start
LH: loop header
LB: loop body
LE: loop exit
PB: predicated region body
PF: predicated region fallthrough
CT: control target
= control target key end

     0   :  { %v2479_v0 = vmov 0   ;;  %v66_v13 = vlaneseq  ;;  %vm120_vm0 = vcmask 261120   ;;  %v2480_v16 = vmov 0.0   ;;  %s2482_s21 = smov 32   ;;  %s2483_s30 = smov 120   ;;  %s3331_s0 = inlined_call_operand.vmem [shape: s32[64,1], index: 0, kind: input, shape index: {}]   ;;  %s3332_s2 = inlined_call_operand.vmem [shape: f32[32,16], index: 2, kind: input, shape index: {}]   ;;  %s3333_s4 = inlined_call_operand.vmem [shape: f32[32,128], index: 4, kind: input, shape index: {}]   ;;  %s3334_s3 = inlined_call_operand.vmem [shape: f32[16,128], index: 3, kind: input, shape index: {}]   ;;  %s3335_s5 = inlined_call_operand.vmem [shape: f32[1,128], index: 5, kind: input, shape index: {}]   ;;  %s3336_s6 = inlined_call_operand.vmem [shape: f32[16,128], index: 6, kind: input, shape index: {}]   ;;  %s3337_s8 = inlined_call_operand.vmem [shape: f32[1,128], index: 8, kind: input, shape index: {}]   ;;  %s3338_s7 = inlined_call_operand.vmem [shape: f32[32,128], index: 7, kind: input, shape index: {}]   ;;  %s3339_s11 = inlined_call_operand.vmem [shape: f32[16,128], index: 11, kind: input, shape index: {}]   ;;  %s3340_s10 = inlined_call_operand.vmem [shape: f32[1,128], index: 10, kind: input, shape index: {}]   ;;  %s3341_s9 = inlined_call_operand.vmem [shape: f32[64,128], index: 9, kind: input, shape index: {}]   ;;  %s3342_s13 = inlined_call_operand.vmem [shape: f32[32,128], index: 13, kind: input, shape index: {}]   ;;  %s3343_s12 = inlined_call_operand.vmem [shape: f32[8,128], index: 12, kind: input, shape index: {}]   ;;  %s3344_s17 = inlined_call_operand.vmem [shape: f32[8,128], index: 17, kind: output, shape index: {0}]   ;;  %s3345_s14 = inlined_call_operand.vmem [shape: f32[1,128], index: 14, kind: input, shape index: {}]   ;;  %s3346_s1 = inlined_call_operand.vmem [shape: f32[8,8], index: 1, kind: input, shape index: {}]   ;;  %s3347_s15 = inlined_call_operand.vmem [shape: f32[32,128], index: 15, kind: input, shape index: {}]   ;;  %s3348_s16 = inlined_call_operand.vmem [shape: f32[1,128], index: 16, kind: input, shape index: {}]   ;;  %s3349_s18 = inlined_call_operand.vmem [shape: f32[64,128], index: 18, kind: output, shape index: {1}]  }
   0x1   :  { %3353 = sst [smem:[#allocation2_spill]] %s3331_s0  ;;  %2245 = vset.pattern.permute.xlu1 %v2479_v0  ;;  %2244 = vset.pattern.permute.xlu0 %v2479_v0  ;;  %v187_v27 = vld [vmem:[%s3334_s3 + $0x8] sm:$0xff]  ;;  %v186_v37 = vld [vmem:[%s3334_s3] sm:$0xff]  ;;  %vm192_vm9 = vcmask 130048   ;;  %v2709_v43 = vld [vmem:[%s3338_s7 + $0x18] sm:$0xff] }
   0x2   :  { %3354 = sst [smem:[#allocation3_spill]] %s3332_s2  ;;  %2246 = vset.pattern.permute.xlu2 %v2479_v0  ;;  %v2615_v14 = vand.u32 127, %v66_v13  ;;  %231 = vmatpush.msra.mxu1 %v187_v27  ;;  %v259_v38 = vld [vmem:[%s3336_s6 + $0x8] sm:$0xff]  ;;  %v258_v39 = vld [vmem:[%s3336_s6] sm:$0xff]  ;;  %v2714_v44 = vld [vmem:[%s3338_s7 + $0x10] sm:$0xff] }
   0x3   :  { %3355 = sst [smem:[#allocation4_spill]] %s3333_s4  ;;  %2233 = vmatpush.msra.mxu2 %v259_v38  ;;  %v2721_v45 = vld [vmem:[%s3338_s7 + $0x8] sm:$0xff]  ;;  %v2736_v47 = vld [vmem:[%s3338_s7] sm:$0xff] }
   0x4   :  { %s3356_s29 = sld [smem:[#allocation2_spill]]  ;;  %232 = vmatpush.msra.mxu1 %v186_v37  ;;  %v2786_v52 = vld [vmem:[%s3335_s5] ss:$0 sm:$0xff]  ;;  %vm313_vm10 = vcmp.ge.s32.totalorder %v2615_v14, 64  ;;  %vm314_vm11 = vcmp.lt.s32.totalorder %v2615_v14, 96  ;;  %s2481_s5 = smov 64  }
   0x5   :  { %s3357_s22 = sld [smem:[#allocation3_spill]]  ;;  %2234 = vmatpush.msra.mxu2 %v258_v39  ;;  %v2248_v59 = vld [vmem:[%s3337_s8] ss:$0 sm:$0xff]  ;;  %vm2804_vm13 = vmand %vm313_vm10, %vm314_vm11 }
   0x6   :  { %s3358_s25 = sld [smem:[#allocation4_spill]]  ;;  %278 = vmatpush.msrb.mxu1 %v259_v38 }
   0x7   :  { %902 = vmatpush.msrb.mxu2 %v2709_v43 }
   0x8   :  { %279 = vmatpush.msrb.mxu1 %v258_v39 }
   0x9   :  { %903 = vmatpush.msrb.mxu2 %v2714_v44 }
   0xa   :  { %v60_v1 = vld [vmem:[%s3356_s29 + $0x10] sm:$0xff]  ;;  %v58_v2 = vld [vmem:[%s3356_s29] sm:$0xff]  ;;  %v61_v7 = vld [vmem:[%s3356_s29 + $0x18] sm:$0xff] }
   0xb   :  { %75 = vperm.xlu1 %2245, %v60_v1   ;;  %69 = vperm.xlu0 %2244, %v58_v2   ;;  %v62_v3 = vld [vmem:[%s3356_s29 + $0x20] sm:$0xff]  ;;  %v119_v4 = vld [vmem:[%s3357_s22 + $0x18] sm:$0xff]  ;;  %v118_v5 = vld [vmem:[%s3357_s22 + $0x10] sm:$0xff] }
   0xc   :  { %81 = vperm.xlu2 %2246, %v62_v3   ;;  %157 = vmatpush.msra.mxu0 %v119_v4  ;;  %v117_v6 = vld [vmem:[%s3357_s22 + $0x8] sm:$0xff]  ;;  %v65_v10 = vld [vmem:[%s3356_s29 + $0x38] sm:$0xff]  ;;  %v64_v11 = vld [vmem:[%s3356_s29 + $0x30] sm:$0xff] }
   0xd   :  { %v59_v8 = vld [vmem:[%s3356_s29 + $0x8] sm:$0xff]  ;;  %v116_v12 = vld [vmem:[%s3357_s22] sm:$0xff]  ;;  %v2632_v25 = vld [vmem:[%s3358_s25 + $0x18] sm:$0xff]  ;;  %904 = vmatpush.msrb.mxu2 %v2721_v45 }
   0xe   :  { %158 = vmatpush.msra.mxu0 %v118_v5  ;;  %v63_v9 = vld [vmem:[%s3356_s29 + $0x28] sm:$0xff]  ;;  %v2637_v26 = vld [vmem:[%s3358_s25 + $0x10] sm:$0xff]  ;;  %331 = vmatpush.msra.mxu3 %v2632_v25  ;;  %v2655_v29 = vld [vmem:[%s3358_s25] sm:$0xff] }
   0xf   :  { %v2648_v28 = vld [vmem:[%s3358_s25 + $0x8] sm:$0xff]  ;;  %905 = vmatpush.msrb.mxu2 %v2736_v47 }
  0x10   :  { %159 = vmatpush.msra.mxu0 %v117_v6  ;;  %332 = vmatpush.msra.mxu3 %v2637_v26 }
  0x12   :  { %160 = vmatpush.msra.mxu0 %v116_v12  ;;  %333 = vmatpush.msra.mxu3 %v2648_v28 }
  0x13   :  { %78 = vperm.xlu1 %2245, %v61_v7   ;;  %72 = vperm.xlu0 %2244, %v59_v8  }
  0x14   :  { %84 = vperm.xlu2 %2246, %v63_v9   ;;  %966 = vmatpush.msrb.mxu0 %v2632_v25 }
  0x15   :  { %334 = vmatpush.msra.mxu3 %v2655_v29 }
  0x16   :  { %967 = vmatpush.msrb.mxu0 %v2637_v26  ;;  %335 = vmatmul.f32.vlgmr.msra.gmra.mxu3 %v2480_v16 }
  0x17   :  { %390 = vmatpush.msrb.mxu3 %v2709_v43 }
  0x18   :  { %968 = vmatpush.msrb.mxu0 %v2648_v28 }
  0x19   :  { %391 = vmatpush.msrb.mxu3 %v2714_v44 }
  0x1a   :  { %969 = vmatpush.msrb.mxu0 %v2655_v29 }
  0x1b   :  { %90 = vperm.xlu1 %2245, %v65_v10   ;;  %87 = vperm.xlu0 %2244, %v64_v11  }
  0x1c   :  { %392 = vmatpush.msrb.mxu3 %v2721_v45 }
  0x1e   :  { %393 = vmatpush.msrb.mxu3 %v2736_v47 }
  0x1f   :  { %394 = vmatmul.f32.vlgmr.msrb.gmra.mxu3 %v2480_v16 }
  0x20   :  { %454 = vmatpush.msra.mxu3 %v2632_v25 }
  0x22   :  { %455 = vmatpush.msra.mxu3 %v2637_v26 }
  0x24   :  { %456 = vmatpush.msra.mxu3 %v2648_v28 }
  0x26   :  { %457 = vmatpush.msra.mxu3 %v2655_v29 }
  0x28   :  { %518 = vmatpush.msrb.mxu3 %v2709_v43 }
  0x2a   :  { %519 = vmatpush.msrb.mxu3 %v2714_v44 }
  0x2c   :  { %520 = vmatpush.msrb.mxu3 %v2721_v45 }
  0x2e   :  { %521 = vmatpush.msrb.mxu3 %v2736_v47 }
  0x66   :  { %v82_v24 = vpop.permute.xlu2 %81 }
  0x67   :  { %vm96_vm5 = vcmp.eq.s32.totalorder %v82_v24, %v2615_v14 }
  0x68   :  { %v2142_v30 = vsel %vm96_vm5, 1.0, %v2480_v16 }
  0x6e   :  { %v85_v31 = vpop.permute.xlu2 %84 }
  0x6f   :  { %vm97_vm6 = vcmp.eq.s32.totalorder %v85_v31, %v2615_v14 }
  0x70   :  { %v2143_v32 = vsel %vm97_vm6, 1.0, %v2480_v16 }
  0x7d   :  { %v70_v15 = vpop.permute.xlu0 %69  ;;  %v76_v20 = vpop.permute.xlu1 %75 }
  0x7e   :  { %vm92_vm1 = vcmp.eq.s32.totalorder %v70_v15, %v2615_v14  ;;  %vm94_vm3 = vcmp.eq.s32.totalorder %v76_v20, %v2615_v14 }
  0x7f   :  { %v2138_v17 = vsel %vm92_vm1, 1.0, %v2480_v16  ;;  %v2140_v21 = vsel %vm94_vm3, 1.0, %v2480_v16 }
  0x80   :  { %2146 = vmatmul.msk.f32.vlgmr.msra.gmra.mxu0 %vm120_vm0, %v2138_v17 }
  0x81   :  { %1222 = vmatpush.msra.mxu0 %v2632_v25 }
  0x83   :  { %1223 = vmatpush.msra.mxu0 %v2637_v26 }
  0x85   :  { %v73_v18 = vpop.permute.xlu0 %72  ;;  %v79_v22 = vpop.permute.xlu1 %78  ;;  %1224 = vmatpush.msra.mxu0 %v2648_v28 }
  0x86   :  { %vm93_vm2 = vcmp.eq.s32.totalorder %v73_v18, %v2615_v14  ;;  %vm95_vm4 = vcmp.eq.s32.totalorder %v79_v22, %v2615_v14 }
  0x87   :  { %v2139_v19 = vsel %vm93_vm2, 1.0, %v2480_v16  ;;  %v2141_v23 = vsel %vm95_vm4, 1.0, %v2480_v16  ;;  %1225 = vmatpush.msra.mxu0 %v2655_v29 }
  0x88   :  { %2147 = vmatmul.msk.f32.gmra.mxu0 %vm120_vm0, %v2139_v19 }
  0x8d   :  { %v88_v33 = vpop.permute.xlu0 %87  ;;  %v91_v35 = vpop.permute.xlu1 %90 }
  0x8e   :  { %vm98_vm7 = vcmp.eq.s32.totalorder %v88_v33, %v2615_v14  ;;  %vm99_vm8 = vcmp.eq.s32.totalorder %v91_v35, %v2615_v14 }
  0x8f   :  { %v2144_v34 = vsel %vm98_vm7, 1.0, %v2480_v16  ;;  %v2145_v36 = vsel %vm99_vm8, 1.0, %v2480_v16 }
  0x90   :  { %2148 = vmatmul.msk.f32.gmra.mxu0 %vm120_vm0, %v2140_v21 }
  0x98   :  { %2149 = vmatmul.msk.f32.gmra.mxu0 %vm120_vm0, %v2141_v23 }
  0x99   :  { %v336_v54 = vpop.f32.mrf.mxu3 }
  0xa0   :  { %2150 = vmatmul.msk.f32.gmra.mxu0 %vm120_vm0, %v2142_v30 }
  0xa2   :  { %v395_v38 = vpop.f32.mrf.mxu3 }
  0xa8   :  { %2151 = vmatmul.msk.f32.gmra.mxu0 %vm120_vm0, %v2143_v32 }
  0xb0   :  { %2152 = vmatmul.msk.f32.gmra.mxu0 %vm120_vm0, %v2144_v34 }
  0xb8   :  { %2153 = vmatmul.msk.f32.gmra.mxu0 %vm120_vm0, %v2145_v36 }
  0xfd   :  { %v2686_v40 = vpop.f32.mrf.mxu0 }
  0xfe   :  { %2154 = vmatmul.msk.f32.vlgmr.msra.gmra.mxu1 %vm192_vm9, %v2686_v40 }
  0xff   :  { %838 = vmatpush.msra.mxu1 %v2632_v25 }
 0x101   :  { %839 = vmatpush.msra.mxu1 %v2637_v26 }
 0x103   :  { %840 = vmatpush.msra.mxu1 %v2648_v28 }
 0x105   :  { %v2693_v41 = vpop.f32.mrf.mxu0  ;;  %841 = vmatpush.msra.mxu1 %v2655_v29 }
 0x106   :  { %2155 = vmatmul.msk.f32.gmra.mxu1 %vm192_vm9, %v2693_v41  ;;  %2163 = vmatmul.msk.f32.vlgmr.msra.gmra.mxu2 %vm192_vm9, %v2693_v41 }
 0x107   :  { %1158 = vmatpush.msra.mxu2 %v2709_v43 }
 0x109   :  { %1159 = vmatpush.msra.mxu2 %v2714_v44 }
 0x10b   :  { %1160 = vmatpush.msra.mxu2 %v2721_v45 }
 0x10d   :  { %v2700_v42 = vpop.f32.mrf.mxu0  ;;  %1161 = vmatpush.msra.mxu2 %v2736_v47 }
 0x10e   :  { %2156 = vmatmul.msk.f32.gmra.mxu1 %vm192_vm9, %v2700_v42  ;;  %2164 = vmatmul.msk.f32.gmra.mxu2 %vm192_vm9, %v2700_v42 }
 0x115   :  { %v2727_v46 = vpop.f32.mrf.mxu0 }
 0x116   :  { %2157 = vmatmul.msk.f32.gmra.mxu1 %vm192_vm9, %v2727_v46  ;;  %2165 = vmatmul.msk.f32.gmra.mxu2 %vm192_vm9, %v2727_v46 }
 0x11d   :  { %v2746_v48 = vpop.f32.mrf.mxu0 }
 0x11e   :  { %2158 = vmatmul.msk.f32.gmra.mxu1 %vm192_vm9, %v2746_v48  ;;  %2166 = vmatmul.msk.f32.gmra.mxu2 %vm192_vm9, %v2746_v48 }
 0x125   :  { %v2758_v49 = vpop.f32.mrf.mxu0 }
 0x126   :  { %2159 = vmatmul.msk.f32.gmra.mxu1 %vm192_vm9, %v2758_v49  ;;  %2167 = vmatmul.msk.f32.gmra.mxu2 %vm192_vm9, %v2758_v49 }
 0x12d   :  { %v2765_v50 = vpop.f32.mrf.mxu0 }
 0x12e   :  { %2160 = vmatmul.msk.f32.gmra.mxu1 %vm192_vm9, %v2765_v50  ;;  %2168 = vmatmul.msk.f32.gmra.mxu2 %vm192_vm9, %v2765_v50 }
 0x135   :  { %v2771_v51 = vpop.f32.mrf.mxu0 }
 0x136   :  { %2161 = vmatmul.msk.f32.gmra.mxu1 %vm192_vm9, %v2771_v51  ;;  %2169 = vmatmul.msk.f32.gmra.mxu2 %vm192_vm9, %v2771_v51 }
 0x13e   :  { %2162 = vmatmul.msk.f32.vlgmr.msrb.gmra.mxu1 %vm192_vm9, %v2686_v40 }
 0x13f   :  { %1094 = vmatpush.msrb.mxu1 %v2632_v25 }
 0x141   :  { %1095 = vmatpush.msrb.mxu1 %v2637_v26 }
 0x143   :  { %1096 = vmatpush.msrb.mxu1 %v2648_v28 }
 0x145   :  { %1097 = vmatpush.msrb.mxu1 %v2655_v29 }
 0x17b   :  { %v234_v53 = vpop.f32.mrf.mxu1 }
 0x17c   :  { %v235_v55 = vadd.f32 %v2786_v52, %v234_v53 }
 0x17e   :  { %v339_v56 = vadd.f32 %v336_v54, %v235_v55 }
 0x180   :  { %v2170_v57 = vmul.f32 -1.442695, %v339_v56 }
 0x182   :  { %2252 = vpow2.f32 %v2170_v57 }
 0x183   :  { %v2789_v58 = vpop.f32.mrf.mxu1 }
 0x188   :  { %v2253_v60 = vpop.eup %2252 }
 0x189   :  { %v344_v61 = vadd.f32 1.0, %v2253_v60  ;;  %v284_v62 = vpop.f32.mrf.mxu2 }
 0x18a   :  { %v2794_v63 = vadd.f32 %v2248_v59, %v284_v62 }
 0x18b   :  { %2254 = vrcp.f32 %v344_v61  ;;  %v2796_v0 = vpop.f32.mrf.mxu1  ;;  %v356_v7 = vand.u32 2147483648, %v344_v61  ;;  %v354_v9 = vand.u32 2147483647, %v344_v61  ;;  %vm350_vm14 = vweird.f32 %v344_v61 }
 0x18c   :  { %2256 = vtanh.f32 %v339_v56 }
 0x18d   :  { %v357_v13 = vor.u32 1.1754944e-38, %v356_v7  ;;  %vm355_vm1 = vcmp.eq.f32.partialorder %v354_v9, 8.507059e+37 }
 0x191   :  { %v2255_v1 = vpop.eup %2254  ;;  %v287_v2 = vpop.f32.mrf.mxu2 }
 0x192   :  { %v2798_v3 = vadd.f32 %v2248_v59, %v287_v2  ;;  %v346_v4 = vmul.f32 %v2255_v1, %v344_v61  ;;  %vm351_vm12 = vweird.f32 %v2255_v1  ;;  %v2257_v18 = vpop.eup %2256 }
 0x193   :  { %v2800_v5 = vpop.f32.mrf.mxu1  ;;  %vm352_vm15 = vmor %vm350_vm14, %vm351_vm12 }
 0x194   :  { %v347_v6 = vsub.f32 1.0, %v346_v4 }
 0x196   :  { %v348_v8 = vmul.f32 %v2255_v1, %v347_v6 }
 0x198   :  { %v349_v11 = vadd.f32 %v2255_v1, %v348_v8 }
 0x199   :  { %v290_v12 = vpop.f32.mrf.mxu2 }
 0x19a   :  { %v2808_v15 = vadd.f32 %v2248_v59, %v290_v12  ;;  %v353_v17 = vsel %vm352_vm15, %v2255_v1, %v349_v11 }
 0x19b   :  { %v2810_v14 = vpop.f32.mrf.mxu1  ;;  %v358_v19 = vsel %vm355_vm1, %v357_v13, %v353_v17 }
 0x19c   :  { %v360_v20 = vsel %vm2804_vm13, %v2257_v18, %v358_v19 }
 0x19d   :  { %363 = vrot.lane.b32.xlu2 %v360_v20, %s2481_s5  ;;  %v361_v18 = vmul.f32 0.0, %v360_v20 }
 0x1a1   :  { %v293_v21 = vpop.f32.mrf.mxu2 }
 0x1a2   :  { %v2815_v22 = vadd.f32 %v2248_v59, %v293_v21 }
 0x1a3   :  { %v249_v23 = vpop.f32.mrf.mxu1 }
 0x1a4   :  { %v2818_v24 = vadd.f32 %v2786_v52, %v249_v23 }
 0x1a9   :  { %v296_v27 = vpop.f32.mrf.mxu2 }
 0x1aa   :  { %v2820_v30 = vadd.f32 %v2248_v59, %v296_v27 }
 0x1ab   :  { %v252_v31 = vpop.f32.mrf.mxu1 }
 0x1ac   :  { %v2823_v32 = vadd.f32 %v2786_v52, %v252_v31 }
 0x1b1   :  { %v299_v33 = vpop.f32.mrf.mxu2 }
 0x1b2   :  { %v2825_v34 = vadd.f32 %v2248_v59, %v299_v33 }
 0x1b3   :  { %v255_v35 = vpop.f32.mrf.mxu1 }
 0x1b4   :  { %v2828_v36 = vadd.f32 %v2786_v52, %v255_v35 }
 0x1b9   :  { %v302_v37 = vpop.f32.mrf.mxu2 }
 0x1ba   :  { %v303_v39 = vadd.f32 %v2248_v59, %v302_v37 }
 0x1bc   :  { %v398_v53 = vadd.f32 %v395_v38, %v303_v39 }
 0x1be   :  { %v2171_v54 = vmul.f32 -1.442695, %v398_v53 }
 0x1c0   :  { %2258 = vpow2.f32 %v2171_v54 }
 0x1c6   :  { %v2259_v55 = vpop.eup %2258 }
 0x1c7   :  { %v403_v56 = vadd.f32 1.0, %v2259_v55 }
 0x1c9   :  { %2260 = vrcp.f32 %v403_v56  ;;  %v415_v62 = vand.u32 2147483648, %v403_v56  ;;  %v413_v2 = vand.u32 2147483647, %v403_v56  ;;  %vm409_vm3 = vweird.f32 %v403_v56 }
 0x1ca   :  { %2262 = vtanh.f32 %v398_v53 }
 0x1cb   :  { %v416_v6 = vor.u32 1.1754944e-38, %v415_v62  ;;  %vm414_vm5 = vcmp.eq.f32.partialorder %v413_v2, 8.507059e+37 }
 0x1cf   :  { %v2261_v57 = vpop.eup %2260 }
 0x1d0   :  { %v405_v60 = vmul.f32 %v2261_v57, %v403_v56  ;;  %vm410_vm2 = vweird.f32 %v2261_v57  ;;  %v2263_v59 = vpop.eup %2262 }
 0x1d1   :  { %vm411_vm4 = vmor %vm409_vm3, %vm410_vm2 }
 0x1d2   :  { %v406_v61 = vsub.f32 1.0, %v405_v60 }
 0x1d4   :  { %v407_v1 = vmul.f32 %v2261_v57, %v406_v61 }
 0x1d6   :  { %v408_v4 = vadd.f32 %v2261_v57, %v407_v1 }
 0x1d8   :  { %v412_v7 = vsel %vm411_vm4, %v2261_v57, %v408_v4 }
 0x1d9   :  { %v417_v8 = vsel %vm414_vm5, %v416_v6, %v412_v7 }
 0x1da   :  { %v419_v9 = vsel %vm2804_vm13, %v2263_v59, %v417_v8 }
 0x1db   :  { %422 = vrot.lane.b32.xlu0 %v419_v9, %s2481_s5  ;;  %v420_v27 = vmul.f32 0.0, %v419_v9 }
 0x1f7   :  { %v364_v11 = vpop.permute.xlu2 %363 }
 0x1f8   :  { %v366_v12 = vmul.f32 %v364_v11, %v360_v20 }
 0x1fa   :  { %368 = vrot.lane.b32.xlu1 %v366_v12, %s2482_s21 }
 0x24d   :  { %v423_v13 = vpop.permute.xlu0 %422 }
 0x24e   :  { %v425_v17 = vmul.f32 %v423_v13, %v419_v9 }
 0x250   :  { %427 = vrot.lane.b32.xlu2 %v425_v17, %s2482_s21 }
 0x26c   :  { %v369_v19 = vpop.permute.xlu1 %368 }
 0x26d   :  { %v2835_v21 = vadd.f32 %v369_v19, %v361_v18 }
 0x26f   :  { %2264 = vtanh.f32 %v2835_v21 }
 0x275   :  { %v2265_v23 = vpop.eup %2264 }
 0x276   :  { %374 = vrot.lane.b32.xlu0 %v2265_v23, %s2481_s5 }
 0x2aa   :  { %v428_v31 = vpop.permute.xlu2 %427 }
 0x2ab   :  { %v2839_v33 = vadd.f32 %v428_v31, %v420_v27 }
 0x2ad   :  { %2266 = vtanh.f32 %v2839_v33 }
 0x2b3   :  { %v2267_v35 = vpop.eup %2266 }
 0x2b4   :  { %433 = vrot.lane.b32.xlu1 %v2267_v35, %s2481_s5 }
 0x2e8   :  { %v375_v37 = vpop.permute.xlu0 %374 }
 0x2e9   :  { %v377_v38 = vmul.f32 %v375_v37, %v360_v20  ;;  %v238_v20 = vadd.f32 %v2786_v52, %v2789_v58 }
 0x2eb   :  { %438 = vrot.lane.b32.xlu2 %v377_v38, %s2482_s21 }
 0x326   :  { %v434_v39 = vpop.permute.xlu1 %433 }
 0x327   :  { %v436_v53 = vmul.f32 %v434_v39, %v419_v9 }
 0x329   :  { %502 = vrot.lane.b32.xlu0 %v436_v53, %s2482_s21 }
 0x345   :  { %v439_v54 = vpop.permute.xlu2 %438 }
 0x346   :  { %2172 = vmatmul.msk.f32.vlgmr.msra.gmra.mxu3 %vm120_vm0, %v439_v54 }
 0x347   :  { %582 = vmatpush.msra.mxu3 %v2632_v25 }
 0x349   :  { %583 = vmatpush.msra.mxu3 %v2637_v26 }
 0x34b   :  { %584 = vmatpush.msra.mxu3 %v2648_v28 }
 0x34d   :  { %585 = vmatpush.msra.mxu3 %v2655_v29 }
 0x39b   :  { %v503_v55 = vpop.permute.xlu0 %502 }
 0x39c   :  { %2174 = vmatmul.msk.f32.vlgmr.msrb.gmra.mxu3 %vm120_vm0, %v503_v55 }
 0x39d   :  { %646 = vmatpush.msrb.mxu3 %v2709_v43 }
 0x39f   :  { %647 = vmatpush.msrb.mxu3 %v2714_v44 }
 0x3a1   :  { %648 = vmatpush.msrb.mxu3 %v2721_v45 }
 0x3a3   :  { %649 = vmatpush.msrb.mxu3 %v2736_v47 }
 0x3c9   :  { %v459_v56 = vpop.f32.mrf.mxu3 }
 0x3ca   :  { %v462_v57 = vadd.f32 %v459_v56, %v238_v20 }
 0x3cc   :  { %v2173_v60 = vmul.f32 -1.442695, %v462_v57 }
 0x3ce   :  { %2268 = vpow2.f32 %v2173_v60 }
 0x3d4   :  { %v2269_v61 = vpop.eup %2268 }
 0x3d5   :  { %v467_v62 = vadd.f32 1.0, %v2269_v61 }
 0x3d7   :  { %2270 = vrcp.f32 %v467_v62  ;;  %v479_v6 = vand.u32 2147483648, %v467_v62  ;;  %v477_v59 = vand.u32 2147483647, %v467_v62  ;;  %vm473_vm7 = vweird.f32 %v467_v62 }
 0x3d8   :  { %2272 = vtanh.f32 %v462_v57 }
 0x3d9   :  { %v480_v9 = vor.u32 1.1754944e-38, %v479_v6  ;;  %vm478_vm10 = vcmp.eq.f32.partialorder %v477_v59, 8.507059e+37 }
 0x3dd   :  { %v2271_v1 = vpop.eup %2270 }
 0x3de   :  { %v469_v2 = vmul.f32 %v2271_v1, %v467_v62  ;;  %vm474_vm6 = vweird.f32 %v2271_v1  ;;  %v2273_v11 = vpop.eup %2272 }
 0x3df   :  { %vm475_vm8 = vmor %vm473_vm7, %vm474_vm6 }
 0x3e0   :  { %v470_v4 = vsub.f32 1.0, %v469_v2 }
 0x3e2   :  { %v471_v7 = vmul.f32 %v2271_v1, %v470_v4 }
 0x3e4   :  { %v472_v8 = vadd.f32 %v2271_v1, %v471_v7 }
 0x3e6   :  { %v476_v58 = vsel %vm475_vm8, %v2271_v1, %v472_v8 }
 0x3e7   :  { %v481_v12 = vsel %vm478_vm10, %v480_v9, %v476_v58 }
 0x3e8   :  { %v483_v13 = vsel %vm2804_vm13, %v2273_v11, %v481_v12 }
 0x3e9   :  { %486 = vrot.lane.b32.xlu1 %v483_v13, %s2481_s5  ;;  %v484_v2 = vmul.f32 %v483_v13, %v2835_v21 }
 0x41f   :  { %v523_v17 = vpop.f32.mrf.mxu3 }
 0x420   :  { %v526_v18 = vadd.f32 %v523_v17, %v2825_v34 }
 0x422   :  { %v2175_v19 = vmul.f32 -1.442695, %v526_v18 }
 0x424   :  { %2274 = vpow2.f32 %v2175_v19 }
 0x42a   :  { %v2275_v23 = vpop.eup %2274 }
 0x42b   :  { %v531_v27 = vadd.f32 1.0, %v2275_v23 }
 0x42d   :  { %2276 = vrcp.f32 %v531_v27  ;;  %v543_v38 = vand.u32 2147483648, %v531_v27  ;;  %v541_v53 = vand.u32 2147483647, %v531_v27  ;;  %vm537_vm12 = vweird.f32 %v531_v27 }
 0x42e   :  { %2278 = vtanh.f32 %v526_v18 }
 0x42f   :  { %v544_v55 = vor.u32 1.1754944e-38, %v543_v38  ;;  %vm542_vm15 = vcmp.eq.f32.partialorder %v541_v53, 8.507059e+37 }
 0x433   :  { %v2277_v31 = vpop.eup %2276 }
 0x434   :  { %v533_v35 = vmul.f32 %v2277_v31, %v531_v27  ;;  %vm538_vm11 = vweird.f32 %v2277_v31  ;;  %v2279_v34 = vpop.eup %2278 }
 0x435   :  { %vm539_vm14 = vmor %vm537_vm12, %vm538_vm11 }
 0x436   :  { %v534_v37 = vsub.f32 1.0, %v533_v35 }
 0x438   :  { %v535_v39 = vmul.f32 %v2277_v31, %v534_v37 }
 0x43a   :  { %v536_v54 = vadd.f32 %v2277_v31, %v535_v39 }
 0x43c   :  { %v540_v20 = vsel %vm539_vm14, %v2277_v31, %v536_v54 }
 0x43d   :  { %v545_v56 = vsel %vm542_vm15, %v544_v55, %v540_v20 }
 0x43e   :  { %v547_v57 = vsel %vm2804_vm13, %v2279_v34, %v545_v56 }
 0x43f   :  { %550 = vrot.lane.b32.xlu2 %v547_v57, %s2481_s5  ;;  %v548_v59 = vmul.f32 %v547_v57, %v2839_v33 }
 0x45b   :  { %v487_v60 = vpop.permute.xlu1 %486 }
 0x45c   :  { %v489_v61 = vmul.f32 %v487_v60, %v483_v13 }
 0x45e   :  { %491 = vrot.lane.b32.xlu0 %v489_v61, %s2482_s21 }
 0x499   :  { %v551_v62 = vpop.permute.xlu2 %550 }
 0x49a   :  { %v553_v1 = vmul.f32 %v551_v62, %v547_v57 }
 0x49c   :  { %555 = vrot.lane.b32.xlu1 %v553_v1, %s2482_s21 }
 0x4d0   :  { %v492_v4 = vpop.permute.xlu0 %491 }
 0x4d1   :  { %v2867_v6 = vadd.f32 %v492_v4, %v484_v2 }
 0x4d3   :  { %2280 = vtanh.f32 %v2867_v6 }
 0x4d9   :  { %v2281_v7 = vpop.eup %2280 }
 0x4da   :  { %497 = vrot.lane.b32.xlu2 %v2281_v7, %s2481_s5 }
 0x50e   :  { %v556_v8 = vpop.permute.xlu1 %555 }
 0x50f   :  { %v2872_v9 = vadd.f32 %v556_v8, %v548_v59 }
 0x511   :  { %2282 = vtanh.f32 %v2872_v9 }
 0x517   :  { %v2283_v58 = vpop.eup %2282 }
 0x518   :  { %561 = vrot.lane.b32.xlu0 %v2283_v58, %s2481_s5 }
 0x534   :  { %v498_v11 = vpop.permute.xlu2 %497 }
 0x535   :  { %v500_v21 = vmul.f32 %v498_v11, %v483_v13 }
 0x537   :  { %566 = vrot.lane.b32.xlu1 %v500_v21, %s2482_s21 }
 0x58a   :  { %v562_v12 = vpop.permute.xlu0 %561 }
 0x58b   :  { %v564_v17 = vmul.f32 %v562_v12, %v547_v57 }
 0x58d   :  { %630 = vrot.lane.b32.xlu2 %v564_v17, %s2482_s21 }
 0x5a9   :  { %v567_v18 = vpop.permute.xlu1 %566 }
 0x5aa   :  { %2176 = vmatmul.msk.f32.vlgmr.msra.gmra.mxu3 %vm120_vm0, %v567_v18 }
 0x5ab   :  { %710 = vmatpush.msra.mxu3 %v2632_v25  ;;  %v241_v25 = vadd.f32 %v2786_v52, %v2796_v0 }
 0x5ad   :  { %711 = vmatpush.msra.mxu3 %v2637_v26 }
 0x5af   :  { %712 = vmatpush.msra.mxu3 %v2648_v28 }
 0x5b1   :  { %713 = vmatpush.msra.mxu3 %v2655_v29 }
 0x5e7   :  { %v631_v33 = vpop.permute.xlu2 %630 }
 0x5e8   :  { %2178 = vmatmul.msk.f32.vlgmr.msrb.gmra.mxu3 %vm120_vm0, %v631_v33 }
 0x5e9   :  { %774 = vmatpush.msrb.mxu3 %v2709_v43 }
 0x5eb   :  { %775 = vmatpush.msrb.mxu3 %v2714_v44 }
 0x5ed   :  { %776 = vmatpush.msrb.mxu3 %v2721_v45 }
 0x5ef   :  { %777 = vmatpush.msrb.mxu3 %v2736_v47 }
 0x62d   :  { %v587_v13 = vpop.f32.mrf.mxu3 }
 0x62e   :  { %v590_v26 = vadd.f32 %v587_v13, %v241_v25 }
 0x630   :  { %v2177_v19 = vmul.f32 -1.442695, %v590_v26 }
 0x632   :  { %2284 = vpow2.f32 %v2177_v19 }
 0x638   :  { %v2285_v28 = vpop.eup %2284 }
 0x639   :  { %v595_v29 = vadd.f32 1.0, %v2285_v28 }
 0x63b   :  { %2286 = vrcp.f32 %v595_v29  ;;  %v607_v35 = vand.u32 2147483648, %v595_v29  ;;  %v605_v38 = vand.u32 2147483647, %v595_v29  ;;  %vm601_vm2 = vweird.f32 %v595_v29 }
 0x63c   :  { %2288 = vtanh.f32 %v590_v26 }
 0x63d   :  { %v608_v53 = vor.u32 1.1754944e-38, %v607_v35  ;;  %vm606_vm4 = vcmp.eq.f32.partialorder %v605_v38, 8.507059e+37 }
 0x641   :  { %v2287_v23 = vpop.eup %2286 }
 0x642   :  { %v597_v27 = vmul.f32 %v2287_v23, %v595_v29  ;;  %vm602_vm1 = vweird.f32 %v2287_v23  ;;  %v2289_v54 = vpop.eup %2288 }
 0x643   :  { %vm603_vm3 = vmor %vm601_vm2, %vm602_vm1 }
 0x644   :  { %v598_v31 = vsub.f32 1.0, %v597_v27 }
 0x646   :  { %v599_v37 = vmul.f32 %v2287_v23, %v598_v31 }
 0x648   :  { %v600_v39 = vadd.f32 %v2287_v23, %v599_v37 }
 0x64a   :  { %v604_v0 = vsel %vm603_vm3, %v2287_v23, %v600_v39 }
 0x64b   :  { %v609_v55 = vsel %vm606_vm4, %v608_v53, %v604_v0  ;;  %v244_v53 = vadd.f32 %v2786_v52, %v2800_v5 }
 0x64c   :  { %v611_v20 = vsel %vm2804_vm13, %v2289_v54, %v609_v55 }
 0x64d   :  { %614 = vrot.lane.b32.xlu0 %v611_v20, %s2481_s5  ;;  %v612_v13 = vmul.f32 %v611_v20, %v2867_v6 }
 0x66b   :  { %v651_v34 = vpop.f32.mrf.mxu3 }
 0x66c   :  { %v654_v56 = vadd.f32 %v651_v34, %v2820_v30 }
 0x66e   :  { %v2179_v57 = vmul.f32 -1.442695, %v654_v56 }
 0x670   :  { %2290 = vpow2.f32 %v2179_v57 }
 0x676   :  { %v2291_v60 = vpop.eup %2290 }
 0x677   :  { %v659_v61 = vadd.f32 1.0, %v2291_v60 }
 0x679   :  { %2292 = vrcp.f32 %v659_v61  ;;  %v671_v4 = vand.u32 2147483648, %v659_v61  ;;  %v669_v59 = vand.u32 2147483647, %v659_v61  ;;  %vm665_vm6 = vweird.f32 %v659_v61 }
 0x67a   :  { %2294 = vtanh.f32 %v654_v56 }
 0x67b   :  { %v672_v58 = vor.u32 1.1754944e-38, %v671_v4  ;;  %vm670_vm8 = vcmp.eq.f32.partialorder %v669_v59, 8.507059e+37 }
 0x67f   :  { %v2293_v62 = vpop.eup %2292 }
 0x680   :  { %v661_v1 = vmul.f32 %v2293_v62, %v659_v61  ;;  %vm666_vm5 = vweird.f32 %v2293_v62  ;;  %v2295_v30 = vpop.eup %2294 }
 0x681   :  { %vm667_vm7 = vmor %vm665_vm6, %vm666_vm5 }
 0x682   :  { %v662_v2 = vsub.f32 1.0, %v661_v1 }
 0x684   :  { %v663_v7 = vmul.f32 %v2293_v62, %v662_v2 }
 0x686   :  { %v664_v8 = vadd.f32 %v2293_v62, %v663_v7 }
 0x688   :  { %v668_v11 = vsel %vm667_vm7, %v2293_v62, %v664_v8 }
 0x689   :  { %v673_v21 = vsel %vm670_vm8, %v672_v58, %v668_v11 }
 0x68a   :  { %v675_v12 = vsel %vm2804_vm13, %v2295_v30, %v673_v21 }
 0x68b   :  { %678 = vrot.lane.b32.xlu1 %v675_v12, %s2481_s5  ;;  %v676_v29 = vmul.f32 %v675_v12, %v2872_v9 }
 0x6bf   :  { %v615_v17 = vpop.permute.xlu0 %614 }
 0x6c0   :  { %v617_v18 = vmul.f32 %v615_v17, %v611_v20 }
 0x6c2   :  { %619 = vrot.lane.b32.xlu2 %v617_v18, %s2482_s21 }
 0x6fd   :  { %v679_v33 = vpop.permute.xlu1 %678 }
 0x6fe   :  { %v681_v25 = vmul.f32 %v679_v33, %v675_v12 }
 0x700   :  { %683 = vrot.lane.b32.xlu0 %v681_v25, %s2482_s21 }
 0x71c   :  { %v620_v26 = vpop.permute.xlu2 %619 }
 0x71d   :  { %v2900_v19 = vadd.f32 %v620_v26, %v612_v13 }
 0x71f   :  { %2296 = vtanh.f32 %v2900_v19 }
 0x725   :  { %v2297_v28 = vpop.eup %2296 }
 0x726   :  { %625 = vrot.lane.b32.xlu1 %v2297_v28, %s2481_s5 }
 0x772   :  { %v684_v23 = vpop.permute.xlu0 %683 }
 0x773   :  { %v2905_v27 = vadd.f32 %v684_v23, %v676_v29 }
 0x775   :  { %2298 = vtanh.f32 %v2905_v27 }
 0x77b   :  { %v2299_v31 = vpop.eup %2298 }
 0x77c   :  { %689 = vrot.lane.b32.xlu2 %v2299_v31, %s2481_s5 }
 0x798   :  { %v626_v35 = vpop.permute.xlu1 %625 }
 0x799   :  { %v628_v6 = vmul.f32 %v626_v35, %v611_v20 }
 0x79b   :  { %694 = vrot.lane.b32.xlu0 %v628_v6, %s2482_s21 }
 0x7d6   :  { %v690_v37 = vpop.permute.xlu2 %689 }
 0x7d7   :  { %v692_v38 = vmul.f32 %v690_v37, %v675_v12 }
 0x7d9   :  { %758 = vrot.lane.b32.xlu1 %v692_v38, %s2482_s21 }
 0x80d   :  { %v695_v39 = vpop.permute.xlu0 %694 }
 0x80e   :  { %2180 = vmatmul.msk.f32.vlgmr.msra.gmra.mxu3 %vm120_vm0, %v695_v39 }
 0x80f   :  { %1030 = vmatpush.msra.mxu3 %v2709_v43 }
 0x811   :  { %1031 = vmatpush.msra.mxu3 %v2714_v44 }
 0x813   :  { %1032 = vmatpush.msra.mxu3 %v2721_v45 }
 0x815   :  { %1033 = vmatpush.msra.mxu3 %v2736_v47 }
 0x84b   :  { %v759_v9 = vpop.permute.xlu1 %758 }
 0x84c   :  { %2182 = vmatmul.msk.f32.vlgmr.msrb.gmra.mxu3 %vm120_vm0, %v759_v9 }
 0x84d   :  { %1286 = vmatpush.msrb.mxu3 %v2709_v43 }
 0x84f   :  { %1287 = vmatpush.msrb.mxu3 %v2714_v44 }
 0x851   :  { %1288 = vmatpush.msrb.mxu3 %v2721_v45 }
 0x853   :  { %1289 = vmatpush.msrb.mxu3 %v2736_v47 }
 0x891   :  { %v715_v0 = vpop.f32.mrf.mxu3 }
 0x892   :  { %v718_v54 = vadd.f32 %v715_v0, %v244_v53 }
 0x894   :  { %v2181_v55 = vmul.f32 -1.442695, %v718_v54 }
 0x896   :  { %2300 = vpow2.f32 %v2181_v55 }
 0x89c   :  { %v2301_v20 = vpop.eup %2300 }
 0x89d   :  { %v723_v34 = vadd.f32 1.0, %v2301_v20 }
 0x89f   :  { %2302 = vrcp.f32 %v723_v34  ;;  %v735_v43 = vand.u32 2147483648, %v723_v34  ;;  %v733_v45 = vand.u32 2147483647, %v723_v34  ;;  %vm729_vm11 = vweird.f32 %v723_v34 }
 0x8a0   :  { %2304 = vtanh.f32 %v718_v54 }
 0x8a1   :  { %v736_v47 = vor.u32 1.1754944e-38, %v735_v43  ;;  %vm734_vm14 = vcmp.eq.f32.partialorder %v733_v45, 8.507059e+37 }
 0x8a5   :  { %v2303_v56 = vpop.eup %2302 }
 0x8a6   :  { %v725_v57 = vmul.f32 %v2303_v56, %v723_v34  ;;  %vm730_vm10 = vweird.f32 %v2303_v56  ;;  %v2305_v62 = vpop.eup %2304 }
 0x8a7   :  { %vm731_vm12 = vmor %vm729_vm11, %vm730_vm10 }
 0x8a8   :  { %v726_v60 = vsub.f32 1.0, %v725_v57  ;;  %v2946_v57 = vpop.f32.mrf.mxu1 }
 0x8aa   :  { %v727_v44 = vmul.f32 %v2303_v56, %v726_v60  ;;  %v247_v60 = vadd.f32 %v2786_v52, %v2810_v14 }
 0x8ac   :  { %v728_v61 = vadd.f32 %v2303_v56, %v727_v44 }
 0x8ae   :  { %v732_v5 = vsel %vm731_vm12, %v2303_v56, %v728_v61 }
 0x8af   :  { %v737_v1 = vsel %vm734_vm14, %v736_v47, %v732_v5 }
 0x8b0   :  { %v739_v2 = vsel %vm2804_vm13, %v2305_v62, %v737_v1 }
 0x8b1   :  { %742 = vrot.lane.b32.xlu0 %v739_v2, %s2481_s5  ;;  %v740_v6 = vmul.f32 %v739_v2, %v2900_v19 }
 0x8cf   :  { %v779_v4 = vpop.f32.mrf.mxu3 }
 0x8d0   :  { %v782_v7 = vadd.f32 %v779_v4, %v2815_v22 }
 0x8d2   :  { %v2183_v59 = vmul.f32 -1.442695, %v782_v7 }
 0x8d4   :  { %2306 = vpow2.f32 %v2183_v59 }
 0x8da   :  { %v2307_v8 = vpop.eup %2306 }
 0x8db   :  { %v787_v58 = vadd.f32 1.0, %v2307_v8 }
 0x8dd   :  { %2308 = vrcp.f32 %v787_v58  ;;  %v799_v12 = vand.u32 2147483648, %v787_v58  ;;  %v797_v18 = vand.u32 2147483647, %v787_v58  ;;  %vm793_vm1 = vweird.f32 %v787_v58 }
 0x8de   :  { %2310 = vtanh.f32 %v782_v7 }
 0x8df   :  { %v800_v25 = vor.u32 1.1754944e-38, %v799_v12  ;;  %vm798_vm3 = vcmp.eq.f32.partialorder %v797_v18, 8.507059e+37 }
 0x8e3   :  { %v2309_v11 = vpop.eup %2308 }
 0x8e4   :  { %v789_v30 = vmul.f32 %v2309_v11, %v787_v58  ;;  %vm794_vm15 = vweird.f32 %v2309_v11  ;;  %v2311_v22 = vpop.eup %2310 }
 0x8e5   :  { %vm795_vm2 = vmor %vm793_vm1, %vm794_vm15 }
 0x8e6   :  { %v790_v21 = vsub.f32 1.0, %v789_v30 }
 0x8e8   :  { %v791_v17 = vmul.f32 %v2309_v11, %v790_v21 }
 0x8ea   :  { %v792_v33 = vadd.f32 %v2309_v11, %v791_v17 }
 0x8ec   :  { %v796_v13 = vsel %vm795_vm2, %v2309_v11, %v792_v33 }
 0x8ed   :  { %v801_v26 = vsel %vm798_vm3, %v800_v25, %v796_v13 }
 0x8ee   :  { %v803_v28 = vsel %vm2804_vm13, %v2311_v22, %v801_v26 }
 0x8ef   :  { %806 = vrot.lane.b32.xlu2 %v803_v28, %s2481_s5  ;;  %v804_v9 = vmul.f32 %v803_v28, %v2905_v27 }
 0x923   :  { %v743_v29 = vpop.permute.xlu0 %742 }
 0x924   :  { %v745_v23 = vmul.f32 %v743_v29, %v739_v2 }
 0x926   :  { %747 = vrot.lane.b32.xlu2 %v745_v23, %s2482_s21 }
 0x949   :  { %v807_v31 = vpop.permute.xlu2 %806 }
 0x94a   :  { %v809_v35 = vmul.f32 %v807_v31, %v803_v28 }
 0x94c   :  { %811 = vrot.lane.b32.xlu1 %v809_v35, %s2482_s21 }
 0x980   :  { %v748_v37 = vpop.permute.xlu2 %747 }
 0x981   :  { %v2933_v38 = vadd.f32 %v748_v37, %v740_v6 }
 0x983   :  { %2312 = vtanh.f32 %v2933_v38 }
 0x989   :  { %v2313_v39 = vpop.eup %2312 }
 0x98a   :  { %753 = vrot.lane.b32.xlu1 %v2313_v39, %s2481_s5 }
 0x9be   :  { %v812_v53 = vpop.permute.xlu1 %811 }
 0x9bf   :  { %v2938_v0 = vadd.f32 %v812_v53, %v804_v9 }
 0x9c1   :  { %2314 = vtanh.f32 %v2938_v0 }
 0x9c7   :  { %v2315_v54 = vpop.eup %2314 }
 0x9c8   :  { %817 = vrot.lane.b32.xlu0 %v2315_v54, %s2481_s5 }
 0x9fc   :  { %v754_v55 = vpop.permute.xlu1 %753 }
 0x9fd   :  { %v756_v19 = vmul.f32 %v754_v55, %v739_v2 }
 0x9ff   :  { %822 = vrot.lane.b32.xlu0 %v756_v19, %s2482_s21 }
 0xa3a   :  { %v818_v20 = vpop.permute.xlu0 %817 }
 0xa3b   :  { %v820_v34 = vmul.f32 %v818_v20, %v803_v28 }
 0xa3d   :  { %886 = vrot.lane.b32.xlu2 %v820_v34, %s2482_s21 }
 0xa71   :  { %v823_v56 = vpop.permute.xlu0 %822 }
 0xa72   :  { %2184 = vmatmul.msk.f32.vlgmr.msra.gmra.mxu1 %vm120_vm0, %v823_v56 }
 0xa97   :  { %v887_v27 = vpop.permute.xlu2 %886 }
 0xa98   :  { %2186 = vmatmul.msk.f32.vlgmr.msrb.gmra.mxu2 %vm120_vm0, %v887_v27 }
 0xaef   :  { %v843_v43 = vpop.f32.mrf.mxu1 }
 0xaf0   :  { %v846_v44 = vadd.f32 %v843_v43, %v247_v60 }
 0xaf2   :  { %v2185_v45 = vmul.f32 -1.442695, %v846_v44 }
 0xaf4   :  { %2316 = vpow2.f32 %v2185_v45 }
 0xafa   :  { %v2317_v61 = vpop.eup %2316 }
 0xafb   :  { %v851_v47 = vadd.f32 1.0, %v2317_v61 }
 0xafd   :  { %2318 = vrcp.f32 %v851_v47  ;;  %v863_v2 = vand.u32 2147483648, %v851_v47  ;;  %v861_v7 = vand.u32 2147483647, %v851_v47  ;;  %vm857_vm5 = vweird.f32 %v851_v47 }
 0xafe   :  { %2320 = vtanh.f32 %v846_v44 }
 0xaff   :  { %v864_v8 = vor.u32 1.1754944e-38, %v863_v2  ;;  %vm862_vm7 = vcmp.eq.f32.partialorder %v861_v7, 8.507059e+37 }
 0xb03   :  { %v2319_v5 = vpop.eup %2318 }
 0xb04   :  { %v853_v62 = vmul.f32 %v2319_v5, %v851_v47  ;;  %vm858_vm4 = vweird.f32 %v2319_v5  ;;  %v2321_v14 = vpop.eup %2320 }
 0xb05   :  { %vm859_vm6 = vmor %vm857_vm5, %vm858_vm4 }
 0xb06   :  { %v854_v1 = vsub.f32 1.0, %v853_v62 }
 0xb08   :  { %v855_v4 = vmul.f32 %v2319_v5, %v854_v1 }
 0xb0a   :  { %v856_v59 = vadd.f32 %v2319_v5, %v855_v4 }
 0xb0c   :  { %v860_v52 = vsel %vm859_vm6, %v2319_v5, %v856_v59 }
 0xb0d   :  { %v865_v58 = vsel %vm862_vm7, %v864_v8, %v860_v52 }
 0xb0e   :  { %v867_v11 = vsel %vm2804_vm13, %v2321_v14, %v865_v58 }
 0xb0f   :  { %870 = vrot.lane.b32.xlu2 %v867_v11, %s2481_s5  ;;  %v868_v54 = vmul.f32 %v867_v11, %v2933_v38 }
 0xb1b   :  { %v907_v30 = vpop.f32.mrf.mxu2 }
 0xb1c   :  { %v910_v21 = vadd.f32 %v907_v30, %v2808_v15 }
 0xb1e   :  { %v2187_v12 = vmul.f32 -1.442695, %v910_v21 }
 0xb20   :  { %2322 = vpow2.f32 %v2187_v12 }
 0xb26   :  { %v2323_v17 = vpop.eup %2322 }
 0xb27   :  { %v915_v18 = vadd.f32 1.0, %v2323_v17 }
 0xb29   :  { %2324 = vrcp.f32 %v915_v18  ;;  %v927_v22 = vand.u32 2147483648, %v915_v18  ;;  %v925_v28 = vand.u32 2147483647, %v915_v18  ;;  %vm921_vm10 = vweird.f32 %v915_v18 }
 0xb2a   :  { %2326 = vtanh.f32 %v910_v21 }
 0xb2b   :  { %v928_v23 = vor.u32 1.1754944e-38, %v927_v22  ;;  %vm926_vm12 = vcmp.eq.f32.partialorder %v925_v28, 8.507059e+37 }
 0xb2f   :  { %v2325_v33 = vpop.eup %2324 }
 0xb30   :  { %v917_v25 = vmul.f32 %v2325_v33, %v915_v18  ;;  %vm922_vm8 = vweird.f32 %v2325_v33  ;;  %v2327_v15 = vpop.eup %2326 }
 0xb31   :  { %vm923_vm11 = vmor %vm921_vm10, %vm922_vm8 }
 0xb32   :  { %v918_v13 = vsub.f32 1.0, %v917_v25 }
 0xb34   :  { %v919_v26 = vmul.f32 %v2325_v33, %v918_v13 }
 0xb36   :  { %v920_v29 = vadd.f32 %v2325_v33, %v919_v26 }
 0xb38   :  { %v924_v31 = vsel %vm923_vm11, %v2325_v33, %v920_v29 }
 0xb39   :  { %v929_v35 = vsel %vm926_vm12, %v928_v23, %v924_v31 }
 0xb3a   :  { %v931_v6 = vsel %vm2804_vm13, %v2327_v15, %v929_v35 }
 0xb3b   :  { %934 = vrot.lane.b32.xlu1 %v931_v6, %s2481_s5  ;;  %v932_v34 = vmul.f32 %v931_v6, %v2938_v0 }
 0xb69   :  { %v871_v37 = vpop.permute.xlu2 %870 }
 0xb6a   :  { %v873_v39 = vmul.f32 %v871_v37, %v867_v11 }
 0xb6c   :  { %875 = vrot.lane.b32.xlu1 %v873_v39, %s2482_s21 }
 0xbad   :  { %v935_v9 = vpop.permute.xlu1 %934 }
 0xbae   :  { %v937_v53 = vmul.f32 %v935_v9, %v931_v6 }
 0xbb0   :  { %939 = vrot.lane.b32.xlu0 %v937_v53, %s2482_s21 }
 0xbde   :  { %v876_v55 = vpop.permute.xlu1 %875 }
 0xbdf   :  { %v2960_v19 = vadd.f32 %v876_v55, %v868_v54 }
 0xbe1   :  { %2328 = vtanh.f32 %v2960_v19 }
 0xbe7   :  { %v2329_v20 = vpop.eup %2328 }
 0xbe8   :  { %881 = vrot.lane.b32.xlu0 %v2329_v20, %s2481_s5 }
 0xc22   :  { %v940_v56 = vpop.permute.xlu0 %939 }
 0xc23   :  { %v2965_v27 = vadd.f32 %v940_v56, %v932_v34 }
 0xc25   :  { %2330 = vtanh.f32 %v2965_v27 }
 0xc2b   :  { %v2331_v60 = vpop.eup %2330 }
 0xc2c   :  { %945 = vrot.lane.b32.xlu2 %v2331_v60, %s2481_s5 }
 0xc5a   :  { %v882_v43 = vpop.permute.xlu0 %881 }
 0xc5b   :  { %v884_v38 = vmul.f32 %v882_v43, %v867_v11 }
 0xc5d   :  { %950 = vrot.lane.b32.xlu2 %v884_v38, %s2482_s21 }
 0xc86   :  { %v946_v44 = vpop.permute.xlu2 %945 }
 0xc87   :  { %v948_v45 = vmul.f32 %v946_v44, %v931_v6 }
 0xc89   :  { %1014 = vrot.lane.b32.xlu1 %v948_v45, %s2482_s21 }
 0xcb7   :  { %v951_v61 = vpop.permute.xlu2 %950 }
 0xcb8   :  { %2188 = vmatmul.msk.f32.vlgmr.msrb.gmra.mxu0 %vm120_vm0, %v951_v61 }
 0xcfb   :  { %v1015_v0 = vpop.permute.xlu1 %1014 }
 0xcfc   :  { %2190 = vmatmul.msk.f32.vlgmr.msra.gmra.mxu3 %vm120_vm0, %v1015_v0 }
 0xd35   :  { %v971_v47 = vpop.f32.mrf.mxu0 }
 0xd36   :  { %v974_v5 = vadd.f32 %v971_v47, %v2818_v24 }
 0xd38   :  { %v2189_v62 = vmul.f32 -1.442695, %v974_v5 }
 0xd3a   :  { %2332 = vpow2.f32 %v2189_v62  ;;  %v1389_v62 = vld [vmem:[%s3339_s11] sm:$0xff] }
 0xd40   :  { %v2333_v1 = vpop.eup %2332 }
 0xd41   :  { %v979_v2 = vadd.f32 1.0, %v2333_v1 }
 0xd43   :  { %2334 = vrcp.f32 %v979_v2  ;;  %v991_v8 = vand.u32 2147483648, %v979_v2  ;;  %v989_v14 = vand.u32 2147483647, %v979_v2  ;;  %vm985_vm15 = vweird.f32 %v979_v2 }
 0xd44   :  { %2336 = vtanh.f32 %v974_v5 }
 0xd45   :  { %v992_v11 = vor.u32 1.1754944e-38, %v991_v8  ;;  %vm990_vm2 = vcmp.eq.f32.partialorder %v989_v14, 8.507059e+37 }
 0xd49   :  { %v2335_v4 = vpop.eup %2334 }
 0xd4a   :  { %v981_v7 = vmul.f32 %v2335_v4, %v979_v2  ;;  %vm986_vm14 = vweird.f32 %v2335_v4  ;;  %v2337_v24 = vpop.eup %2336 }
 0xd4b   :  { %vm987_vm1 = vmor %vm985_vm15, %vm986_vm14 }
 0xd4c   :  { %v982_v59 = vsub.f32 1.0, %v981_v7 }
 0xd4e   :  { %v983_v52 = vmul.f32 %v2335_v4, %v982_v59 }
 0xd50   :  { %v984_v58 = vadd.f32 %v2335_v4, %v983_v52 }
 0xd52   :  { %v988_v30 = vsel %vm987_vm1, %v2335_v4, %v984_v58 }
 0xd53   :  { %v993_v21 = vsel %vm990_vm2, %v992_v11, %v988_v30 }
 0xd54   :  { %v995_v12 = vsel %vm2804_vm13, %v2337_v24, %v993_v21 }
 0xd55   :  { %998 = vrot.lane.b32.xlu1 %v995_v12, %s2481_s5  ;;  %v996_v20 = vmul.f32 %v995_v12, %v2960_v19 }
 0xd7f   :  { %v1035_v17 = vpop.f32.mrf.mxu3 }
 0xd80   :  { %v1038_v18 = vadd.f32 %v1035_v17, %v2798_v3 }
 0xd82   :  { %v2191_v33 = vmul.f32 -1.442695, %v1038_v18 }
 0xd84   :  { %2338 = vpow2.f32 %v2191_v33 }
 0xd8a   :  { %v2339_v25 = vpop.eup %2338 }
 0xd8b   :  { %v1043_v13 = vadd.f32 1.0, %v2339_v25 }
 0xd8d   :  { %2340 = vrcp.f32 %v1043_v13  ;;  %v1055_v29 = vand.u32 2147483648, %v1043_v13  ;;  %v1053_v31 = vand.u32 2147483647, %v1043_v13  ;;  %vm1049_vm4 = vweird.f32 %v1043_v13 }
 0xd8e   :  { %2342 = vtanh.f32 %v1038_v18 }
 0xd8f   :  { %v1056_v35 = vor.u32 1.1754944e-38, %v1055_v29  ;;  %vm1054_vm6 = vcmp.eq.f32.partialorder %v1053_v31, 8.507059e+37 }
 0xd93   :  { %v2341_v22 = vpop.eup %2340 }
 0xd94   :  { %v1045_v26 = vmul.f32 %v2341_v22, %v1043_v13  ;;  %vm1050_vm3 = vweird.f32 %v2341_v22  ;;  %v2343_v3 = vpop.eup %2342 }
 0xd95   :  { %vm1051_vm5 = vmor %vm1049_vm4, %vm1050_vm3 }
 0xd96   :  { %v1046_v28 = vsub.f32 1.0, %v1045_v26 }
 0xd98   :  { %v1047_v23 = vmul.f32 %v2341_v22, %v1046_v28 }
 0xd9a   :  { %v1048_v15 = vadd.f32 %v2341_v22, %v1047_v23 }
 0xd9c   :  { %v1052_v6 = vsel %vm1051_vm5, %v2341_v22, %v1048_v15 }
 0xd9d   :  { %v1057_v37 = vsel %vm1054_vm6, %v1056_v35, %v1052_v6 }
 0xd9e   :  { %v1059_v39 = vsel %vm2804_vm13, %v2343_v3, %v1057_v37 }
 0xd9f   :  { %1062 = vrot.lane.b32.xlu0 %v1059_v39, %s2481_s5  ;;  %v1060_v43 = vmul.f32 %v1059_v39, %v2965_v27  ;;  %v1390_v27 = vld [vmem:[%s3339_s11 + $0x8] sm:$0xff] }
 0xda0   :  { %1405 = vmatpush.msrb.mxu2 %v1390_v27 }
 0xda2   :  { %1406 = vmatpush.msrb.mxu2 %v1389_v62 }
 0xdc7   :  { %v999_v9 = vpop.permute.xlu1 %998 }
 0xdc8   :  { %v1001_v53 = vmul.f32 %v999_v9, %v995_v12 }
 0xdca   :  { %1003 = vrot.lane.b32.xlu0 %v1001_v53, %s2482_s21 }
 0xe11   :  { %v1063_v54 = vpop.permute.xlu0 %1062 }
 0xe12   :  { %v1065_v55 = vmul.f32 %v1063_v54, %v1059_v39 }
 0xe14   :  { %1067 = vrot.lane.b32.xlu2 %v1065_v55, %s2482_s21 }
 0xe3c   :  { %v1004_v34 = vpop.permute.xlu0 %1003 }
 0xe3d   :  { %v2984_v56 = vadd.f32 %v1004_v34, %v996_v20 }
 0xe3f   :  { %2344 = vtanh.f32 %v2984_v56 }
 0xe45   :  { %v2345_v60 = vpop.eup %2344 }
 0xe46   :  { %1009 = vrot.lane.b32.xlu2 %v2345_v60, %s2481_s5 }
 0xe6e   :  { %v1068_v38 = vpop.permute.xlu2 %1067 }
 0xe6f   :  { %v2989_v44 = vadd.f32 %v1068_v38, %v1060_v43 }
 0xe71   :  { %2346 = vtanh.f32 %v2989_v44 }
 0xe77   :  { %v2347_v45 = vpop.eup %2346 }
 0xe78   :  { %1073 = vrot.lane.b32.xlu1 %v2347_v45, %s2481_s5 }
 0xea0   :  { %v1010_v61 = vpop.permute.xlu2 %1009 }
 0xea1   :  { %v1012_v19 = vmul.f32 %v1010_v61, %v995_v12 }
 0xea3   :  { %1078 = vrot.lane.b32.xlu1 %v1012_v19, %s2482_s21 }
 0xeea   :  { %v1074_v0 = vpop.permute.xlu1 %1073 }
 0xeeb   :  { %v1076_v47 = vmul.f32 %v1074_v0, %v1059_v39 }
 0xeed   :  { %1142 = vrot.lane.b32.xlu0 %v1076_v47, %s2482_s21 }
 0xf15   :  { %v1079_v5 = vpop.permute.xlu1 %1078 }
 0xf16   :  { %2192 = vmatmul.msk.f32.vlgmr.msrb.gmra.mxu1 %vm120_vm0, %v1079_v5 }
 0xf5f   :  { %v1143_v1 = vpop.permute.xlu0 %1142 }
 0xf60   :  { %2194 = vmatmul.msk.f32.vlgmr.msra.gmra.mxu2 %vm120_vm0, %v1143_v1 }
 0xf68   :  { %2201 = vmatmul.msk.f32.vlgmr.msrb.gmra.mxu2 %vm192_vm9, %v2686_v40 }
 0xf70   :  { %2202 = vmatmul.msk.f32.gmra.mxu2 %vm192_vm9, %v2693_v41 }
 0xf78   :  { %2203 = vmatmul.msk.f32.gmra.mxu2 %vm192_vm9, %v2700_v42 }
 0xf80   :  { %2204 = vmatmul.msk.f32.gmra.mxu2 %vm192_vm9, %v2727_v46 }
 0xf88   :  { %2205 = vmatmul.msk.f32.gmra.mxu2 %vm192_vm9, %v2746_v48 }
 0xf90   :  { %2206 = vmatmul.msk.f32.gmra.mxu2 %vm192_vm9, %v2758_v49 }
 0xf93   :  { %v1099_v2 = vpop.f32.mrf.mxu1 }
 0xf94   :  { %v1102_v4 = vadd.f32 %v1099_v2, %v2823_v32 }
 0xf96   :  { %v2193_v7 = vmul.f32 -1.442695, %v1102_v4 }
 0xf98   :  { %2348 = vpow2.f32 %v2193_v7  ;;  %2207 = vmatmul.msk.f32.gmra.mxu2 %vm192_vm9, %v2765_v50 }
 0xf9e   :  { %v2349_v40 = vpop.eup %2348 }
 0xf9f   :  { %v1107_v41 = vadd.f32 1.0, %v2349_v40 }
 0xfa0   :  { %2208 = vmatmul.msk.f32.gmra.mxu2 %vm192_vm9, %v2771_v51 }
 0xfa1   :  { %2350 = vrcp.f32 %v1107_v41  ;;  %v1119_v59 = vand.u32 2147483648, %v1107_v41  ;;  %v1117_v8 = vand.u32 2147483647, %v1107_v41  ;;  %vm1113_vm8 = vweird.f32 %v1107_v41 }
 0xfa2   :  { %2352 = vtanh.f32 %v1102_v4 }
 0xfa3   :  { %v1120_v52 = vor.u32 1.1754944e-38, %v1119_v59  ;;  %vm1118_vm11 = vcmp.eq.f32.partialorder %v1117_v8, 8.507059e+37  ;;  %v2478_v59 = vld [vmem:[%s3337_s8] ss:$0 sm:$0xff] }
 0xfa7   :  { %v2351_v42 = vpop.eup %2350 }
 0xfa8   :  { %v1109_v46 = vmul.f32 %v2351_v42, %v1107_v41  ;;  %vm1114_vm7 = vweird.f32 %v2351_v42  ;;  %v2353_v50 = vpop.eup %2352 }
 0xfa9   :  { %vm1115_vm10 = vmor %vm1113_vm8, %vm1114_vm7 }
 0xfaa   :  { %v1110_v48 = vsub.f32 1.0, %v1109_v46 }
 0xfac   :  { %v1111_v49 = vmul.f32 %v2351_v42, %v1110_v48 }
 0xfae   :  { %v1112_v32 = vadd.f32 %v2351_v42, %v1111_v49  ;;  %v282_v49 = vadd.f32 %v2478_v59, %v2946_v57 }
 0xfb0   :  { %v1116_v14 = vsel %vm1115_vm10, %v2351_v42, %v1112_v32  ;;  %vm1354_vm10 = vcmask 523264  }
 0xfb1   :  { %v1121_v58 = vsel %vm1118_vm11, %v1120_v52, %v1116_v14  ;;  %vm1437_vm11 = vcmask 64512  }
 0xfb2   :  { %v1123_v51 = vsel %vm2804_vm13, %v2353_v50, %v1121_v58 }
 0xfb3   :  { %1126 = vrot.lane.b32.xlu0 %v1123_v51, %s2481_s5  ;;  %v1124_v37 = vmul.f32 %v1123_v51, %v2984_v56 }
 0xfe3   :  { %v1163_v11 = vpop.f32.mrf.mxu2 }
 0xfe4   :  { %v1166_v30 = vadd.f32 %v1163_v11, %v2794_v63 }
 0xfe6   :  { %v2195_v24 = vmul.f32 -1.442695, %v1166_v30 }
 0xfe8   :  { %2354 = vpow2.f32 %v2195_v24 }
 0xfee   :  { %v2355_v21 = vpop.eup %2354 }
 0xfef   :  { %v1171_v12 = vadd.f32 1.0, %v2355_v21 }
 0xff1   :  { %2356 = vrcp.f32 %v1171_v12  ;;  %v1183_v25 = vand.u32 2147483648, %v1171_v12  ;;  %v1181_v22 = vand.u32 2147483647, %v1171_v12  ;;  %vm1177_vm12 = vweird.f32 %v1171_v12 }
 0xff2   :  { %2358 = vtanh.f32 %v1166_v30 }
 0xff3   :  { %v1184_v28 = vor.u32 1.1754944e-38, %v1183_v25  ;;  %vm1182_vm15 = vcmp.eq.f32.partialorder %v1181_v22, 8.507059e+37 }
 0xff7   :  { %v2357_v17 = vpop.eup %2356 }
 0xff8   :  { %v1173_v18 = vmul.f32 %v2357_v17, %v1171_v12  ;;  %vm1178_vm9 = vweird.f32 %v2357_v17  ;;  %v2359_v63 = vpop.eup %2358 }
 0xff9   :  { %vm1179_vm14 = vmor %vm1177_vm12, %vm1178_vm9 }
 0xffa   :  { %v1174_v33 = vsub.f32 1.0, %v1173_v18 }
 0xffc   :  { %v1175_v13 = vmul.f32 %v2357_v17, %v1174_v33 }
 0xffe   :  { %v1176_v26 = vadd.f32 %v2357_v17, %v1175_v13 }
0x1000   :  { %v1180_v29 = vsel %vm1179_vm14, %v2357_v17, %v1176_v26 }
0x1001   :  { %v1185_v23 = vsel %vm1182_vm15, %v1184_v28, %v1180_v29 }
0x1002   :  { %v1187_v31 = vsel %vm2804_vm13, %v2359_v63, %v1185_v23 }
0x1003   :  { %1190 = vrot.lane.b32.xlu2 %v1187_v31, %s2481_s5  ;;  %v1188_v54 = vmul.f32 %v1187_v31, %v2989_v44 }
0x1025   :  { %v1127_v15 = vpop.permute.xlu0 %1126 }
0x1026   :  { %v1129_v35 = vmul.f32 %v1127_v15, %v1123_v51 }
0x1028   :  { %1131 = vrot.lane.b32.xlu2 %v1129_v35, %s2482_s21 }
0x105d   :  { %v1191_v6 = vpop.permute.xlu2 %1190 }
0x105e   :  { %v1193_v3 = vmul.f32 %v1191_v6, %v1187_v31 }
0x1060   :  { %1195 = vrot.lane.b32.xlu1 %v1193_v3, %s2482_s21 }
0x1082   :  { %v1132_v39 = vpop.permute.xlu2 %1131 }
0x1083   :  { %v3030_v9 = vadd.f32 %v1132_v39, %v1124_v37 }
0x1085   :  { %2360 = vtanh.f32 %v3030_v9 }
0x108b   :  { %v2361_v53 = vpop.eup %2360 }
0x108c   :  { %1137 = vrot.lane.b32.xlu1 %v2361_v53, %s2481_s5 }
0x10d2   :  { %v1196_v55 = vpop.permute.xlu1 %1195 }
0x10d3   :  { %v3035_v20 = vadd.f32 %v1196_v55, %v1188_v54  ;;  %v1349_v54 = vld [vmem:[%s3341_s9 + $0x38] sm:$0xff]  ;;  %v1348_v55 = vld [vmem:[%s3341_s9 + $0x30] sm:$0xff] }
0x10d4   :  { %1366 = vmatpush.msrb.mxu0 %v1349_v54 }
0x10d5   :  { %2362 = vtanh.f32 %v3035_v20 }
0x10d6   :  { %1367 = vmatpush.msrb.mxu0 %v1348_v55 }
0x10db   :  { %v2363_v34 = vpop.eup %2362 }
0x10dc   :  { %1201 = vrot.lane.b32.xlu0 %v2363_v34, %s2481_s5  ;;  %v1346_v34 = vld [vmem:[%s3341_s9 + $0x20] sm:$0xff] }
0x10fe   :  { %v1138_v60 = vpop.permute.xlu1 %1137 }
0x10ff   :  { %v1140_v56 = vmul.f32 %v1138_v60, %v1123_v51  ;;  %v1345_v60 = vld [vmem:[%s3341_s9 + $0x18] sm:$0xff] }
0x1101   :  { %1206 = vrot.lane.b32.xlu0 %v1140_v56, %s2482_s21  ;;  %v1344_v56 = vld [vmem:[%s3341_s9 + $0x10] sm:$0xff] }
0x114e   :  { %v1202_v43 = vpop.permute.xlu0 %1201 }
0x114f   :  { %v1204_v38 = vmul.f32 %v1202_v43, %v1187_v31  ;;  %v1343_v43 = vld [vmem:[%s3341_s9 + $0x8] sm:$0xff] }
0x1151   :  { %1270 = vrot.lane.b32.xlu2 %v1204_v38, %s2482_s21  ;;  %v1342_v38 = vld [vmem:[%s3341_s9] sm:$0xff] }
0x1173   :  { %v1207_v45 = vpop.permute.xlu0 %1206 }
0x1174   :  { %2196 = vmatmul.msk.f32.vlgmr.msra.gmra.mxu0 %vm120_vm0, %v1207_v45 }
0x11ab   :  { %v1271_v44 = vpop.permute.xlu2 %1270 }
0x11ac   :  { %2198 = vmatmul.msk.f32.vlgmr.msrb.gmra.mxu3 %vm120_vm0, %v1271_v44 }
0x11f1   :  { %v1227_v61 = vpop.f32.mrf.mxu0 }
0x11f2   :  { %v1230_v19 = vadd.f32 %v1227_v61, %v2828_v36 }
0x11f4   :  { %v2197_v0 = vmul.f32 -1.442695, %v1230_v19 }
0x11f6   :  { %2364 = vpow2.f32 %v2197_v0  ;;  %v1432_v0 = vld [vmem:[%s3343_s12] sm:$0xff] }
0x11fc   :  { %v2365_v47 = vpop.eup %2364 }
0x11fd   :  { %v1235_v5 = vadd.f32 1.0, %v2365_v47  ;;  %v3098_v47 = vld [vmem:[%s3342_s13 + $0x10] sm:$0xff] }
0x11ff   :  { %2366 = vrcp.f32 %v1235_v5  ;;  %v1247_v2 = vand.u32 2147483648, %v1235_v5  ;;  %v1245_v7 = vand.u32 2147483647, %v1235_v5  ;;  %vm1241_vm2 = vweird.f32 %v1235_v5 }
0x1200   :  { %2368 = vtanh.f32 %v1230_v19  ;;  %v3090_v19 = vld [vmem:[%s3342_s13 + $0x18] sm:$0xff] }
0x1201   :  { %v1248_v41 = vor.u32 1.1754944e-38, %v1247_v2  ;;  %vm1246_vm4 = vcmp.eq.f32.partialorder %v1245_v7, 8.507059e+37  ;;  %1478 = vmatpush.msra.mxu3 %v3090_v19  ;;  %1673 = vmatpush.msra.mxu1 %v3090_v19 }
0x1203   :  { %1479 = vmatpush.msra.mxu3 %v3098_v47  ;;  %1674 = vmatpush.msra.mxu1 %v3098_v47 }
0x1205   :  { %v2367_v27 = vpop.eup %2366 }
0x1206   :  { %v1237_v62 = vmul.f32 %v2367_v27, %v1235_v5  ;;  %vm1242_vm1 = vweird.f32 %v2367_v27  ;;  %v2369_v36 = vpop.eup %2368  ;;  %v3104_v5 = vld [vmem:[%s3342_s13 + $0x8] sm:$0xff] }
0x1207   :  { %vm1243_vm3 = vmor %vm1241_vm2, %vm1242_vm1  ;;  %1480 = vmatpush.msra.mxu3 %v3104_v5  ;;  %1675 = vmatpush.msra.mxu1 %v3104_v5 }
0x1208   :  { %v1238_v1 = vsub.f32 1.0, %v1237_v62 }
0x120a   :  { %v1239_v4 = vmul.f32 %v2367_v27, %v1238_v1 }
0x120c   :  { %v1240_v40 = vadd.f32 %v2367_v27, %v1239_v4 }
0x120e   :  { %v1244_v42 = vsel %vm1243_vm3, %v2367_v27, %v1240_v40  ;;  %v2249_v27 = vld [vmem:[%s3340_s10] ss:$0 sm:$0xff] }
0x120f   :  { %v1249_v46 = vsel %vm1246_vm4, %v1248_v41, %v1244_v42  ;;  %v3123_v40 = vld [vmem:[%s3342_s13] sm:$0xff] }
0x1210   :  { %v1251_v48 = vsel %vm2804_vm13, %v2369_v36, %v1249_v46  ;;  %1481 = vmatpush.msra.mxu3 %v3123_v40  ;;  %1676 = vmatpush.msra.mxu1 %v3123_v40  ;;  %v2250_v46 = vld [vmem:[%s3345_s14] ss:$0 sm:$0xff] }
0x1211   :  { %1254 = vrot.lane.b32.xlu1 %v1251_v48, %s2481_s5  ;;  %v1252_v29 = vmul.f32 %v1251_v48, %v3030_v9  ;;  %1482 = vmatmul.f32.vlgmr.msra.gmra.mxu3 %v2480_v16  ;;  %v1379_v16 = vld [vmem:[%s3346_s1] sm:$0xff] }
0x1212   :  { %1608 = vmatpush.msrb.mxu3 %v3090_v19  ;;  %1868 = vmatpush.msrb.mxu1 %v3090_v19 }
0x1214   :  { %1609 = vmatpush.msrb.mxu3 %v3098_v47  ;;  %1869 = vmatpush.msrb.mxu1 %v3098_v47 }
0x1216   :  { %1610 = vmatpush.msrb.mxu3 %v3104_v5  ;;  %1870 = vmatpush.msrb.mxu1 %v3104_v5 }
0x1218   :  { %1611 = vmatpush.msrb.mxu3 %v3123_v40  ;;  %1871 = vmatpush.msrb.mxu1 %v3123_v40 }
0x121a   :  { %1803 = vmatpush.msra.mxu3 %v3090_v19 }
0x121c   :  { %1804 = vmatpush.msra.mxu3 %v3098_v47 }
0x121e   :  { %1805 = vmatpush.msra.mxu3 %v3104_v5 }
0x1220   :  { %1806 = vmatpush.msra.mxu3 %v3123_v40 }
0x122f   :  { %v1291_v8 = vpop.f32.mrf.mxu3 }
0x1230   :  { %v1294_v32 = vadd.f32 %v1291_v8, %v282_v49  ;;  %v1408_v49 = vpop.f32.mrf.mxu2 }
0x1232   :  { %v2199_v52 = vmul.f32 -1.442695, %v1294_v32 }
0x1234   :  { %2370 = vpow2.f32 %v2199_v52 }
0x123a   :  { %v2371_v14 = vpop.eup %2370 }
0x123b   :  { %v1299_v50 = vadd.f32 1.0, %v2371_v14 }
0x123d   :  { %2372 = vrcp.f32 %v1299_v50  ;;  %v1311_v30 = vand.u32 2147483648, %v1299_v50  ;;  %v1309_v21 = vand.u32 2147483647, %v1299_v50  ;;  %vm1305_vm6 = vweird.f32 %v1299_v50 }
0x123e   :  { %2374 = vtanh.f32 %v1294_v32 }
0x123f   :  { %v1312_v17 = vor.u32 1.1754944e-38, %v1311_v30  ;;  %vm1310_vm8 = vcmp.eq.f32.partialorder %v1309_v21, 8.507059e+37 }
0x1243   :  { %v2373_v58 = vpop.eup %2372 }
0x1244   :  { %v1301_v51 = vmul.f32 %v2373_v58, %v1299_v50  ;;  %vm1306_vm5 = vweird.f32 %v2373_v58  ;;  %v2375_v18 = vpop.eup %2374 }
0x1245   :  { %vm1307_vm7 = vmor %vm1305_vm6, %vm1306_vm5 }
0x1246   :  { %v1302_v11 = vsub.f32 1.0, %v1301_v51 }
0x1248   :  { %v1303_v24 = vmul.f32 %v2373_v58, %v1302_v11 }
0x124a   :  { %v1304_v12 = vadd.f32 %v2373_v58, %v1303_v24 }
0x124c   :  { %v1308_v57 = vsel %vm1307_vm7, %v2373_v58, %v1304_v12 }
0x124d   :  { %v1313_v33 = vsel %vm1310_vm8, %v1312_v17, %v1308_v57 }
0x124e   :  { %v1315_v25 = vsel %vm2804_vm13, %v2375_v18, %v1313_v33 }
0x124f   :  { %1318 = vrot.lane.b32.xlu2 %v1315_v25, %s2481_s5  ;;  %v1316_v15 = vmul.f32 %v1315_v25, %v3035_v20  ;;  %v1347_v20 = vld [vmem:[%s3341_s9 + $0x28] sm:$0xff] }
0x1250   :  { %1368 = vmatpush.msrb.mxu0 %v1347_v20 }
0x1252   :  { %1369 = vmatpush.msrb.mxu0 %v1346_v34 }
0x1254   :  { %1370 = vmatpush.msrb.mxu0 %v1345_v60 }
0x1256   :  { %1371 = vmatpush.msrb.mxu0 %v1344_v56 }
0x1258   :  { %1372 = vmatpush.msrb.mxu0 %v1343_v43 }
0x125a   :  { %1373 = vmatpush.msrb.mxu0 %v1342_v38 }
0x125c   :  { %1456 = vmatpush.msra.mxu0 %v1432_v0 }
0x1283   :  { %v1255_v13 = vpop.permute.xlu1 %1254 }
0x1284   :  { %v1257_v22 = vmul.f32 %v1255_v13, %v1251_v48 }
0x1286   :  { %1259 = vrot.lane.b32.xlu0 %v1257_v22, %s2482_s21 }
0x1294   :  { %v1483_v8 = vpop.f32.mrf.mxu3 }
0x12a9   :  { %v1319_v26 = vpop.permute.xlu2 %1318 }
0x12aa   :  { %v1321_v28 = vmul.f32 %v1319_v26, %v1315_v25 }
0x12ac   :  { %1323 = vrot.lane.b32.xlu1 %v1321_v28, %s2482_s21 }
0x12f8   :  { %v1260_v63 = vpop.permute.xlu0 %1259 }
0x12f9   :  { %v1262_v23 = vadd.f32 %v1260_v63, %v1252_v29 }
0x12fb   :  { %2376 = vtanh.f32 %v1262_v23 }
0x1301   :  { %v2377_v31 = vpop.eup %2376 }
0x1302   :  { %1265 = vrot.lane.b32.xlu2 %v2377_v31, %s2481_s5 }
0x131e   :  { %v1324_v35 = vpop.permute.xlu1 %1323 }
0x131f   :  { %v1326_v6 = vadd.f32 %v1324_v35, %v1316_v15 }
0x1321   :  { %2378 = vtanh.f32 %v1326_v6  ;;  %v1411_v6 = vpop.f32.mrf.mxu2 }
0x1327   :  { %v2379_v3 = vpop.eup %2378 }
0x1328   :  { %1329 = vrot.lane.b32.xlu0 %v2379_v3, %s2481_s5 }
0x135c   :  { %v1266_v37 = vpop.permute.xlu2 %1265 }
0x135d   :  { %v1268_v39 = vmul.f32 %v1266_v37, %v1251_v48 }
0x135f   :  { %1334 = vrot.lane.b32.xlu1 %v1268_v39, %s2482_s21 }
0x139a   :  { %v1330_v53 = vpop.permute.xlu0 %1329 }
0x139b   :  { %v1332_v9 = vmul.f32 %v1330_v53, %v1315_v25 }
0x139d   :  { %1338 = vrot.lane.b32.xlu2 %v1332_v9, %s2481_s5 }
0x13d1   :  { %v1335_v45 = vpop.permute.xlu1 %1334 }
0x13f7   :  { %v1339_v44 = vpop.permute.xlu2 %1338 }
0x13f8   :  { %v1341_v61 = vsel %vm120_vm0, %v1335_v45, %v1339_v44 }
0x13f9   :  { %2200 = vmatmul.msk.f32.vlgmr.msrb.gmra.mxu0 %vm1354_vm10, %v1341_v61 }
0x13fa   :  { %1543 = vmatpush.msrb.mxu0 %v3090_v19 }
0x13fc   :  { %1544 = vmatpush.msrb.mxu0 %v3098_v47 }
0x13fe   :  { %1545 = vmatpush.msrb.mxu0 %v3104_v5 }
0x1400   :  { %1546 = vmatpush.msrb.mxu0 %v3123_v40 }
0x1476   :  { %v1375_v62 = vpop.f32.mrf.mxu0 }
0x1477   :  { %v1376_v1 = vadd.f32 %v2249_v27, %v1375_v62 }
0x1479   :  { %1378 = vst [vmem:[%s3344_s17] sm:$0xff] %v1376_v1  ;;  %v1380_v2 = vmul.f32 0.5, %v1376_v1 }
0x147b   :  { %v1381_v4 = vmul.f32 1.442695, %v1380_v2 }
0x147d   :  { %2380 = vpow2.f32 %v1381_v4 }
0x1483   :  { %v2381_v7 = vpop.eup %2380 }
0x1484   :  { %1384 = vrot.lane.b32.xlu0 %v2381_v7, %s2483_s30 }
0x14f6   :  { %v1385_v41 = vpop.permute.xlu0 %1384 }
0x14f7   :  { %v1387_v42 = vmul.f32 %v1385_v41, %v1379_v16  ;;  %v1414_v16 = vpop.f32.mrf.mxu2 }
0x14f9   :  { %v1388_v36 = vadd.f32 %v1387_v42, %v1376_v1 }
0x14fb   :  { %2209 = vmatmul.msk.f32.vlgmr.msra.gmra.mxu0 %vm1437_vm11, %v1388_v36 }
0x14fc   :  { %1738 = vmatpush.msra.mxu0 %v3090_v19 }
0x14fe   :  { %1739 = vmatpush.msra.mxu0 %v3098_v47 }
0x1500   :  { %1740 = vmatpush.msra.mxu0 %v3104_v5 }
0x1502   :  { %1741 = vmatpush.msra.mxu0 %v3123_v40 }
0x1578   :  { %v1458_v48 = vpop.f32.mrf.mxu0 }
0x1579   :  { %v3151_v59 = vadd.f32 %v2250_v46, %v1458_v48 }
0x157b   :  { %v1465_v32 = vadd.f32 %v3151_v59, %v1408_v49  ;;  %v1525_v3 = vadd.f32 %v3151_v59, %v1411_v6  ;;  %v1590_v41 = vadd.f32 %v3151_v59, %v1414_v16 }
0x157d   :  { %v1486_v52 = vadd.f32 %v1483_v8, %v1465_v32 }
0x157f   :  { %v2210_v14 = vmul.f32 -1.442695, %v1486_v52 }
0x1581   :  { %2382 = vpow2.f32 %v2210_v14 }
0x1587   :  { %v2383_v50 = vpop.eup %2382 }
0x1588   :  { %v1491_v58 = vadd.f32 1.0, %v2383_v50 }
0x158a   :  { %2384 = vrcp.f32 %v1491_v58  ;;  %v1503_v24 = vand.u32 2147483648, %v1491_v58  ;;  %v1501_v12 = vand.u32 2147483647, %v1491_v58  ;;  %vm1497_vm12 = vweird.f32 %v1491_v58 }
0x158b   :  { %2386 = vtanh.f32 %v1486_v52 }
0x158c   :  { %v1504_v57 = vor.u32 1.1754944e-38, %v1503_v24  ;;  %vm1502_vm15 = vcmp.eq.f32.partialorder %v1501_v12, 8.507059e+37 }
0x1590   :  { %v2385_v51 = vpop.eup %2384 }
0x1591   :  { %v1493_v11 = vmul.f32 %v2385_v51, %v1491_v58  ;;  %vm1498_vm9 = vweird.f32 %v2385_v51  ;;  %v2387_v33 = vpop.eup %2386 }
0x1592   :  { %vm1499_vm14 = vmor %vm1497_vm12, %vm1498_vm9 }
0x1593   :  { %v1494_v30 = vsub.f32 1.0, %v1493_v11 }
0x1595   :  { %v1495_v21 = vmul.f32 %v2385_v51, %v1494_v30 }
0x1597   :  { %v1496_v17 = vadd.f32 %v2385_v51, %v1495_v21 }
0x1599   :  { %v1500_v18 = vsel %vm1499_vm14, %v2385_v51, %v1496_v17 }
0x159a   :  { %v1505_v25 = vsel %vm1502_vm15, %v1504_v57, %v1500_v18 }
0x159b   :  { %v1507_v13 = vsel %vm2804_vm13, %v2387_v33, %v1505_v25 }
0x159c   :  { %1510 = vrot.lane.b32.xlu1 %v1507_v13, %s2481_s5  ;;  %v1508_v28 = vmul.f32 0.0, %v1507_v13 }
0x160e   :  { %v1511_v22 = vpop.permute.xlu1 %1510 }
0x160f   :  { %v1513_v26 = vmul.f32 %v1511_v22, %v1507_v13 }
0x1611   :  { %1515 = vrot.lane.b32.xlu2 %v1513_v26, %s2482_s21 }
0x166b   :  { %v1516_v29 = vpop.permute.xlu2 %1515 }
0x166c   :  { %v1518_v63 = vadd.f32 %v1516_v29, %v1508_v28  ;;  %v1417_v29 = vpop.f32.mrf.mxu2 }
0x166e   :  { %2388 = vtanh.f32 %v1518_v63 }
0x1674   :  { %v2389_v23 = vpop.eup %2388 }
0x1675   :  { %1521 = vrot.lane.b32.xlu0 %v2389_v23, %s2481_s5 }
0x16e7   :  { %v1522_v31 = vpop.permute.xlu0 %1521 }
0x16e8   :  { %v1524_v15 = vmul.f32 %v1522_v31, %v1507_v13 }
0x16ea   :  { %1527 = vrot.lane.b32.xlu1 %v1524_v15, %s2482_s21 }
0x175c   :  { %v3160_v35 = vpop.permute.xlu1 %1527 }
0x175d   :  { %2211 = vmatmul.msk.f32.vlgmr.msrb.gmra.mxu0 %vm120_vm0, %v3160_v35 }
0x175e   :  { %1933 = vmatpush.msrb.mxu0 %v3090_v19 }
0x1760   :  { %1934 = vmatpush.msrb.mxu0 %v3098_v47 }
0x1762   :  { %1935 = vmatpush.msrb.mxu0 %v3104_v5 }
0x1764   :  { %1936 = vmatpush.msrb.mxu0 %v3123_v40 }
0x17da   :  { %v1548_v37 = vpop.f32.mrf.mxu0 }
0x17db   :  { %v1551_v39 = vadd.f32 %v1548_v37, %v1525_v3 }
0x17dd   :  { %v2212_v53 = vmul.f32 -1.442695, %v1551_v39 }
0x17df   :  { %2390 = vpow2.f32 %v2212_v53 }
0x17e5   :  { %v2391_v9 = vpop.eup %2390 }
0x17e6   :  { %v1556_v54 = vadd.f32 1.0, %v2391_v9 }
0x17e8   :  { %2392 = vrcp.f32 %v1556_v54  ;;  %v1568_v60 = vand.u32 2147483648, %v1556_v54  ;;  %v1566_v43 = vand.u32 2147483647, %v1556_v54  ;;  %vm1562_vm2 = vweird.f32 %v1556_v54 }
0x17e9   :  { %2394 = vtanh.f32 %v1551_v39 }
0x17ea   :  { %v1569_v45 = vor.u32 1.1754944e-38, %v1568_v60  ;;  %vm1567_vm4 = vcmp.eq.f32.partialorder %v1566_v43, 8.507059e+37 }
0x17ee   :  { %v2393_v55 = vpop.eup %2392 }
0x17ef   :  { %v1558_v20 = vmul.f32 %v2393_v55, %v1556_v54  ;;  %vm1563_vm1 = vweird.f32 %v2393_v55  ;;  %v2395_v61 = vpop.eup %2394 }
0x17f0   :  { %vm1564_vm3 = vmor %vm1562_vm2, %vm1563_vm1 }
0x17f1   :  { %v1559_v34 = vsub.f32 1.0, %v1558_v20 }
0x17f3   :  { %v1560_v56 = vmul.f32 %v2393_v55, %v1559_v34 }
0x17f5   :  { %v1561_v38 = vadd.f32 %v2393_v55, %v1560_v56 }
0x17f7   :  { %v1565_v44 = vsel %vm1564_vm3, %v2393_v55, %v1561_v38 }
0x17f8   :  { %v1570_v19 = vsel %vm1567_vm4, %v1569_v45, %v1565_v44 }
0x17f9   :  { %v1572_v0 = vsel %vm2804_vm13, %v2395_v61, %v1570_v19 }
0x17fa   :  { %1575 = vrot.lane.b32.xlu2 %v1572_v0, %s2481_s5  ;;  %v1573_v27 = vmul.f32 %v1572_v0, %v1518_v63  ;;  %v1655_v63 = vadd.f32 %v3151_v59, %v1417_v29 }
0x1854   :  { %v1576_v47 = vpop.permute.xlu2 %1575 }
0x1855   :  { %v1578_v5 = vmul.f32 %v1576_v47, %v1572_v0 }
0x1857   :  { %1580 = vrot.lane.b32.xlu0 %v1578_v5, %s2482_s21 }
0x18c9   :  { %v1581_v62 = vpop.permute.xlu0 %1580 }
0x18ca   :  { %v1583_v1 = vadd.f32 %v1581_v62, %v1573_v27 }
0x18cc   :  { %2396 = vtanh.f32 %v1583_v1 }
0x18d2   :  { %v2397_v2 = vpop.eup %2396 }
0x18d3   :  { %1586 = vrot.lane.b32.xlu1 %v2397_v2, %s2481_s5 }
0x1945   :  { %v1587_v4 = vpop.permute.xlu1 %1586 }
0x1946   :  { %v1589_v7 = vmul.f32 %v1587_v4, %v1572_v0 }
0x1948   :  { %1592 = vrot.lane.b32.xlu2 %v1589_v7, %s2482_s21 }
0x19a2   :  { %v3175_v40 = vpop.permute.xlu2 %1592 }
0x19a3   :  { %2213 = vmatmul.msk.f32.vlgmr.msrb.gmra.mxu3 %vm120_vm0, %v3175_v40 }
0x1a26   :  { %v1613_v42 = vpop.f32.mrf.mxu3 }
0x1a27   :  { %v1616_v36 = vadd.f32 %v1613_v42, %v1590_v41 }
0x1a29   :  { %v2214_v46 = vmul.f32 -1.442695, %v1616_v36 }
0x1a2b   :  { %2398 = vpow2.f32 %v2214_v46 }
0x1a31   :  { %v2399_v48 = vpop.eup %2398 }
0x1a32   :  { %v1621_v49 = vadd.f32 1.0, %v2399_v48 }
0x1a34   :  { %2400 = vrcp.f32 %v1621_v49  ;;  %v1633_v14 = vand.u32 2147483648, %v1621_v49  ;;  %v1631_v58 = vand.u32 2147483647, %v1621_v49  ;;  %vm1627_vm6 = vweird.f32 %v1621_v49 }
0x1a35   :  { %2402 = vtanh.f32 %v1616_v36 }
0x1a36   :  { %v1634_v11 = vor.u32 1.1754944e-38, %v1633_v14  ;;  %vm1632_vm8 = vcmp.eq.f32.partialorder %v1631_v58, 8.507059e+37 }
0x1a3a   :  { %v2401_v8 = vpop.eup %2400 }
0x1a3b   :  { %v1623_v32 = vmul.f32 %v2401_v8, %v1621_v49  ;;  %vm1628_vm5 = vweird.f32 %v2401_v8  ;;  %v2403_v24 = vpop.eup %2402 }
0x1a3c   :  { %vm1629_vm7 = vmor %vm1627_vm6, %vm1628_vm5 }
0x1a3d   :  { %v1624_v52 = vsub.f32 1.0, %v1623_v32 }
0x1a3f   :  { %v1625_v50 = vmul.f32 %v2401_v8, %v1624_v52 }
0x1a41   :  { %v1626_v51 = vadd.f32 %v2401_v8, %v1625_v50 }
0x1a43   :  { %v1630_v30 = vsel %vm1629_vm7, %v2401_v8, %v1626_v51 }
0x1a44   :  { %v1635_v21 = vsel %vm1632_vm8, %v1634_v11, %v1630_v30 }
0x1a45   :  { %v1637_v12 = vsel %vm2804_vm13, %v2403_v24, %v1635_v21 }
0x1a46   :  { %1640 = vrot.lane.b32.xlu0 %v1637_v12, %s2481_s5  ;;  %v1638_v18 = vmul.f32 %v1637_v12, %v1583_v1  ;;  %v1420_v1 = vpop.f32.mrf.mxu2 }
0x1a47   :  { %v1720_v2 = vadd.f32 %v3151_v59, %v1420_v1 }
0x1ab8   :  { %v1641_v17 = vpop.permute.xlu0 %1640 }
0x1ab9   :  { %v1643_v57 = vmul.f32 %v1641_v17, %v1637_v12 }
0x1abb   :  { %1645 = vrot.lane.b32.xlu1 %v1643_v57, %s2482_s21 }
0x1b2d   :  { %v1646_v33 = vpop.permute.xlu1 %1645 }
0x1b2e   :  { %v1648_v25 = vadd.f32 %v1646_v33, %v1638_v18 }
0x1b30   :  { %2404 = vtanh.f32 %v1648_v25 }
0x1b36   :  { %v2405_v13 = vpop.eup %2404 }
0x1b37   :  { %1651 = vrot.lane.b32.xlu2 %v2405_v13, %s2481_s5  ;;  %v1982_v13 = vld [vmem:[%s3347_s15 + $0x10] sm:$0xff] }
0x1b91   :  { %v1652_v22 = vpop.permute.xlu2 %1651 }
0x1b92   :  { %v1654_v26 = vmul.f32 %v1652_v22, %v1637_v12  ;;  %v1981_v22 = vld [vmem:[%s3347_s15 + $0x8] sm:$0xff] }
0x1b94   :  { %1657 = vrot.lane.b32.xlu0 %v1654_v26, %s2482_s21  ;;  %v1980_v26 = vld [vmem:[%s3347_s15] sm:$0xff] }
0x1c06   :  { %v3186_v28 = vpop.permute.xlu0 %1657 }
0x1c07   :  { %2215 = vmatmul.msk.f32.vlgmr.msra.gmra.mxu1 %vm120_vm0, %v3186_v28 }
0x1c84   :  { %v1678_v23 = vpop.f32.mrf.mxu1 }
0x1c85   :  { %v1681_v31 = vadd.f32 %v1678_v23, %v1655_v63  ;;  %v1423_v63 = vpop.f32.mrf.mxu2 }
0x1c86   :  { %v1785_v23 = vadd.f32 %v3151_v59, %v1423_v63 }
0x1c87   :  { %v2216_v15 = vmul.f32 -1.442695, %v1681_v31 }
0x1c89   :  { %2406 = vpow2.f32 %v2216_v15 }
0x1c8f   :  { %v2407_v6 = vpop.eup %2406 }
0x1c90   :  { %v1686_v3 = vadd.f32 1.0, %v2407_v6 }
0x1c92   :  { %2408 = vrcp.f32 %v1686_v3  ;;  %v1698_v9 = vand.u32 2147483648, %v1686_v3  ;;  %v1696_v55 = vand.u32 2147483647, %v1686_v3  ;;  %vm1692_vm11 = vweird.f32 %v1686_v3 }
0x1c93   :  { %2410 = vtanh.f32 %v1681_v31 }
0x1c94   :  { %v1699_v34 = vor.u32 1.1754944e-38, %v1698_v9  ;;  %vm1697_vm12 = vcmp.eq.f32.partialorder %v1696_v55, 8.507059e+37 }
0x1c98   :  { %v2409_v37 = vpop.eup %2408 }
0x1c99   :  { %v1688_v39 = vmul.f32 %v2409_v37, %v1686_v3  ;;  %vm1693_vm10 = vweird.f32 %v2409_v37  ;;  %v2411_v56 = vpop.eup %2410 }
0x1c9a   :  { %vm1694_vm9 = vmor %vm1692_vm11, %vm1693_vm10 }
0x1c9b   :  { %v1689_v53 = vsub.f32 1.0, %v1688_v39 }
0x1c9d   :  { %v1690_v54 = vmul.f32 %v2409_v37, %v1689_v53 }
0x1c9f   :  { %v1691_v20 = vadd.f32 %v2409_v37, %v1690_v54 }
0x1ca1   :  { %v1695_v60 = vsel %vm1694_vm9, %v2409_v37, %v1691_v20 }
0x1ca2   :  { %v1700_v43 = vsel %vm1697_vm12, %v1699_v34, %v1695_v60 }
0x1ca3   :  { %v1702_v38 = vsel %vm2804_vm13, %v2411_v56, %v1700_v43 }
0x1ca4   :  { %1705 = vrot.lane.b32.xlu1 %v1702_v38, %s2481_s5  ;;  %v1703_v61 = vmul.f32 %v1702_v38, %v1648_v25  ;;  %v1983_v25 = vld [vmem:[%s3347_s15 + $0x18] sm:$0xff] }
0x1ca5   :  { %2235 = vmatpush.msrb.mxu3 %v1983_v25  ;;  %2005 = vmatpush.msra.mxu1 %v1983_v25 }
0x1ca7   :  { %2236 = vmatpush.msrb.mxu3 %v1982_v13  ;;  %2006 = vmatpush.msra.mxu1 %v1982_v13 }
0x1ca9   :  { %2237 = vmatpush.msrb.mxu3 %v1981_v22  ;;  %2007 = vmatpush.msra.mxu1 %v1981_v22 }
0x1cab   :  { %2238 = vmatpush.msrb.mxu3 %v1980_v26  ;;  %2008 = vmatpush.msra.mxu1 %v1980_v26 }
0x1d16   :  { %v1706_v45 = vpop.permute.xlu1 %1705 }
0x1d17   :  { %v1708_v44 = vmul.f32 %v1706_v45, %v1702_v38 }
0x1d19   :  { %1710 = vrot.lane.b32.xlu2 %v1708_v44, %s2482_s21 }
0x1d73   :  { %v1711_v19 = vpop.permute.xlu2 %1710 }
0x1d74   :  { %v1713_v0 = vadd.f32 %v1711_v19, %v1703_v61 }
0x1d76   :  { %2412 = vtanh.f32 %v1713_v0 }
0x1d7c   :  { %v2413_v47 = vpop.eup %2412 }
0x1d7d   :  { %1716 = vrot.lane.b32.xlu0 %v2413_v47, %s2481_s5 }
0x1def   :  { %v1717_v5 = vpop.permute.xlu0 %1716 }
0x1df0   :  { %v1719_v27 = vmul.f32 %v1717_v5, %v1702_v38 }
0x1df2   :  { %1722 = vrot.lane.b32.xlu1 %v1719_v27, %s2482_s21 }
0x1e64   :  { %v3197_v62 = vpop.permute.xlu1 %1722 }
0x1e65   :  { %2217 = vmatmul.msk.f32.vlgmr.msra.gmra.mxu0 %vm120_vm0, %v3197_v62 }
0x1ee2   :  { %v1743_v4 = vpop.f32.mrf.mxu0 }
0x1ee3   :  { %v1746_v7 = vadd.f32 %v1743_v4, %v1720_v2  ;;  %v1426_v4 = vpop.f32.mrf.mxu2 }
0x1ee5   :  { %v2218_v16 = vmul.f32 -1.442695, %v1746_v7 }
0x1ee7   :  { %2414 = vpow2.f32 %v2218_v16 }
0x1eed   :  { %v2415_v41 = vpop.eup %2414 }
0x1eee   :  { %v1751_v42 = vadd.f32 1.0, %v2415_v41 }
0x1ef0   :  { %2416 = vrcp.f32 %v1751_v42  ;;  %v1763_v49 = vand.u32 2147483648, %v1751_v42  ;;  %v1761_v32 = vand.u32 2147483647, %v1751_v42  ;;  %vm1757_vm15 = vweird.f32 %v1751_v42 }
0x1ef1   :  { %2418 = vtanh.f32 %v1746_v7  ;;  %v1850_v7 = vadd.f32 %v3151_v59, %v1426_v4 }
0x1ef2   :  { %v1764_v14 = vor.u32 1.1754944e-38, %v1763_v49  ;;  %vm1762_vm2 = vcmp.eq.f32.partialorder %v1761_v32, 8.507059e+37 }
0x1ef6   :  { %v2417_v36 = vpop.eup %2416 }
0x1ef7   :  { %v1753_v46 = vmul.f32 %v2417_v36, %v1751_v42  ;;  %vm1758_vm14 = vweird.f32 %v2417_v36  ;;  %v2419_v58 = vpop.eup %2418 }
0x1ef8   :  { %vm1759_vm1 = vmor %vm1757_vm15, %vm1758_vm14 }
0x1ef9   :  { %v1754_v48 = vsub.f32 1.0, %v1753_v46 }
0x1efb   :  { %v1755_v8 = vmul.f32 %v2417_v36, %v1754_v48 }
0x1efd   :  { %v1756_v52 = vadd.f32 %v2417_v36, %v1755_v8 }
0x1eff   :  { %v1760_v50 = vsel %vm1759_vm1, %v2417_v36, %v1756_v52 }
0x1f00   :  { %v1765_v51 = vsel %vm1762_vm2, %v1764_v14, %v1760_v50 }
0x1f01   :  { %v1767_v11 = vsel %vm2804_vm13, %v2419_v58, %v1765_v51 }
0x1f02   :  { %1770 = vrot.lane.b32.xlu2 %v1767_v11, %s2481_s5  ;;  %v1768_v21 = vmul.f32 %v1767_v11, %v1713_v0 }
0x1f5c   :  { %v1771_v30 = vpop.permute.xlu2 %1770 }
0x1f5d   :  { %v1773_v24 = vmul.f32 %v1771_v30, %v1767_v11 }
0x1f5f   :  { %1775 = vrot.lane.b32.xlu0 %v1773_v24, %s2482_s21 }
0x1fd1   :  { %v1776_v12 = vpop.permute.xlu0 %1775 }
0x1fd2   :  { %v1778_v17 = vadd.f32 %v1776_v12, %v1768_v21 }
0x1fd4   :  { %2420 = vtanh.f32 %v1778_v17 }
0x1fda   :  { %v2421_v57 = vpop.eup %2420 }
0x1fdb   :  { %1781 = vrot.lane.b32.xlu1 %v2421_v57, %s2481_s5 }
0x204d   :  { %v1782_v18 = vpop.permute.xlu1 %1781 }
0x204e   :  { %v1784_v33 = vmul.f32 %v1782_v18, %v1767_v11 }
0x2050   :  { %1787 = vrot.lane.b32.xlu2 %v1784_v33, %s2482_s21  ;;  %v1429_v33 = vpop.f32.mrf.mxu2 }
0x2051   :  { %v1915_v25 = vadd.f32 %v3151_v59, %v1429_v33 }
0x20aa   :  { %v1788_v29 = vpop.permute.xlu2 %1787 }
0x20ab   :  { %2219 = vmatmul.msk.f32.vlgmr.msra.gmra.mxu3 %vm120_vm0, %v1788_v29 }
0x20b3   :  { %2229 = vmatmul.msk.f32.vlgmr.msrb.gmra.mxu3 %vm120_vm0, %v1788_v29 }
0x212e   :  { %v1808_v31 = vpop.f32.mrf.mxu3 }
0x212f   :  { %v1811_v15 = vadd.f32 %v1808_v31, %v1785_v23 }
0x2131   :  { %v2220_v6 = vmul.f32 -1.442695, %v1811_v15 }
0x2133   :  { %2422 = vpow2.f32 %v2220_v6 }
0x2139   :  { %v2423_v3 = vpop.eup %2422 }
0x213a   :  { %v1816_v37 = vadd.f32 1.0, %v2423_v3 }
0x213c   :  { %2424 = vrcp.f32 %v1816_v37  ;;  %v1828_v54 = vand.u32 2147483648, %v1816_v37  ;;  %v1826_v20 = vand.u32 2147483647, %v1816_v37  ;;  %vm1822_vm4 = vweird.f32 %v1816_v37 }
0x213d   :  { %2426 = vtanh.f32 %v1811_v15 }
0x213e   :  { %v1829_v60 = vor.u32 1.1754944e-38, %v1828_v54  ;;  %vm1827_vm6 = vcmp.eq.f32.partialorder %v1826_v20, 8.507059e+37 }
0x2142   :  { %v2425_v39 = vpop.eup %2424 }
0x2143   :  { %v1818_v53 = vmul.f32 %v2425_v39, %v1816_v37  ;;  %vm1823_vm3 = vweird.f32 %v2425_v39  ;;  %v2427_v43 = vpop.eup %2426 }
0x2144   :  { %vm1824_vm5 = vmor %vm1822_vm4, %vm1823_vm3 }
0x2145   :  { %v1819_v9 = vsub.f32 1.0, %v1818_v53 }
0x2147   :  { %v1820_v55 = vmul.f32 %v2425_v39, %v1819_v9 }
0x2149   :  { %v1821_v34 = vadd.f32 %v2425_v39, %v1820_v55 }
0x214b   :  { %v1825_v56 = vsel %vm1824_vm5, %v2425_v39, %v1821_v34 }
0x214c   :  { %v1830_v38 = vsel %vm1827_vm6, %v1829_v60, %v1825_v56  ;;  %v3256_v56 = vld [vmem:[%s3348_s16] ss:$0 sm:$0xff] }
0x214d   :  { %v1832_v45 = vsel %vm2804_vm13, %v2427_v43, %v1830_v38  ;;  %v2022_v38 = vpop.f32.mrf.mxu3 }
0x214e   :  { %1835 = vrot.lane.b32.xlu0 %v1832_v45, %s2481_s5  ;;  %v1833_v19 = vmul.f32 %v1832_v45, %v1778_v17 }
0x21c0   :  { %v1836_v44 = vpop.permute.xlu0 %1835 }
0x21c1   :  { %v1838_v61 = vmul.f32 %v1836_v44, %v1832_v45 }
0x21c3   :  { %1840 = vrot.lane.b32.xlu1 %v1838_v61, %s2482_s21 }
0x2235   :  { %v1841_v0 = vpop.permute.xlu1 %1840 }
0x2236   :  { %v1843_v47 = vadd.f32 %v1841_v0, %v1833_v19 }
0x2238   :  { %2428 = vtanh.f32 %v1843_v47 }
0x223e   :  { %v2429_v5 = vpop.eup %2428 }
0x223f   :  { %1846 = vrot.lane.b32.xlu2 %v2429_v5, %s2481_s5 }
0x2299   :  { %v1847_v27 = vpop.permute.xlu2 %1846 }
0x229a   :  { %v1849_v1 = vmul.f32 %v1847_v27, %v1832_v45  ;;  %v3260_v45 = vadd.f32 %v3256_v56, %v2022_v38 }
0x229c   :  { %1852 = vrot.lane.b32.xlu0 %v1849_v1, %s2482_s21 }
0x230e   :  { %v1853_v2 = vpop.permute.xlu0 %1852 }
0x230f   :  { %2221 = vmatmul.msk.f32.vlgmr.msrb.gmra.mxu1 %vm120_vm0, %v1853_v2  ;;  %2230 = vmatmul.msk.f32.gmra.mxu3 %vm120_vm0, %v1853_v2 }
0x2317   :  { %2225 = vmatmul.msk.f32.vlgmr.msra.gmra.mxu1 %vm120_vm0, %v3160_v35 }
0x231f   :  { %2226 = vmatmul.msk.f32.gmra.mxu1 %vm120_vm0, %v3175_v40 }
0x2327   :  { %2227 = vmatmul.msk.f32.gmra.mxu1 %vm120_vm0, %v3186_v28 }
0x232f   :  { %2228 = vmatmul.msk.f32.gmra.mxu1 %vm120_vm0, %v3197_v62 }
0x238c   :  { %v1873_v16 = vpop.f32.mrf.mxu1 }
0x238d   :  { %v1876_v41 = vadd.f32 %v1873_v16, %v1850_v7 }
0x238f   :  { %v2222_v42 = vmul.f32 -1.442695, %v1876_v41 }
0x2391   :  { %2430 = vpow2.f32 %v2222_v42 }
0x2392   :  { %v2025_v1 = vpop.f32.mrf.mxu3 }
0x2393   :  { %v3269_v4 = vadd.f32 %v3256_v56, %v2025_v1 }
0x2394   :  { %v2010_v60 = vpop.f32.mrf.mxu1 }
0x2395   :  { %v2011_v43 = vadd.f32 %v3256_v56, %v2010_v60 }
0x2397   :  { %v2431_v36 = vpop.eup %2430 }
0x2398   :  { %v1881_v46 = vadd.f32 1.0, %v2431_v36 }
0x239a   :  { %2432 = vrcp.f32 %v1881_v46  ;;  %v1893_v40 = vand.u32 2147483648, %v1881_v46  ;;  %v1891_v28 = vand.u32 2147483647, %v1881_v46  ;;  %vm1887_vm8 = vweird.f32 %v1881_v46 }
0x239b   :  { %2434 = vtanh.f32 %v1876_v41 }
0x239c   :  { %v1894_v62 = vor.u32 1.1754944e-38, %v1893_v40  ;;  %vm1892_vm11 = vcmp.eq.f32.partialorder %v1891_v28, 8.507059e+37  ;;  %v2013_v0 = vpop.f32.mrf.mxu1 }
0x23a0   :  { %v2433_v35 = vpop.eup %2432 }
0x23a1   :  { %v1883_v48 = vmul.f32 %v2433_v35, %v1881_v46  ;;  %vm1888_vm7 = vweird.f32 %v2433_v35  ;;  %v2435_v14 = vpop.eup %2434 }
0x23a2   :  { %vm1889_vm10 = vmor %vm1887_vm8, %vm1888_vm7 }
0x23a3   :  { %v1884_v49 = vsub.f32 1.0, %v1883_v48 }
0x23a4   :  { %v2016_v42 = vpop.f32.mrf.mxu1 }
0x23a5   :  { %v1885_v8 = vmul.f32 %v2433_v35, %v1884_v49  ;;  %v3274_v36 = vadd.f32 %v3256_v56, %v2016_v42 }
0x23a7   :  { %v1886_v32 = vadd.f32 %v2433_v35, %v1885_v8 }
0x23a9   :  { %v1890_v52 = vsel %vm1889_vm10, %v2433_v35, %v1886_v32 }
0x23aa   :  { %v1895_v50 = vsel %vm1892_vm11, %v1894_v62, %v1890_v52 }
0x23ab   :  { %v1897_v58 = vsel %vm2804_vm13, %v2435_v14, %v1895_v50 }
0x23ac   :  { %1900 = vrot.lane.b32.xlu1 %v1897_v58, %s2481_s5  ;;  %v1898_v30 = vmul.f32 %v1897_v58, %v1843_v47  ;;  %v3265_v47 = vadd.f32 %v3256_v56, %v2013_v0  ;;  %v2019_v35 = vpop.f32.mrf.mxu1 }
0x23ad   :  { %v3278_v48 = vadd.f32 %v3256_v56, %v2019_v35 }
0x241e   :  { %v1901_v51 = vpop.permute.xlu1 %1900 }
0x241f   :  { %v1903_v11 = vmul.f32 %v1901_v51, %v1897_v58 }
0x2421   :  { %1905 = vrot.lane.b32.xlu2 %v1903_v11, %s2482_s21 }
0x247b   :  { %v1906_v24 = vpop.permute.xlu2 %1905 }
0x247c   :  { %v1908_v21 = vadd.f32 %v1906_v24, %v1898_v30 }
0x247e   :  { %2436 = vtanh.f32 %v1908_v21 }
0x2484   :  { %v2437_v12 = vpop.eup %2436 }
0x2485   :  { %1911 = vrot.lane.b32.xlu0 %v2437_v12, %s2481_s5 }
0x24f7   :  { %v1912_v17 = vpop.permute.xlu0 %1911 }
0x24f8   :  { %v1914_v57 = vmul.f32 %v1912_v17, %v1897_v58 }
0x24fa   :  { %1917 = vrot.lane.b32.xlu1 %v1914_v57, %s2482_s21 }
0x256c   :  { %v1918_v18 = vpop.permute.xlu1 %1917 }
0x256d   :  { %2223 = vmatmul.msk.f32.vlgmr.msrb.gmra.mxu0 %vm120_vm0, %v1918_v18  ;;  %2231 = vmatmul.msk.f32.gmra.mxu3 %vm120_vm0, %v1918_v18 }
0x25ea   :  { %v1938_v13 = vpop.f32.mrf.mxu0 }
0x25eb   :  { %v1941_v22 = vadd.f32 %v1938_v13, %v1915_v25 }
0x25ed   :  { %v2224_v26 = vmul.f32 -1.442695, %v1941_v22 }
0x25ef   :  { %2438 = vpow2.f32 %v2224_v26 }
0x25f0   :  { %v2028_v8 = vpop.f32.mrf.mxu3 }
0x25f1   :  { %v3285_v32 = vadd.f32 %v3256_v56, %v2028_v8 }
0x25f5   :  { %v2439_v29 = vpop.eup %2438 }
0x25f6   :  { %v1946_v63 = vadd.f32 1.0, %v2439_v29 }
0x25f8   :  { %2440 = vrcp.f32 %v1946_v63  ;;  %v1958_v6 = vand.u32 2147483648, %v1946_v63  ;;  %v1956_v37 = vand.u32 2147483647, %v1946_v63  ;;  %vm1952_vm12 = vweird.f32 %v1946_v63 }
0x25f9   :  { %2442 = vtanh.f32 %v1941_v22 }
0x25fa   :  { %v1959_v53 = vor.u32 1.1754944e-38, %v1958_v6  ;;  %vm1957_vm15 = vcmp.eq.f32.partialorder %v1956_v37, 8.507059e+37 }
0x25fe   :  { %v2441_v23 = vpop.eup %2440 }
0x25ff   :  { %v1948_v31 = vmul.f32 %v2441_v23, %v1946_v63  ;;  %vm1953_vm9 = vweird.f32 %v2441_v23  ;;  %v2443_v9 = vpop.eup %2442 }
0x2600   :  { %vm1954_vm14 = vmor %vm1952_vm12, %vm1953_vm9 }
0x2601   :  { %v1949_v15 = vsub.f32 1.0, %v1948_v31 }
0x2603   :  { %v1950_v3 = vmul.f32 %v2441_v23, %v1949_v15 }
0x2605   :  { %v1951_v39 = vadd.f32 %v2441_v23, %v1950_v3 }
0x2607   :  { %v1955_v59 = vsel %vm1954_vm14, %v2441_v23, %v1951_v39 }
0x2608   :  { %v1960_v54 = vsel %vm1957_vm15, %v1959_v53, %v1955_v59 }
0x2609   :  { %v1962_v55 = vsel %vm2804_vm13, %v2443_v9, %v1960_v54 }
0x260a   :  { %1965 = vrot.lane.b32.xlu2 %v1962_v55, %s2481_s5  ;;  %v1963_v10 = vmul.f32 %v1962_v55, %v1908_v21 }
0x2664   :  { %v1966_v20 = vpop.permute.xlu2 %1965 }
0x2665   :  { %v1968_v34 = vmul.f32 %v1966_v20, %v1962_v55 }
0x2667   :  { %1970 = vrot.lane.b32.xlu0 %v1968_v34, %s2482_s21 }
0x2691   :  { %2034 = vmax.xlane.f32.xlu0 %v2011_v43 }
0x2699   :  { %2042 = vmax.xlane.f32.xlu0 %v3260_v45 }
0x26d9   :  { %v1971_v44 = vpop.permute.xlu0 %1970 }
0x26da   :  { %v1973_v61 = vadd.f32 %v1971_v44, %v1963_v10 }
0x26dc   :  { %2444 = vtanh.f32 %v1973_v61 }
0x26e2   :  { %v2445_v19 = vpop.eup %2444 }
0x26e3   :  { %1976 = vrot.lane.b32.xlu1 %v2445_v19, %s2481_s5 }
0x2704   :  { %v2035_v5 = vpop.xlane.xlu0 %2034 }
0x2705   :  { %v2050_v27 = vsub.f32 %v2011_v43, %v2035_v5 }
0x2707   :  { %v2058_v2 = vmul.f32 1.442695, %v2050_v27 }
0x2709   :  { %2446 = vpow2.f32 %v2058_v2 }
0x270c   :  { %v2043_v62 = vpop.xlane.xlu0 %2042 }
0x270d   :  { %2036 = vmax.xlane.f32.xlu1 %v3265_v47  ;;  %v2054_v14 = vsub.f32 %v3260_v45, %v2043_v62 }
0x270f   :  { %v2447_v7 = vpop.eup %2446  ;;  %v2066_v50 = vmul.f32 1.442695, %v2054_v14 }
0x2715   :  { %2044 = vmax.xlane.f32.xlu1 %v3269_v4 }
0x271d   :  { %2074 = vadd.xlane.f32.xlu1 %v2447_v7 }
0x2755   :  { %v1977_v16 = vpop.permute.xlu1 %1976 }
0x2756   :  { %v1979_v41 = vmul.f32 %v1977_v16, %v1962_v55 }
0x2758   :  { %1989 = vrot.lane.b32.xlu2 %v1979_v41, %s2482_s21 }
0x2780   :  { %v2037_v46 = vpop.xlane.xlu1 %2036 }
0x2781   :  { %2038 = vmax.xlane.f32.xlu2 %v3274_v36  ;;  %v2051_v40 = vsub.f32 %v3265_v47, %v2037_v46 }
0x2783   :  { %v2060_v28 = vmul.f32 1.442695, %v2051_v40 }
0x2788   :  { %v3280_v49 = vpop.xlane.xlu1 %2044 }
0x2789   :  { %2040 = vmax.xlane.f32.xlu2 %v3278_v48  ;;  %v2055_v34 = vsub.f32 %v3269_v4, %v3280_v49 }
0x278b   :  { %v2068_v60 = vmul.f32 1.442695, %v2055_v34 }
0x2790   :  { %v2075_v52 = vpop.xlane.xlu1 %2074 }
0x2791   :  { %2448 = vlog2.f32 %v2075_v52  ;;  %2046 = vmax.xlane.f32.xlu2 %v3285_v32 }
0x2792   :  { %2450 = vpow2.f32 %v2060_v28 }
0x2793   :  { %2452 = vpow2.f32 %v2066_v50 }
0x2797   :  { %v2449_v58 = vpop.eup %2448 }
0x2798   :  { %v2451_v51 = vpop.eup %2450  ;;  %v2091_v11 = vmul.f32 0.6931472, %v2449_v58 }
0x2799   :  { %2076 = vadd.xlane.f32.xlu2 %v2451_v51  ;;  %v2453_v21 = vpop.eup %2452 }
0x279a   :  { %v2106_v30 = vadd.f32 %v2091_v11, %v2035_v5 }
0x279c   :  { %v2114_v24 = vsub.f32 %v2011_v43, %v2106_v30 }
0x279e   :  { %2122 = vst [vmem:[%s3349_s18] sm:$0xff] %v2114_v24 }
0x27a1   :  { %2082 = vadd.xlane.f32.xlu2 %v2453_v21 }
0x27b2   :  { %v1990_v12 = vpop.permute.xlu2 %1989 }
0x27b3   :  { %2232 = vmatmul.msk.f32.gmra.mxu3 %vm120_vm0, %v1990_v12 }
0x27f4   :  { %v3293_v17 = vpop.xlane.xlu2 %2038 }
0x27f5   :  { %v2052_v9 = vsub.f32 %v3274_v36, %v3293_v17 }
0x27f7   :  { %v2062_v54 = vmul.f32 1.442695, %v2052_v9 }
0x27fc   :  { %v2041_v57 = vpop.xlane.xlu2 %2040 }
0x27fd   :  { %v2053_v18 = vsub.f32 %v3278_v48, %v2041_v57 }
0x27ff   :  { %v2064_v33 = vmul.f32 1.442695, %v2053_v18 }
0x2801   :  { %2454 = vpow2.f32 %v2064_v33 }
0x2804   :  { %v2047_v25 = vpop.xlane.xlu2 %2046 }
0x2805   :  { %v2056_v13 = vsub.f32 %v3285_v32, %v2047_v25 }
0x2807   :  { %v2455_v22 = vpop.eup %2454  ;;  %v2070_v26 = vmul.f32 1.442695, %v2056_v13 }
0x2808   :  { %2080 = vadd.xlane.f32.xlu1 %v2455_v22 }
0x2809   :  { %2456 = vpow2.f32 %v2070_v26 }
0x280c   :  { %v2077_v29 = vpop.xlane.xlu2 %2076 }
0x280d   :  { %2458 = vlog2.f32 %v2077_v29 }
0x280f   :  { %v2457_v63 = vpop.eup %2456 }
0x2810   :  { %2086 = vadd.xlane.f32.xlu1 %v2457_v63 }
0x2813   :  { %v2459_v23 = vpop.eup %2458 }
0x2814   :  { %v2093_v31 = vmul.f32 0.6931472, %v2459_v23  ;;  %v2083_v15 = vpop.xlane.xlu2 %2082 }
0x2815   :  { %2460 = vlog2.f32 %v2083_v15 }
0x2816   :  { %v2107_v6 = vadd.f32 %v2093_v31, %v2037_v46  ;;  %2462 = vpow2.f32 %v2062_v54 }
0x2817   :  { %2464 = vpow2.f32 %v2068_v60 }
0x2818   :  { %v2115_v3 = vsub.f32 %v3265_v47, %v2107_v6 }
0x281a   :  { %2123 = vst [vmem:[%s3349_s18 + $0x8] sm:$0xff] %v2115_v3 }
0x281b   :  { %v2461_v37 = vpop.eup %2460 }
0x281c   :  { %v2099_v39 = vmul.f32 0.6931472, %v2461_v37  ;;  %v2463_v43 = vpop.eup %2462 }
0x281d   :  { %v2465_v38 = vpop.eup %2464 }
0x281e   :  { %v2110_v53 = vadd.f32 %v2099_v39, %v2043_v62 }
0x2820   :  { %v2118_v59 = vsub.f32 %v3260_v45, %v2110_v53 }
0x2822   :  { %2126 = vst [vmem:[%s3349_s18 + $0x20] sm:$0xff] %v2118_v59 }
0x2836   :  { %v2031_v55 = vpop.f32.mrf.mxu3 }
0x2837   :  { %v2032_v20 = vadd.f32 %v3256_v56, %v2031_v55 }
0x2839   :  { %2048 = vmax.xlane.f32.xlu0 %v2032_v20 }
0x2841   :  { %2078 = vadd.xlane.f32.xlu0 %v2463_v43 }
0x2849   :  { %2084 = vadd.xlane.f32.xlu0 %v2465_v38 }
0x287b   :  { %v2081_v45 = vpop.xlane.xlu1 %2080 }
0x287c   :  { %2466 = vlog2.f32 %v2081_v45 }
0x2882   :  { %v2467_v10 = vpop.eup %2466 }
0x2883   :  { %v2097_v44 = vmul.f32 0.6931472, %v2467_v10  ;;  %v2087_v61 = vpop.xlane.xlu1 %2086 }
0x2884   :  { %2468 = vlog2.f32 %v2087_v61 }
0x2885   :  { %v2109_v19 = vadd.f32 %v2097_v44, %v2041_v57 }
0x2887   :  { %v2117_v56 = vsub.f32 %v3278_v48, %v2109_v19 }
0x2889   :  { %2125 = vst [vmem:[%s3349_s18 + $0x18] sm:$0xff] %v2117_v56 }
0x288a   :  { %v2469_v0 = vpop.eup %2468 }
0x288b   :  { %v2103_v47 = vmul.f32 0.6931472, %v2469_v0 }
0x288d   :  { %v2112_v5 = vadd.f32 %v2103_v47, %v2047_v25 }
0x288f   :  { %v2120_v27 = vsub.f32 %v3285_v32, %v2112_v5 }
0x2891   :  { %2128 = vst [vmem:[%s3349_s18 + $0x30] sm:$0xff] %v2120_v27 }
0x28ac   :  { %v2049_v1 = vpop.xlane.xlu0 %2048 }
0x28ad   :  { %v2057_v2 = vsub.f32 %v2032_v20, %v2049_v1 }
0x28af   :  { %v2072_v7 = vmul.f32 1.442695, %v2057_v2 }
0x28b1   :  { %2470 = vpow2.f32 %v2072_v7 }
0x28b4   :  { %v2079_v16 = vpop.xlane.xlu0 %2078 }
0x28b5   :  { %2472 = vlog2.f32 %v2079_v16 }
0x28b7   :  { %v2471_v41 = vpop.eup %2470 }
0x28b8   :  { %2088 = vadd.xlane.f32.xlu2 %v2471_v41 }
0x28bb   :  { %v2473_v42 = vpop.eup %2472 }
0x28bc   :  { %v2095_v46 = vmul.f32 0.6931472, %v2473_v42  ;;  %v2085_v35 = vpop.xlane.xlu0 %2084 }
0x28bd   :  { %2474 = vlog2.f32 %v2085_v35 }
0x28be   :  { %v2108_v48 = vadd.f32 %v2095_v46, %v3293_v17 }
0x28c0   :  { %v2116_v40 = vsub.f32 %v3274_v36, %v2108_v48 }
0x28c2   :  { %2124 = vst [vmem:[%s3349_s18 + $0x10] sm:$0xff] %v2116_v40 }
0x28c3   :  { %v2475_v8 = vpop.eup %2474 }
0x28c4   :  { %v2101_v28 = vmul.f32 0.6931472, %v2475_v8 }
0x28c6   :  { %v2111_v32 = vadd.f32 %v2101_v28, %v3280_v49 }
0x28c8   :  { %v2119_v62 = vsub.f32 %v3269_v4, %v2111_v32 }
0x28ca   :  { %2127 = vst [vmem:[%s3349_s18 + $0x28] sm:$0xff] %v2119_v62 }
0x292b   :  { %v2089_v52 = vpop.xlane.xlu2 %2088 }
0x292c   :  { %2476 = vlog2.f32 %v2089_v52 }
0x2932   :  { %v2477_v14 = vpop.eup %2476 }
0x2933   :  { %v2105_v50 = vmul.f32 0.6931472, %v2477_v14 }
0x2935   :  { %v2113_v58 = vadd.f32 %v2105_v50, %v2049_v1 }
0x2937   :  { %v2121_v36 = vsub.f32 %v2032_v20, %v2113_v58 }
0x2939   :  { %2129 = vst [vmem:[%s3349_s18 + $0x38] sm:$0xff] %v2121_v36 }

</bundles_post_ra>
